<compile_context>
chip_gen: v5e
topology: v5e:2x2
jax: 0.10.0
libtpu: 0.0.40
codegen_flags: <defaults>
</compile_context>

<pallas_src>
import functools

import jax
import jax.numpy as jnp
from jax.experimental import pallas as pl
from jax.experimental.pallas import tpu as pltpu


# ----------------------------- Pallas kernels -----------------------------

def _matmul_t_kernel(w_ref, x_ref, b_ref, o_ref, *, apply_relu):
    """One M-tile of  out(Cout, tm) = relu?(W(Cout, K) @ X(K, tm) + b(Cout, 1))."""
    acc = jnp.dot(w_ref[...], x_ref[...], preferred_element_type=jnp.float32)
    acc = acc + b_ref[...]                       # (Cout, 1) broadcasts across lanes
    if apply_relu:
        acc = jnp.maximum(acc, 0.0)
    o_ref[...] = acc.astype(o_ref.dtype)


def _max4_kernel(a_ref, b_ref, c_ref, d_ref, o_ref):
    """Elementwise max of the four 2x2-pool corner views."""
    o_ref[...] = jnp.maximum(jnp.maximum(a_ref[...], b_ref[...]),
                             jnp.maximum(c_ref[...], d_ref[...]))


# ----------------------------- wrappers -----------------------------------

def matmul_t(w, x, b, *, relu, tm=2048):
    """w: (Cout, K) bf16, x: (K, M) bf16, b: (Cout,) f32 -> (Cout, M) f32 = relu?(w @ x + b)."""
    Cout, K = w.shape
    _, M = x.shape
    tm = min(tm, M)
    kernel = functools.partial(_matmul_t_kernel, apply_relu=relu)
    return pl.pallas_call(
        kernel,
        out_shape=jax.ShapeDtypeStruct((Cout, M), jnp.float32),
        grid=(pl.cdiv(M, tm),),                          # ragged last block: OOB cols dropped
        in_specs=[
            pl.BlockSpec((Cout, K), lambda i: (0, 0)),   # weights: resident
            pl.BlockSpec((K, tm), lambda i: (0, i)),     # activations: tiled along lanes (M)
            pl.BlockSpec((Cout, 1), lambda i: (0, 0)),   # bias: resident
        ],
        out_specs=pl.BlockSpec((Cout, tm), lambda i: (0, i)),
        compiler_params=pltpu.CompilerParams(dimension_semantics=("parallel",)),
    )(w, x, b.reshape(Cout, 1))


def maxpool_2x2(x):
    """MaxPool2d(kernel=2, stride=2), floor semantics.  x: (C, N, H, W) -> (C, N, H//2, W//2)."""
    C, N, H, W = x.shape
    Ho, Wo = H // 2, W // 2
    # Corner views flattened so the lane axis carries Ho*Wo (961 / 64) elements.
    views = [x[:, :, i:2 * Ho:2, j:2 * Wo:2].reshape(C * N, Ho * Wo)
             for i in (0, 1) for j in (0, 1)]
    R, L = C * N, Ho * Wo
    tr = 8
    out = pl.pallas_call(
        _max4_kernel,
        out_shape=jax.ShapeDtypeStruct((R, L), x.dtype),
        grid=(pl.cdiv(R, tr),),
        in_specs=[pl.BlockSpec((tr, L), lambda i: (i, 0)) for _ in range(4)],
        out_specs=pl.BlockSpec((tr, L), lambda i: (i, 0)),
        compiler_params=pltpu.CompilerParams(dimension_semantics=("parallel",)),
    )(*views)
    return out.reshape(C, N, Ho, Wo)


def im2col_t(x_cnhw, ksize, stride, pad):
    """x: (C, N, H, W) -> bf16 (C*ksize*ksize, N*Ho*Wo); K ordered (c, kh, kw), M ordered (n, ho, wo)."""
    C, N, H, W = x_cnhw.shape
    xp = jnp.pad(x_cnhw, ((0, 0), (0, 0), (pad, pad), (pad, pad)))
    Ho = (H + 2 * pad - ksize) // stride + 1
    Wo = (W + 2 * pad - ksize) // stride + 1
    views = [xp[:, :, kh:kh + stride * Ho:stride, kw:kw + stride * Wo:stride]
             for kh in range(ksize) for kw in range(ksize)]
    cols = jnp.stack(views, axis=1)                          # (C, KH*KW, N, Ho, Wo)
    cols = cols.reshape(C * ksize * ksize, N * Ho * Wo)      # K = (c, kh, kw), M = (n, ho, wo)
    return cols.astype(jnp.bfloat16), Ho, Wo
    # TODO(synk): building the im2col patches fully in-kernel (pl.ANY + manual DMA) would
    # remove this last piece of XLA glue; at these sizes (<2.5 MB) it is not the bottleneck.


def conv2d_relu_t(x_cnhw, w_oihw, b, *, stride, pad, tm):
    """Conv2d (PyTorch OIHW weight) + ReLU, transposed/lane-dense output (Cout, N, Ho, Wo)."""
    Cout, Cin, KH, KW = w_oihw.shape
    cols, Ho, Wo = im2col_t(x_cnhw, KH, stride, pad)
    N = x_cnhw.shape[1]
    w_mat = w_oihw.reshape(Cout, Cin * KH * KW).astype(jnp.bfloat16)   # K order (cin, kh, kw)
    out = matmul_t(w_mat, cols, b, relu=True, tm=tm)                   # (Cout, N*Ho*Wo) f32
    return out.reshape(Cout, N, Ho, Wo)


# ----------------------------- the CNN -------------------------------------

def init_params(key):
    ks = jax.random.split(key, 6)
    scale = 0.05
    return {
        "w1": jax.random.normal(ks[0], (16, 3, 5, 5), jnp.float32) * scale,
        "b1": jax.random.normal(ks[1], (16,), jnp.float32) * scale,
        "w2": jax.random.normal(ks[2], (36, 16, 3, 3), jnp.float32) * scale,
        "b2": jax.random.normal(ks[3], (36,), jnp.float32) * scale,
        "w3": jax.random.normal(ks[4], (6, 36 * 64), jnp.float32) * scale,  # PyTorch (out, in)
        "b3": jax.random.normal(ks[5], (6,), jnp.float32) * scale,
    }


@jax.jit
def cnn_forward(params, x_nchw):
    # NCHW -> CNHW (channels lead; N*H*W ends up on the lane axis of every kernel)
    x = jnp.transpose(x_nchw, (1, 0, 2, 3)).astype(jnp.float32)

    # conv1: Conv2d(3, 16, k=5, s=2, p=1) + ReLU + MaxPool2d(2, 2)
    x = conv2d_relu_t(x, params["w1"], params["b1"], stride=2, pad=1, tm=2048)  # (16, N, 63, 63)
    x = maxpool_2x2(x)                                                          # (16, N, 31, 31)

    # conv2: Conv2d(16, 36, k=3, s=2, p=1) + ReLU + MaxPool2d(2, 2)
    x = conv2d_relu_t(x, params["w2"], params["b2"], stride=2, pad=1, tm=256)   # (36, N, 16, 16)
    x = maxpool_2x2(x)                                                          # (36, N, 8, 8)

    # x.view(-1, 36*64): PyTorch flattens each sample in (c, h, w) order.
    C, N, Ho, Wo = x.shape
    feat_t = jnp.transpose(x, (0, 2, 3, 1)).reshape(C * Ho * Wo, N)             # (2304, N)

    # linear: (6, 2304) @ (2304, N) + b3, then transpose to (N, 6)
    out_t = matmul_t(params["w3"].astype(jnp.bfloat16),
                     feat_t.astype(jnp.bfloat16),
                     params["b3"], relu=False, tm=N)                            # (6, N)
    return out_t.T                                                              # (N, 6)


if __name__ == "__main__":
    key = jax.random.PRNGKey(0)
    pkey, xkey = jax.random.split(key)
    params = init_params(pkey)
    # Input spatial size is fixed by the 36*64-feature Linear: 128x128 -> 63 -> 31 -> 16 -> 8.
    x = jax.random.normal(xkey, (2, 3, 128, 128), jnp.float32)
    out = cnn_forward(params, x)
    jax.block_until_ready(out)
    assert out.shape == (2, 6), out.shape
    print("KERNEL_OK")
</pallas_src>

<mosaic_0001>
module attributes {stable_mosaic.version = 11 : i64} {
  func.func @_matmul_t_kernel(%arg0: i32, %arg1: memref<16x75xbf16, #tpu.memory_space<vmem>>, %arg2: memref<75x2048xbf16, #tpu.memory_space<vmem>>, %arg3: memref<16x1xf32, #tpu.memory_space<vmem>>, %arg4: memref<16x2048xf32, #tpu.memory_space<vmem>>) attributes {dimension_semantics = [#tpu.dimension_semantics<parallel>], iteration_bounds = array<i64: 4>, scalar_prefetch = 0 : i64, scratch_operands = 0 : i64, tpu.core_type = #tpu.core_type<tc>, window_params = [{pipeline_mode = #tpu.pipeline_mode<synchronous>, transform_indices = @transform_0, window_bounds = array<i64: 16, 75>}, {transform_indices = @transform_1, window_bounds = array<i64: 75, 2048>}, {pipeline_mode = #tpu.pipeline_mode<synchronous>, transform_indices = @transform_2, window_bounds = array<i64: 16, 1>}, {transform_indices = @transform_3, window_bounds = array<i64: 16, 2048>}]} {
    %c0 = arith.constant 0 : index
    %c0_0 = arith.constant 0 : index
    %0 = vector.load %arg1[%c0, %c0_0] : memref<16x75xbf16, #tpu.memory_space<vmem>>, vector<16x75xbf16>
    %c0_1 = arith.constant 0 : index
    %c0_2 = arith.constant 0 : index
    %1 = vector.load %arg2[%c0_1, %c0_2] : memref<75x2048xbf16, #tpu.memory_space<vmem>>, vector<75x2048xbf16>
    %cst = arith.constant dense<0.000000e+00> : vector<16x2048xf32>
    %2 = tpu.matmul %0, %1, %cst {dimension_numbers = #tpu.dot_dimension_numbers<[1], [0], [0], [1], [0, 0, 1, 1], [], []>} : vector<16x75xbf16>, vector<75x2048xbf16>, vector<16x2048xf32> -> vector<16x2048xf32>
    %c0_3 = arith.constant 0 : index
    %c0_4 = arith.constant 0 : index
    %3 = vector.load %arg3[%c0_3, %c0_4] : memref<16x1xf32, #tpu.memory_space<vmem>>, vector<16x1xf32>
    %4 = vector.broadcast %3 : vector<16x1xf32> to vector<16x2048xf32>
    %5 = arith.addf %2, %4 : vector<16x2048xf32>
    %cst_5 = arith.constant 0.000000e+00 : f32
    %6 = vector.broadcast %cst_5 : f32 to vector<16x2048xf32>
    %7 = arith.maximumf %5, %6 : vector<16x2048xf32>
    %c0_6 = arith.constant 0 : index
    %c0_7 = arith.constant 0 : index
    %8 = vector.load %arg4[%c0_6, %c0_7] : memref<16x2048xf32, #tpu.memory_space<vmem>>, vector<16x2048xf32>
    tpu.vector_store %arg4[%c0_6, %c0_7], %7 {strides = array<i32>} : memref<16x2048xf32, #tpu.memory_space<vmem>>, vector<16x2048xf32>,
    return
  }
  func.func @transform_0(%arg0: i32) -> (i32, i32) {
    %c0_i32 = arith.constant 0 : i32
    %c0_i32_0 = arith.constant 0 : i32
    %c0_i32_1 = arith.constant 0 : i32
    return %c0_i32, %c0_i32_0 : i32, i32
  }
  func.func @transform_1(%arg0: i32) -> (i32, i32) {
    %c0_i32 = arith.constant 0 : i32
    %c0_i32_0 = arith.constant 0 : i32
    return %c0_i32, %arg0 : i32, i32
  }
  func.func @transform_2(%arg0: i32) -> (i32, i32) {
    %c0_i32 = arith.constant 0 : i32
    %c0_i32_0 = arith.constant 0 : i32
    %c0_i32_1 = arith.constant 0 : i32
    return %c0_i32, %c0_i32_0 : i32, i32
  }
  func.func @transform_3(%arg0: i32) -> (i32, i32) {
    %c0_i32 = arith.constant 0 : i32
    %c0_i32_0 = arith.constant 0 : i32
    return %c0_i32, %arg0 : i32, i32
  }
}

module attributes {stable_mosaic.version = 11 : i64} {
  func.func @_max4_kernel(%arg0: i32, %arg1: memref<8x961xf32, #tpu.memory_space<vmem>>, %arg2: memref<8x961xf32, #tpu.memory_space<vmem>>, %arg3: memref<8x961xf32, #tpu.memory_space<vmem>>, %arg4: memref<8x961xf32, #tpu.memory_space<vmem>>, %arg5: memref<8x961xf32, #tpu.memory_space<vmem>>) attributes {dimension_semantics = [#tpu.dimension_semantics<parallel>], iteration_bounds = array<i64: 4>, scalar_prefetch = 0 : i64, scratch_operands = 0 : i64, tpu.core_type = #tpu.core_type<tc>, window_params = [{transform_indices = @transform_0, window_bounds = array<i64: 8, 961>}, {transform_indices = @transform_1, window_bounds = array<i64: 8, 961>}, {transform_indices = @transform_2, window_bounds = array<i64: 8, 961>}, {transform_indices = @transform_3, window_bounds = array<i64: 8, 961>}, {transform_indices = @transform_4, window_bounds = array<i64: 8, 961>}]} {
    %c0 = arith.constant 0 : index
    %c0_0 = arith.constant 0 : index
    %0 = vector.load %arg1[%c0, %c0_0] : memref<8x961xf32, #tpu.memory_space<vmem>>, vector<8x961xf32>
    %c0_1 = arith.constant 0 : index
    %c0_2 = arith.constant 0 : index
    %1 = vector.load %arg2[%c0_1, %c0_2] : memref<8x961xf32, #tpu.memory_space<vmem>>, vector<8x961xf32>
    %2 = arith.maximumf %0, %1 : vector<8x961xf32>
    %c0_3 = arith.constant 0 : index
    %c0_4 = arith.constant 0 : index
    %3 = vector.load %arg3[%c0_3, %c0_4] : memref<8x961xf32, #tpu.memory_space<vmem>>, vector<8x961xf32>
    %c0_5 = arith.constant 0 : index
    %c0_6 = arith.constant 0 : index
    %4 = vector.load %arg4[%c0_5, %c0_6] : memref<8x961xf32, #tpu.memory_space<vmem>>, vector<8x961xf32>
    %5 = arith.maximumf %3, %4 : vector<8x961xf32>
    %6 = arith.maximumf %2, %5 : vector<8x961xf32>
    %c0_7 = arith.constant 0 : index
    %c0_8 = arith.constant 0 : index
    %7 = vector.load %arg5[%c0_7, %c0_8] : memref<8x961xf32, #tpu.memory_space<vmem>>, vector<8x961xf32>
    tpu.vector_store %arg5[%c0_7, %c0_8], %6 {strides = array<i32>} : memref<8x961xf32, #tpu.memory_space<vmem>>, vector<8x961xf32>,
    return
  }
  func.func @transform_0(%arg0: i32) -> (i32, i32) {
    %c0_i32 = arith.constant 0 : i32
    %c0_i32_0 = arith.constant 0 : i32
    return %arg0, %c0_i32 : i32, i32
  }
  func.func @transform_1(%arg0: i32) -> (i32, i32) {
    %c0_i32 = arith.constant 0 : i32
    %c0_i32_0 = arith.constant 0 : i32
    return %arg0, %c0_i32 : i32, i32
  }
  func.func @transform_2(%arg0: i32) -> (i32, i32) {
    %c0_i32 = arith.constant 0 : i32
    %c0_i32_0 = arith.constant 0 : i32
    return %arg0, %c0_i32 : i32, i32
  }
  func.func @transform_3(%arg0: i32) -> (i32, i32) {
    %c0_i32 = arith.constant 0 : i32
    %c0_i32_0 = arith.constant 0 : i32
    return %arg0, %c0_i32 : i32, i32
  }
  func.func @transform_4(%arg0: i32) -> (i32, i32) {
    %c0_i32 = arith.constant 0 : i32
    %c0_i32_0 = arith.constant 0 : i32
    return %arg0, %c0_i32 : i32, i32
  }
}

module attributes {stable_mosaic.version = 11 : i64} {
  func.func @_matmul_t_kernel(%arg0: i32, %arg1: memref<36x144xbf16, #tpu.memory_space<vmem>>, %arg2: memref<144x256xbf16, #tpu.memory_space<vmem>>, %arg3: memref<36x1xf32, #tpu.memory_space<vmem>>, %arg4: memref<36x256xf32, #tpu.memory_space<vmem>>) attributes {dimension_semantics = [#tpu.dimension_semantics<parallel>], iteration_bounds = array<i64: 2>, scalar_prefetch = 0 : i64, scratch_operands = 0 : i64, tpu.core_type = #tpu.core_type<tc>, window_params = [{pipeline_mode = #tpu.pipeline_mode<synchronous>, transform_indices = @transform_0, window_bounds = array<i64: 36, 144>}, {transform_indices = @transform_1, window_bounds = array<i64: 144, 256>}, {pipeline_mode = #tpu.pipeline_mode<synchronous>, transform_indices = @transform_2, window_bounds = array<i64: 36, 1>}, {transform_indices = @transform_3, window_bounds = array<i64: 36, 256>}]} {
    %c0 = arith.constant 0 : index
    %c0_0 = arith.constant 0 : index
    %0 = vector.load %arg1[%c0, %c0_0] : memref<36x144xbf16, #tpu.memory_space<vmem>>, vector<36x144xbf16>
    %c0_1 = arith.constant 0 : index
    %c0_2 = arith.constant 0 : index
    %1 = vector.load %arg2[%c0_1, %c0_2] : memref<144x256xbf16, #tpu.memory_space<vmem>>, vector<144x256xbf16>
    %cst = arith.constant dense<0.000000e+00> : vector<36x256xf32>
    %2 = tpu.matmul %0, %1, %cst {dimension_numbers = #tpu.dot_dimension_numbers<[1], [0], [0], [1], [0, 0, 1, 1], [], []>} : vector<36x144xbf16>, vector<144x256xbf16>, vector<36x256xf32> -> vector<36x256xf32>
    %c0_3 = arith.constant 0 : index
    %c0_4 = arith.constant 0 : index
    %3 = vector.load %arg3[%c0_3, %c0_4] : memref<36x1xf32, #tpu.memory_space<vmem>>, vector<36x1xf32>
    %4 = vector.broadcast %3 : vector<36x1xf32> to vector<36x256xf32>
    %5 = arith.addf %2, %4 : vector<36x256xf32>
    %cst_5 = arith.constant 0.000000e+00 : f32
    %6 = vector.broadcast %cst_5 : f32 to vector<36x256xf32>
    %7 = arith.maximumf %5, %6 : vector<36x256xf32>
    %c0_6 = arith.constant 0 : index
    %c0_7 = arith.constant 0 : index
    %8 = vector.load %arg4[%c0_6, %c0_7] : memref<36x256xf32, #tpu.memory_space<vmem>>, vector<36x256xf32>
    tpu.vector_store %arg4[%c0_6, %c0_7], %7 {strides = array<i32>} : memref<36x256xf32, #tpu.memory_space<vmem>>, vector<36x256xf32>,
    return
  }
  func.func @transform_0(%arg0: i32) -> (i32, i32) {
    %c0_i32 = arith.constant 0 : i32
    %c0_i32_0 = arith.constant 0 : i32
    %c0_i32_1 = arith.constant 0 : i32
    return %c0_i32, %c0_i32_0 : i32, i32
  }
  func.func @transform_1(%arg0: i32) -> (i32, i32) {
    %c0_i32 = arith.constant 0 : i32
    %c0_i32_0 = arith.constant 0 : i32
    return %c0_i32, %arg0 : i32, i32
  }
  func.func @transform_2(%arg0: i32) -> (i32, i32) {
    %c0_i32 = arith.constant 0 : i32
    %c0_i32_0 = arith.constant 0 : i32
    %c0_i32_1 = arith.constant 0 : i32
    return %c0_i32, %c0_i32_0 : i32, i32
  }
  func.func @transform_3(%arg0: i32) -> (i32, i32) {
    %c0_i32 = arith.constant 0 : i32
    %c0_i32_0 = arith.constant 0 : i32
    return %c0_i32, %arg0 : i32, i32
  }
}

module attributes {stable_mosaic.version = 11 : i64} {
  func.func @_max4_kernel(%arg0: i32, %arg1: memref<8x64xf32, #tpu.memory_space<vmem>>, %arg2: memref<8x64xf32, #tpu.memory_space<vmem>>, %arg3: memref<8x64xf32, #tpu.memory_space<vmem>>, %arg4: memref<8x64xf32, #tpu.memory_space<vmem>>, %arg5: memref<8x64xf32, #tpu.memory_space<vmem>>) attributes {dimension_semantics = [#tpu.dimension_semantics<parallel>], iteration_bounds = array<i64: 9>, scalar_prefetch = 0 : i64, scratch_operands = 0 : i64, tpu.core_type = #tpu.core_type<tc>, window_params = [{transform_indices = @transform_0, window_bounds = array<i64: 8, 64>}, {transform_indices = @transform_1, window_bounds = array<i64: 8, 64>}, {transform_indices = @transform_2, window_bounds = array<i64: 8, 64>}, {transform_indices = @transform_3, window_bounds = array<i64: 8, 64>}, {transform_indices = @transform_4, window_bounds = array<i64: 8, 64>}]} {
    %c0 = arith.constant 0 : index
    %c0_0 = arith.constant 0 : index
    %0 = vector.load %arg1[%c0, %c0_0] : memref<8x64xf32, #tpu.memory_space<vmem>>, vector<8x64xf32>
    %c0_1 = arith.constant 0 : index
    %c0_2 = arith.constant 0 : index
    %1 = vector.load %arg2[%c0_1, %c0_2] : memref<8x64xf32, #tpu.memory_space<vmem>>, vector<8x64xf32>
    %2 = arith.maximumf %0, %1 : vector<8x64xf32>
    %c0_3 = arith.constant 0 : index
    %c0_4 = arith.constant 0 : index
    %3 = vector.load %arg3[%c0_3, %c0_4] : memref<8x64xf32, #tpu.memory_space<vmem>>, vector<8x64xf32>
    %c0_5 = arith.constant 0 : index
    %c0_6 = arith.constant 0 : index
    %4 = vector.load %arg4[%c0_5, %c0_6] : memref<8x64xf32, #tpu.memory_space<vmem>>, vector<8x64xf32>
    %5 = arith.maximumf %3, %4 : vector<8x64xf32>
    %6 = arith.maximumf %2, %5 : vector<8x64xf32>
    %c0_7 = arith.constant 0 : index
    %c0_8 = arith.constant 0 : index
    %7 = vector.load %arg5[%c0_7, %c0_8] : memref<8x64xf32, #tpu.memory_space<vmem>>, vector<8x64xf32>
    tpu.vector_store %arg5[%c0_7, %c0_8], %6 {strides = array<i32>} : memref<8x64xf32, #tpu.memory_space<vmem>>, vector<8x64xf32>,
    return
  }
  func.func @transform_0(%arg0: i32) -> (i32, i32) {
    %c0_i32 = arith.constant 0 : i32
    %c0_i32_0 = arith.constant 0 : i32
    return %arg0, %c0_i32 : i32, i32
  }
  func.func @transform_1(%arg0: i32) -> (i32, i32) {
    %c0_i32 = arith.constant 0 : i32
    %c0_i32_0 = arith.constant 0 : i32
    return %arg0, %c0_i32 : i32, i32
  }
  func.func @transform_2(%arg0: i32) -> (i32, i32) {
    %c0_i32 = arith.constant 0 : i32
    %c0_i32_0 = arith.constant 0 : i32
    return %arg0, %c0_i32 : i32, i32
  }
  func.func @transform_3(%arg0: i32) -> (i32, i32) {
    %c0_i32 = arith.constant 0 : i32
    %c0_i32_0 = arith.constant 0 : i32
    return %arg0, %c0_i32 : i32, i32
  }
  func.func @transform_4(%arg0: i32) -> (i32, i32) {
    %c0_i32 = arith.constant 0 : i32
    %c0_i32_0 = arith.constant 0 : i32
    return %arg0, %c0_i32 : i32, i32
  }
}

module attributes {stable_mosaic.version = 11 : i64} {
  func.func @_matmul_t_kernel(%arg0: i32, %arg1: memref<6x2304xbf16, #tpu.memory_space<vmem>>, %arg2: memref<2304x2xbf16, #tpu.memory_space<vmem>>, %arg3: memref<6x1xf32, #tpu.memory_space<vmem>>, %arg4: memref<6x2xf32, #tpu.memory_space<vmem>>) attributes {dimension_semantics = [#tpu.dimension_semantics<parallel>], iteration_bounds = array<i64: 1>, scalar_prefetch = 0 : i64, scratch_operands = 0 : i64, tpu.core_type = #tpu.core_type<tc>, window_params = [{pipeline_mode = #tpu.pipeline_mode<synchronous>, transform_indices = @transform_0, window_bounds = array<i64: 6, 2304>}, {transform_indices = @transform_1, window_bounds = array<i64: 2304, 2>}, {pipeline_mode = #tpu.pipeline_mode<synchronous>, transform_indices = @transform_2, window_bounds = array<i64: 6, 1>}, {transform_indices = @transform_3, window_bounds = array<i64: 6, 2>}]} {
    %c0 = arith.constant 0 : index
    %c0_0 = arith.constant 0 : index
    %0 = vector.load %arg1[%c0, %c0_0] : memref<6x2304xbf16, #tpu.memory_space<vmem>>, vector<6x2304xbf16>
    %c0_1 = arith.constant 0 : index
    %c0_2 = arith.constant 0 : index
    %1 = vector.load %arg2[%c0_1, %c0_2] : memref<2304x2xbf16, #tpu.memory_space<vmem>>, vector<2304x2xbf16>
    %cst = arith.constant dense<0.000000e+00> : vector<6x2xf32>
    %2 = tpu.matmul %0, %1, %cst {dimension_numbers = #tpu.dot_dimension_numbers<[1], [0], [0], [1], [0, 0, 1, 1], [], []>} : vector<6x2304xbf16>, vector<2304x2xbf16>, vector<6x2xf32> -> vector<6x2xf32>
    %c0_3 = arith.constant 0 : index
    %c0_4 = arith.constant 0 : index
    %3 = vector.load %arg3[%c0_3, %c0_4] : memref<6x1xf32, #tpu.memory_space<vmem>>, vector<6x1xf32>
    %4 = vector.broadcast %3 : vector<6x1xf32> to vector<6x2xf32>
    %5 = arith.addf %2, %4 : vector<6x2xf32>
    %c0_5 = arith.constant 0 : index
    %c0_6 = arith.constant 0 : index
    %6 = vector.load %arg4[%c0_5, %c0_6] : memref<6x2xf32, #tpu.memory_space<vmem>>, vector<6x2xf32>
    tpu.vector_store %arg4[%c0_5, %c0_6], %5 {strides = array<i32>} : memref<6x2xf32, #tpu.memory_space<vmem>>, vector<6x2xf32>,
    return
  }
  func.func @transform_0(%arg0: i32) -> (i32, i32) {
    %c0_i32 = arith.constant 0 : i32
    %c0_i32_0 = arith.constant 0 : i32
    %c0_i32_1 = arith.constant 0 : i32
    return %c0_i32, %c0_i32_0 : i32, i32
  }
  func.func @transform_1(%arg0: i32) -> (i32, i32) {
    %c0_i32 = arith.constant 0 : i32
    %c0_i32_0 = arith.constant 0 : i32
    return %c0_i32, %arg0 : i32, i32
  }
  func.func @transform_2(%arg0: i32) -> (i32, i32) {
    %c0_i32 = arith.constant 0 : i32
    %c0_i32_0 = arith.constant 0 : i32
    %c0_i32_1 = arith.constant 0 : i32
    return %c0_i32, %c0_i32_0 : i32, i32
  }
  func.func @transform_3(%arg0: i32) -> (i32, i32) {
    %c0_i32 = arith.constant 0 : i32
    %c0_i32_0 = arith.constant 0 : i32
    return %c0_i32, %arg0 : i32, i32
  }
}

</mosaic_0001>

<bundles_post_ra>
// kernel: cnn_forward.5
= control target key start
LH: loop header
LB: loop body
LE: loop exit
PB: predicated region body
PF: predicated region fallthrough
CT: control target
= control target key end

     0   :  { %s2982_s12 = smov 0   ;;  %s2984_s13 = smov 0   ;;  %s4031_s0 = inlined_call_operand.vmem [shape: bf16[16,75], index: 0, kind: input, shape index: {}]   ;;  %s4032_s1 = inlined_call_operand.vmem [shape: bf16[75,7938], index: 1, kind: input, shape index: {}]   ;;  %s4033_s2 = inlined_call_operand.vmem [shape: f32[16,1], index: 2, kind: input, shape index: {}]   ;;  %s4034_s3 = inlined_call_operand.vmem [shape: f32[16,7938], index: 3, kind: output, shape index: {}]  }
   0x1   :  { %s2986_s14 = smov 0  }
   0x2 LB: > { %s2998_s15 = sadd.s32 4294967295, %s2826_s14   ;;  %s3001_s16 = sadd.s32 1, %s2826_s14   ;;  %s2826_s14 = sphi %s2986_s14, %s4068_s14   ;;  %s2822_s13 = sphi %s2984_s13, %s4067_s13   ;;  %s2818_s12 = sphi %s2982_s12, %s4066_s12  }
   0x3   : > { %s38_s17 = ssub.s32 %s2826_s14, %s3001_s16  ;;  %s41_s18 = sadd.s32 1, %s2822_s13 }
   0x4   : > { %p39_p0 = scmp.eq.s32.totalorder %s38_s17, 0  ;;  %p48_p1 = scmp.ne.s32.totalorder %s2822_s13, %s2818_s12 }
   0x5   : > { %p49_p2 = scmp.eq.s32.totalorder %s2826_s14, 0  ;;  %p99_p3 = scmp.eq.s32.totalorder %s2998_s15, 3 }
   0x6   : > { %s3011_s19 = scalar_select %p39_p0, %s2822_s13, %s41_s18  }
   0x7   : > { %p50_p4 = por %p49_p2, %p48_p1  ;;  %p3013_p5 = por %p99_p3, %p48_p1 }
   0x8   : > { %p1895_p6 = scmp.ge.s32.totalorder %s2826_s14, 4 }
   0xa   : > { %127 = sbr.rel (%p1895_p6) target bundleno = 209 (0xd1), region = 24 }
   0xf   : > { %130 = sbr.rel (!%p50_p4) target bundleno = 209 (0xd1), region = 28  ;;  %s132_s21 = sand.u32 (%p50_p4), 1, %s2822_s13  }
  0x10   : > { %s1896_s22 = sshll.u32 (%p50_p4), %s2826_s14, 4  ;;  %s2387_s23 = smul.u32 (%p50_p4), 640, %s132_s21 }
  0x11   : > { %s136_s24 = ssub.s32 (%p50_p4), 63, %s1896_s22  ;;  %s2296_s25 = sshll.u32 (%p50_p4), %s2826_s14, 6 }
  0x12   : > { %p137_p7 = scmp.lt.s32.totalorder (%p50_p4), %s136_s24, 16  ;;  %s3024_s28 = scalar_lea.vmem (%p50_p4), %s4032_s1, %s2296_s25  }
  0x13   : > { %s3028_s4 = scalar_lea.vmem (%p50_p4), [#allocation2], %s2387_s23  }
  0x14   : > { %s4070_s24 = smov (!%p137_p7, %s136_s24), 16 }
  0x15   : > { %s139_s29 = smul.u32 40, %s4070_s24  ;;  %s3026_s30 = sshll.u32 %s4070_s24, 2 }
  0x17   : > { %p1900_p8 = scmp.eq.s32.totalorder %s139_s29, 0 }
  0x18   : > { %p147_p9 = scmp.lt.u32.totalorder (!%p1900_p8), %s3026_s30, 8 }
  0x19   : > { %146 = sbr.rel (%p1900_p8) target bundleno = 209 (0xd1), region = 32 }
  0x1e   : > { %150 = sbr.rel (%p147_p9) target bundleno = 191 (0xbf), region = 36  ;;  %s3032_s5 = sand.u32 (!%p147_p9), 7, %s3026_s30  }
  0x1f   : > { %p185_p10 = scmp.eq.s32.totalorder (!%p147_p9), %s3032_s5, 0  ;;  %p1901_p11 = scmp.ne.s32.totalorder (!%p147_p9), %s3032_s5, 0 }
  0x23   : > { %188 = sbr.rel (%p1901_p11) target bundleno = 106 (0x6a), region = 51  ;;  %s189_s6 = sshrl.u32 (!%p1901_p11), %s3026_s30, 3 }
  0x24   : > { %s3039_s7 = sshrl.u32 (!%p1901_p11), %s189_s6, 2 }
  0x25   : > { %p1902_p12 = scmp.le.s32.totalorder (!%p1901_p11), %s3039_s7, 0 }
  0x28   : > { %1765 = sbr.rel (%p1902_p12) target bundleno = 86 (0x56), region = 229  ;;  %s4036_s8 = smov (!%p1902_p12), %s3028_s4 }
  0x29   : > { %s4037_s9 = smov (!%p1902_p12), %s3024_s28  ;;  %s3048_s10 = smov (!%p1902_p12), 0  }
  0x2a   : > { %s3050_s11 = smov (!%p1902_p12), 0  }
  0x2d LB: >> { %v200_v0 = vld [vmem:[%s2834_s9] sm:$0xff]  ;;  %v202_v1 = vld [vmem:[%s2834_s9 + $0x8] sm:$0xff]  ;;  %v204_v2 = vld [vmem:[%s2834_s9 + $0x10] sm:$0xff]  ;;  %s280_s17 = sadd.s32 1, %s2838_s10  ;;  %s194_s11 = sadd.s32 1, %s2842_s11   ;;  %s2842_s11 = sphi %s3050_s11, %s194_s11   ;;  %s2838_s10 = sphi %s3048_s10, %s4040_s10   ;;  %s2834_s9 = sphi %s4037_s9, %s4039_s9   ;;  %s2830_s8 = sphi %s4036_s8, %s4038_s8  }
  0x2e   : >> { %201 = vst [vmem:[%s2830_s8] sm:$0xff] %v200_v0  ;;  %v206_v3 = vld [vmem:[%s2834_s9 + $0x18] sm:$0xff]  ;;  %p281_p13 = scmp.ge.s32.totalorder %s280_s17, %s3039_s7  ;;  %v210_v5 = vld [vmem:[%s2834_s9 + $0x104] sm:$0xff]  ;;  %v212_v6 = vld [vmem:[%s2834_s9 + $0x10c] sm:$0xff]  ;;  %p193_p0 = scmp.ge.s32.totalorder %s194_s11, %s3039_s7 }
  0x2f   : >> { %203 = vst [vmem:[%s2830_s8 + $0x8] sm:$0xff] %v202_v1  ;;  %v208_v4 = vld [vmem:[%s2834_s9 + $0xfc] sm:$0xff]  ;;  %v214_v7 = vld [vmem:[%s2834_s9 + $0x114] sm:$0xff]  ;;  %v220_v10 = vld [vmem:[%s2834_s9 + $0x208] sm:$0xff] }
  0x30   : >> { %205 = vst [vmem:[%s2830_s8 + $0x10] sm:$0xff] %v204_v2  ;;  %s4072_s17 = smov (%p281_p13, %s280_s17), 0  ;;  %v216_v8 = vld [vmem:[%s2834_s9 + $0x1f8] sm:$0xff]  ;;  %v218_v9 = vld [vmem:[%s2834_s9 + $0x200] sm:$0xff]  ;;  %v222_v11 = vld [vmem:[%s2834_s9 + $0x210] sm:$0xff] }
  0x31   : >> { %207 = vst [vmem:[%s2830_s8 + $0x18] sm:$0xff] %v206_v3  ;;  %s1903_s18 = sshll.u32 %s4072_s17, 5  ;;  %v224_v12 = vld [vmem:[%s2834_s9 + $0x2f4] sm:$0xff]  ;;  %v226_v13 = vld [vmem:[%s2834_s9 + $0x2fc] sm:$0xff]  ;;  %v228_v14 = vld [vmem:[%s2834_s9 + $0x304] sm:$0xff]  ;;  %s4040_s10 = smov %s4072_s17 }
  0x32   : >> { %209 = vst [vmem:[%s2830_s8 + $0x40] sm:$0xff] %v208_v4  ;;  %s3082_s21 = scalar_lea.vmem %s3024_s28, %s1903_s18   ;;  %s3085_s22 = scalar_lea.vmem %s3028_s4, %s1903_s18 [#allocation2]   ;;  %v230_v15 = vld [vmem:[%s2834_s9 + $0x30c] sm:$0xff]  ;;  %v234_v17 = vld [vmem:[%s2834_s9 + $0x3f8] sm:$0xff]  ;;  %v236_v18 = vld [vmem:[%s2834_s9 + $0x400] sm:$0xff] }
  0x33   : >> { %211 = vst [vmem:[%s2830_s8 + $0x48] sm:$0xff] %v210_v5  ;;  %v232_v16 = vld [vmem:[%s2834_s9 + $0x3f0] sm:$0xff]  ;;  %v238_v19 = vld [vmem:[%s2834_s9 + $0x408] sm:$0xff]  ;;  %v244_v22 = vld [vmem:[%s2834_s9 + $0x4fc] sm:$0xff] }
  0x34   : >> { %213 = vst [vmem:[%s2830_s8 + $0x50] sm:$0xff] %v212_v6  ;;  %v240_v20 = vld [vmem:[%s2834_s9 + $0x4ec] sm:$0xff]  ;;  %v242_v21 = vld [vmem:[%s2834_s9 + $0x4f4] sm:$0xff]  ;;  %v246_v23 = vld [vmem:[%s2834_s9 + $0x504] sm:$0xff] }
  0x35   : >> { %215 = vst [vmem:[%s2830_s8 + $0x58] sm:$0xff] %v214_v7  ;;  %v248_v24 = vld [vmem:[%s2834_s9 + $0x5e8] sm:$0xff]  ;;  %v250_v25 = vld [vmem:[%s2834_s9 + $0x5f0] sm:$0xff]  ;;  %v252_v26 = vld [vmem:[%s2834_s9 + $0x5f8] sm:$0xff] }
  0x36   : >> { %217 = vst [vmem:[%s2830_s8 + $0x80] sm:$0xff] %v216_v8  ;;  %v254_v27 = vld [vmem:[%s2834_s9 + $0x600] sm:$0xff]  ;;  %v258_v29 = vld [vmem:[%s2834_s9 + $0x6ec] sm:$0xff]  ;;  %v260_v30 = vld [vmem:[%s2834_s9 + $0x6f4] sm:$0xff] }
  0x37   : >> { %219 = vst [vmem:[%s2830_s8 + $0x88] sm:$0xff] %v218_v9  ;;  %v256_v28 = vld [vmem:[%s2834_s9 + $0x6e4] sm:$0xff]  ;;  %v262_v31 = vld [vmem:[%s2834_s9 + $0x6fc] sm:$0xff]  ;;  %v268_v34 = vld [vmem:[%s2834_s9 + $0x7f0] sm:$0xff] }
  0x38   : >> { %221 = vst [vmem:[%s2830_s8 + $0x90] sm:$0xff] %v220_v10  ;;  %v264_v32 = vld [vmem:[%s2834_s9 + $0x7e0] sm:$0xff]  ;;  %v266_v33 = vld [vmem:[%s2834_s9 + $0x7e8] sm:$0xff]  ;;  %v270_v35 = vld [vmem:[%s2834_s9 + $0x7f8] sm:$0xff] }
  0x39   : >> { %223 = vst [vmem:[%s2830_s8 + $0x98] sm:$0xff] %v222_v11  ;;  %v272_v36 = vld [vmem:[%s2834_s9 + $0x8dc] sm:$0xff]  ;;  %v274_v37 = vld [vmem:[%s2834_s9 + $0x8e4] sm:$0xff]  ;;  %v276_v38 = vld [vmem:[%s2834_s9 + $0x8ec] sm:$0xff] }
  0x3a   : >> { %225 = vst [vmem:[%s2830_s8 + $0xc0] sm:$0xff] %v224_v12  ;;  %v278_v39 = vld [vmem:[%s2834_s9 + $0x8f4] sm:$0xff]  ;;  %s4039_s9 = smov %s3082_s21 }
  0x3b   : >> { %227 = vst [vmem:[%s2830_s8 + $0xc8] sm:$0xff] %v226_v13 }
  0x3c   : >> { %229 = vst [vmem:[%s2830_s8 + $0xd0] sm:$0xff] %v228_v14 }
  0x3d   : >> { %231 = vst [vmem:[%s2830_s8 + $0xd8] sm:$0xff] %v230_v15 }
  0x3e   : >> { %233 = vst [vmem:[%s2830_s8 + $0x100] sm:$0xff] %v232_v16 }
  0x3f   : >> { %235 = vst [vmem:[%s2830_s8 + $0x108] sm:$0xff] %v234_v17 }
  0x40   : >> { %237 = vst [vmem:[%s2830_s8 + $0x110] sm:$0xff] %v236_v18 }
  0x41   : >> { %239 = vst [vmem:[%s2830_s8 + $0x118] sm:$0xff] %v238_v19 }
  0x42   : >> { %241 = vst [vmem:[%s2830_s8 + $0x140] sm:$0xff] %v240_v20 }
  0x43   : >> { %243 = vst [vmem:[%s2830_s8 + $0x148] sm:$0xff] %v242_v21 }
  0x44   : >> { %245 = vst [vmem:[%s2830_s8 + $0x150] sm:$0xff] %v244_v22 }
  0x45   : >> { %247 = vst [vmem:[%s2830_s8 + $0x158] sm:$0xff] %v246_v23 }
  0x46   : >> { %249 = vst [vmem:[%s2830_s8 + $0x180] sm:$0xff] %v248_v24 }
  0x47   : >> { %251 = vst [vmem:[%s2830_s8 + $0x188] sm:$0xff] %v250_v25 }
  0x48   : >> { %253 = vst [vmem:[%s2830_s8 + $0x190] sm:$0xff] %v252_v26 }
  0x49   : >> { %255 = vst [vmem:[%s2830_s8 + $0x198] sm:$0xff] %v254_v27 }
  0x4a   : >> { %257 = vst [vmem:[%s2830_s8 + $0x1c0] sm:$0xff] %v256_v28 }
  0x4b   : >> { %259 = vst [vmem:[%s2830_s8 + $0x1c8] sm:$0xff] %v258_v29 }
  0x4c   : >> { %261 = vst [vmem:[%s2830_s8 + $0x1d0] sm:$0xff] %v260_v30 }
  0x4d   : >> { %263 = vst [vmem:[%s2830_s8 + $0x1d8] sm:$0xff] %v262_v31 }
  0x4e   : >> { %265 = vst [vmem:[%s2830_s8 + $0x200] sm:$0xff] %v264_v32 }
  0x4f   : >> { %267 = vst [vmem:[%s2830_s8 + $0x208] sm:$0xff] %v266_v33 }
  0x50   : >> { %269 = vst [vmem:[%s2830_s8 + $0x210] sm:$0xff] %v268_v34 }
  0x51   : >> { %271 = vst [vmem:[%s2830_s8 + $0x218] sm:$0xff] %v270_v35  ;;  %196 = sbr.rel (!%p193_p0) target bundleno = 45 (0x2d), region = 235 }
  0x52   : >> { %273 = vst [vmem:[%s2830_s8 + $0x240] sm:$0xff] %v272_v36 }
  0x53   : >> { %275 = vst [vmem:[%s2830_s8 + $0x248] sm:$0xff] %v274_v37 }
  0x54   : >> { %277 = vst [vmem:[%s2830_s8 + $0x250] sm:$0xff] %v276_v38 }
  0x55   : >> { %279 = vst [vmem:[%s2830_s8 + $0x258] sm:$0xff] %v278_v39  ;;  %s4038_s8 = smov %s3085_s22 }
  0x56 PF: > { %s3167_s23 = sand.u32 3, %s189_s6   ;;  %s2297_s24 = sshll.u32 %s3039_s7, 5 }
  0x57   : > { %s3171_s25 = scalar_lea.vmem %s3024_s28, %s2297_s24   ;;  %s3174_s26 = scalar_lea.vmem %s3028_s4, %s2297_s24 [#allocation2]  }
  0x58   : > { %p1908_p1 = scmp.le.s32.totalorder %s3167_s23, 0 }
  0x59   : > { %s4041_s27 = smov (!%p1908_p1), %s3174_s26  ;;  %s4042_s29 = smov (!%p1908_p1), %s3171_s25 }
  0x5a   : > { %1779 = sbr.rel (%p1908_p1) target bundleno = 106 (0x6a), region = 240  ;;  %s3183_s8 = smov (!%p1908_p1), 0  }
  0x5b   : > { %s3185_s9 = smov (!%p1908_p1), 0  }
  0x5f LB: >> { %v303_v40 = vld [vmem:[%s2850_s29] sm:$0xff]  ;;  %v307_v42 = vld [vmem:[%s2850_s29 + $0x1f8] sm:$0xff]  ;;  %s323_s6 = sadd.s32 1, %s2854_s8  ;;  %v311_v44 = vld [vmem:[%s2850_s29 + $0x3f0] sm:$0xff]  ;;  %s297_s9 = sadd.s32 1, %s2858_s9   ;;  %s2858_s9 = sphi %s3185_s9, %s297_s9   ;;  %s2854_s8 = sphi %s3183_s8, %s4045_s8   ;;  %s2850_s29 = sphi %s4042_s29, %s4044_s29   ;;  %s2846_s27 = sphi %s4041_s27, %s4043_s27  }
  0x60   : >> { %v305_v41 = vld [vmem:[%s2850_s29 + $0xfc] sm:$0xff]  ;;  %304 = vst [vmem:[%s2846_s27] sm:$0xff] %v303_v40  ;;  %v309_v43 = vld [vmem:[%s2850_s29 + $0x2f4] sm:$0xff]  ;;  %p324_p2 = scmp.ge.s32.totalorder %s323_s6, %s3167_s23  ;;  %v313_v45 = vld [vmem:[%s2850_s29 + $0x4ec] sm:$0xff]  ;;  %p296_p3 = scmp.ge.s32.totalorder %s297_s9, %s3167_s23 }
  0x61   : >> { %306 = vst [vmem:[%s2846_s27 + $0x40] sm:$0xff] %v305_v41  ;;  %v315_v46 = vld [vmem:[%s2850_s29 + $0x5e8] sm:$0xff]  ;;  %v319_v48 = vld [vmem:[%s2850_s29 + $0x7e0] sm:$0xff] }
  0x62   : >> { %308 = vst [vmem:[%s2846_s27 + $0x80] sm:$0xff] %v307_v42  ;;  %s4074_s6 = smov (%p324_p2, %s323_s6), 0  ;;  %v317_v47 = vld [vmem:[%s2850_s29 + $0x6e4] sm:$0xff]  ;;  %v321_v49 = vld [vmem:[%s2850_s29 + $0x8dc] sm:$0xff] }
  0x63   : >> { %310 = vst [vmem:[%s2846_s27 + $0xc0] sm:$0xff] %v309_v43  ;;  %s1909_s7 = sshll.u32 %s4074_s6, 3  ;;  %s4045_s8 = smov %s4074_s6 }
  0x64   : >> { %312 = vst [vmem:[%s2846_s27 + $0x100] sm:$0xff] %v311_v44  ;;  %s328_s10 = scalar_lea.vmem %s3171_s25, %s1909_s7   ;;  %s329_s11 = scalar_lea.vmem %s3174_s26, %s1909_s7 [#allocation2]  }
  0x65   : >> { %314 = vst [vmem:[%s2846_s27 + $0x140] sm:$0xff] %v313_v45  ;;  %s4044_s29 = smov %s328_s10  ;;  %299 = sbr.rel (!%p296_p3) target bundleno = 95 (0x5f), region = 246 }
  0x66   : >> { %316 = vst [vmem:[%s2846_s27 + $0x180] sm:$0xff] %v315_v46 }
  0x67   : >> { %318 = vst [vmem:[%s2846_s27 + $0x1c0] sm:$0xff] %v317_v47 }
  0x68   : >> { %320 = vst [vmem:[%s2846_s27 + $0x200] sm:$0xff] %v319_v48 }
  0x69   : >> { %322 = vst [vmem:[%s2846_s27 + $0x240] sm:$0xff] %v321_v49  ;;  %s4043_s27 = smov %s329_s11 }
  0x6a PF: > { %332 = sbr.rel (%p185_p10) target bundleno = 191 (0xbf), region = 69  ;;  %s334_s17 = ssub.s32 (!%p185_p10), %s3026_s30, %s3032_s5 }
  0x6b   : > { %s338_s18 = sshrl.u32 (!%p185_p10), %s3026_s30, 3  ;;  %s3212_s21 = scalar_lea.vmem (!%p185_p10), %s3024_s28, %s334_s17 }
  0x6c   : > { %s3215_s22 = scalar_lea.vmem (!%p185_p10), %s3028_s4, %s334_s17 [#allocation2]  ;;  %s3219_s24 = sshrl.u32 (!%p185_p10), %s338_s18, 2 }
  0x6d   : > { %p1911_p4 = scmp.le.s32.totalorder (!%p185_p10), %s3219_s24, 0 }
  0x6f   : > { %1793 = sbr.rel (%p1911_p4) target bundleno = 157 (0x9d), region = 251  ;;  %s4046_s23 = smov (!%p1911_p4), %s3028_s4 }
  0x70   : > { %s4047_s25 = smov (!%p1911_p4), %s3024_s28  ;;  %s3228_s26 = smov (!%p1911_p4), 0  }
  0x71   : > { %s3230_s27 = smov (!%p1911_p4), 0  }
  0x74 LB: >> { %v349_v50 = vld [vmem:[%s2866_s25] sm:$0xff]  ;;  %v351_v51 = vld [vmem:[%s2866_s25 + $0x8] sm:$0xff]  ;;  %v353_v52 = vld [vmem:[%s2866_s25 + $0x10] sm:$0xff]  ;;  %s429_s29 = sadd.s32 1, %s2870_s26  ;;  %s343_s27 = sadd.s32 1, %s2874_s27   ;;  %s2874_s27 = sphi %s3230_s27, %s343_s27   ;;  %s2870_s26 = sphi %s3228_s26, %s4050_s26   ;;  %s2866_s25 = sphi %s4047_s25, %s4049_s25   ;;  %s2862_s23 = sphi %s4046_s23, %s4048_s23  }
  0x75   : >> { %350 = vst [vmem:[%s2862_s23] sm:$0xff] %v349_v50  ;;  %v355_v53 = vld [vmem:[%s2866_s25 + $0x18] sm:$0xff]  ;;  %p430_p6 = scmp.ge.s32.totalorder %s429_s29, %s3219_s24  ;;  %v359_v55 = vld [vmem:[%s2866_s25 + $0x104] sm:$0xff]  ;;  %v361_v56 = vld [vmem:[%s2866_s25 + $0x10c] sm:$0xff]  ;;  %p342_p7 = scmp.ge.s32.totalorder %s343_s27, %s3219_s24 }
  0x76   : >> { %352 = vst [vmem:[%s2862_s23 + $0x8] sm:$0xff] %v351_v51  ;;  %v357_v54 = vld [vmem:[%s2866_s25 + $0xfc] sm:$0xff]  ;;  %v363_v57 = vld [vmem:[%s2866_s25 + $0x114] sm:$0xff]  ;;  %v369_v60 = vld [vmem:[%s2866_s25 + $0x208] sm:$0xff] }
  0x77   : >> { %354 = vst [vmem:[%s2862_s23 + $0x10] sm:$0xff] %v353_v52  ;;  %s4076_s29 = smov (%p430_p6, %s429_s29), 0  ;;  %v365_v58 = vld [vmem:[%s2866_s25 + $0x1f8] sm:$0xff]  ;;  %v367_v59 = vld [vmem:[%s2866_s25 + $0x200] sm:$0xff]  ;;  %v371_v61 = vld [vmem:[%s2866_s25 + $0x210] sm:$0xff] }
  0x78   : >> { %356 = vst [vmem:[%s2862_s23 + $0x18] sm:$0xff] %v355_v53  ;;  %s1912_s8 = sshll.u32 %s4076_s29, 5  ;;  %v373_v62 = vld [vmem:[%s2866_s25 + $0x2f4] sm:$0xff]  ;;  %v375_v63 = vld [vmem:[%s2866_s25 + $0x2fc] sm:$0xff]  ;;  %v377_v0 = vld [vmem:[%s2866_s25 + $0x304] sm:$0xff]  ;;  %s4050_s26 = smov %s4076_s29 }
  0x79   : >> { %358 = vst [vmem:[%s2862_s23 + $0x40] sm:$0xff] %v357_v54  ;;  %s3262_s9 = scalar_lea.vmem %s3024_s28, %s1912_s8   ;;  %s3265_s6 = scalar_lea.vmem %s3028_s4, %s1912_s8 [#allocation2]   ;;  %v379_v1 = vld [vmem:[%s2866_s25 + $0x30c] sm:$0xff]  ;;  %v383_v3 = vld [vmem:[%s2866_s25 + $0x3f8] sm:$0xff]  ;;  %v385_v4 = vld [vmem:[%s2866_s25 + $0x400] sm:$0xff] }
  0x7a   : >> { %360 = vst [vmem:[%s2862_s23 + $0x48] sm:$0xff] %v359_v55  ;;  %v381_v2 = vld [vmem:[%s2866_s25 + $0x3f0] sm:$0xff]  ;;  %v387_v5 = vld [vmem:[%s2866_s25 + $0x408] sm:$0xff]  ;;  %v393_v8 = vld [vmem:[%s2866_s25 + $0x4fc] sm:$0xff] }
  0x7b   : >> { %362 = vst [vmem:[%s2862_s23 + $0x50] sm:$0xff] %v361_v56  ;;  %v389_v6 = vld [vmem:[%s2866_s25 + $0x4ec] sm:$0xff]  ;;  %v391_v7 = vld [vmem:[%s2866_s25 + $0x4f4] sm:$0xff]  ;;  %v395_v9 = vld [vmem:[%s2866_s25 + $0x504] sm:$0xff] }
  0x7c   : >> { %364 = vst [vmem:[%s2862_s23 + $0x58] sm:$0xff] %v363_v57  ;;  %v397_v10 = vld [vmem:[%s2866_s25 + $0x5e8] sm:$0xff]  ;;  %v399_v11 = vld [vmem:[%s2866_s25 + $0x5f0] sm:$0xff]  ;;  %v401_v12 = vld [vmem:[%s2866_s25 + $0x5f8] sm:$0xff] }
  0x7d   : >> { %366 = vst [vmem:[%s2862_s23 + $0x80] sm:$0xff] %v365_v58  ;;  %v403_v13 = vld [vmem:[%s2866_s25 + $0x600] sm:$0xff]  ;;  %v407_v15 = vld [vmem:[%s2866_s25 + $0x6ec] sm:$0xff]  ;;  %v409_v16 = vld [vmem:[%s2866_s25 + $0x6f4] sm:$0xff] }
  0x7e   : >> { %368 = vst [vmem:[%s2862_s23 + $0x88] sm:$0xff] %v367_v59  ;;  %v405_v14 = vld [vmem:[%s2866_s25 + $0x6e4] sm:$0xff]  ;;  %v411_v17 = vld [vmem:[%s2866_s25 + $0x6fc] sm:$0xff]  ;;  %v417_v20 = vld [vmem:[%s2866_s25 + $0x7f0] sm:$0xff] }
  0x7f   : >> { %370 = vst [vmem:[%s2862_s23 + $0x90] sm:$0xff] %v369_v60  ;;  %v413_v18 = vld [vmem:[%s2866_s25 + $0x7e0] sm:$0xff]  ;;  %v415_v19 = vld [vmem:[%s2866_s25 + $0x7e8] sm:$0xff]  ;;  %v419_v21 = vld [vmem:[%s2866_s25 + $0x7f8] sm:$0xff] }
  0x80   : >> { %372 = vst [vmem:[%s2862_s23 + $0x98] sm:$0xff] %v371_v61  ;;  %v421_v22 = vld [vmem:[%s2866_s25 + $0x8dc] sm:$0xff]  ;;  %v423_v23 = vld [vmem:[%s2866_s25 + $0x8e4] sm:$0xff]  ;;  %v425_v24 = vld [vmem:[%s2866_s25 + $0x8ec] sm:$0xff] }
  0x81   : >> { %374 = vst [vmem:[%s2862_s23 + $0xc0] sm:$0xff] %v373_v62  ;;  %v427_v25 = vld [vmem:[%s2866_s25 + $0x8f4] sm:$0xff]  ;;  %s4049_s25 = smov %s3262_s9 }
  0x82   : >> { %376 = vst [vmem:[%s2862_s23 + $0xc8] sm:$0xff] %v375_v63 }
  0x83   : >> { %378 = vst [vmem:[%s2862_s23 + $0xd0] sm:$0xff] %v377_v0 }
  0x84   : >> { %380 = vst [vmem:[%s2862_s23 + $0xd8] sm:$0xff] %v379_v1 }
  0x85   : >> { %382 = vst [vmem:[%s2862_s23 + $0x100] sm:$0xff] %v381_v2 }
  0x86   : >> { %384 = vst [vmem:[%s2862_s23 + $0x108] sm:$0xff] %v383_v3 }
  0x87   : >> { %386 = vst [vmem:[%s2862_s23 + $0x110] sm:$0xff] %v385_v4 }
  0x88   : >> { %388 = vst [vmem:[%s2862_s23 + $0x118] sm:$0xff] %v387_v5 }
  0x89   : >> { %390 = vst [vmem:[%s2862_s23 + $0x140] sm:$0xff] %v389_v6 }
  0x8a   : >> { %392 = vst [vmem:[%s2862_s23 + $0x148] sm:$0xff] %v391_v7 }
  0x8b   : >> { %394 = vst [vmem:[%s2862_s23 + $0x150] sm:$0xff] %v393_v8 }
  0x8c   : >> { %396 = vst [vmem:[%s2862_s23 + $0x158] sm:$0xff] %v395_v9 }
  0x8d   : >> { %398 = vst [vmem:[%s2862_s23 + $0x180] sm:$0xff] %v397_v10 }
  0x8e   : >> { %400 = vst [vmem:[%s2862_s23 + $0x188] sm:$0xff] %v399_v11 }
  0x8f   : >> { %402 = vst [vmem:[%s2862_s23 + $0x190] sm:$0xff] %v401_v12 }
  0x90   : >> { %404 = vst [vmem:[%s2862_s23 + $0x198] sm:$0xff] %v403_v13 }
  0x91   : >> { %406 = vst [vmem:[%s2862_s23 + $0x1c0] sm:$0xff] %v405_v14 }
  0x92   : >> { %408 = vst [vmem:[%s2862_s23 + $0x1c8] sm:$0xff] %v407_v15 }
  0x93   : >> { %410 = vst [vmem:[%s2862_s23 + $0x1d0] sm:$0xff] %v409_v16 }
  0x94   : >> { %412 = vst [vmem:[%s2862_s23 + $0x1d8] sm:$0xff] %v411_v17 }
  0x95   : >> { %414 = vst [vmem:[%s2862_s23 + $0x200] sm:$0xff] %v413_v18 }
  0x96   : >> { %416 = vst [vmem:[%s2862_s23 + $0x208] sm:$0xff] %v415_v19 }
  0x97   : >> { %418 = vst [vmem:[%s2862_s23 + $0x210] sm:$0xff] %v417_v20 }
  0x98   : >> { %420 = vst [vmem:[%s2862_s23 + $0x218] sm:$0xff] %v419_v21  ;;  %345 = sbr.rel (!%p342_p7) target bundleno = 116 (0x74), region = 257 }
  0x99   : >> { %422 = vst [vmem:[%s2862_s23 + $0x240] sm:$0xff] %v421_v22 }
  0x9a   : >> { %424 = vst [vmem:[%s2862_s23 + $0x248] sm:$0xff] %v423_v23 }
  0x9b   : >> { %426 = vst [vmem:[%s2862_s23 + $0x250] sm:$0xff] %v425_v24 }
  0x9c   : >> { %428 = vst [vmem:[%s2862_s23 + $0x258] sm:$0xff] %v427_v25  ;;  %s4048_s23 = smov %s3265_s6 }
  0x9d PF: > { %s3347_s7 = sand.u32 3, %s338_s18   ;;  %s2299_s10 = sshll.u32 %s3219_s24, 5 }
  0x9e   : > { %s3351_s11 = scalar_lea.vmem %s3024_s28, %s2299_s10   ;;  %s3354_s17 = scalar_lea.vmem %s3028_s4, %s2299_s10 [#allocation2]  }
  0x9f   : > { %p1917_p8 = scmp.le.s32.totalorder %s3347_s7, 0 }
  0xa0   : > { %s4051_s27 = smov (!%p1917_p8), %s3354_s17  ;;  %s4052_s23 = smov (!%p1917_p8), %s3351_s11 }
  0xa1   : > { %1807 = sbr.rel (%p1917_p8) target bundleno = 177 (0xb1), region = 262  ;;  %s3363_s25 = smov (!%p1917_p8), 0  }
  0xa2   : > { %s3365_s26 = smov (!%p1917_p8), 0  }
  0xa6 LB: >> { %v452_v26 = vld [vmem:[%s2882_s23] sm:$0xff]  ;;  %v456_v28 = vld [vmem:[%s2882_s23 + $0x1f8] sm:$0xff]  ;;  %s472_s18 = sadd.s32 1, %s2886_s25  ;;  %v460_v30 = vld [vmem:[%s2882_s23 + $0x3f0] sm:$0xff]  ;;  %s446_s26 = sadd.s32 1, %s2890_s26   ;;  %s2890_s26 = sphi %s3365_s26, %s446_s26   ;;  %s2886_s25 = sphi %s3363_s25, %s4055_s25   ;;  %s2882_s23 = sphi %s4052_s23, %s4054_s23   ;;  %s2878_s27 = sphi %s4051_s27, %s4053_s27  }
  0xa7   : >> { %v454_v27 = vld [vmem:[%s2882_s23 + $0xfc] sm:$0xff]  ;;  %453 = vst [vmem:[%s2878_s27] sm:$0xff] %v452_v26  ;;  %v458_v29 = vld [vmem:[%s2882_s23 + $0x2f4] sm:$0xff]  ;;  %p473_p9 = scmp.ge.s32.totalorder %s472_s18, %s3347_s7  ;;  %v462_v31 = vld [vmem:[%s2882_s23 + $0x4ec] sm:$0xff]  ;;  %p445_p10 = scmp.ge.s32.totalorder %s446_s26, %s3347_s7 }
  0xa8   : >> { %455 = vst [vmem:[%s2878_s27 + $0x40] sm:$0xff] %v454_v27  ;;  %v464_v32 = vld [vmem:[%s2882_s23 + $0x5e8] sm:$0xff]  ;;  %v468_v34 = vld [vmem:[%s2882_s23 + $0x7e0] sm:$0xff] }
  0xa9   : >> { %457 = vst [vmem:[%s2878_s27 + $0x80] sm:$0xff] %v456_v28  ;;  %s4078_s18 = smov (%p473_p9, %s472_s18), 0  ;;  %v466_v33 = vld [vmem:[%s2882_s23 + $0x6e4] sm:$0xff]  ;;  %v470_v35 = vld [vmem:[%s2882_s23 + $0x8dc] sm:$0xff] }
  0xaa   : >> { %459 = vst [vmem:[%s2878_s27 + $0xc0] sm:$0xff] %v458_v29  ;;  %s1918_s24 = sshll.u32 %s4078_s18, 3  ;;  %s4055_s25 = smov %s4078_s18 }
  0xab   : >> { %461 = vst [vmem:[%s2878_s27 + $0x100] sm:$0xff] %v460_v30  ;;  %s477_s29 = scalar_lea.vmem %s3351_s11, %s1918_s24   ;;  %s478_s8 = scalar_lea.vmem %s3354_s17, %s1918_s24 [#allocation2]  }
  0xac   : >> { %463 = vst [vmem:[%s2878_s27 + $0x140] sm:$0xff] %v462_v31  ;;  %s4054_s23 = smov %s477_s29  ;;  %448 = sbr.rel (!%p445_p10) target bundleno = 166 (0xa6), region = 268 }
  0xad   : >> { %465 = vst [vmem:[%s2878_s27 + $0x180] sm:$0xff] %v464_v32 }
  0xae   : >> { %467 = vst [vmem:[%s2878_s27 + $0x1c0] sm:$0xff] %v466_v33 }
  0xaf   : >> { %469 = vst [vmem:[%s2878_s27 + $0x200] sm:$0xff] %v468_v34 }
  0xb0   : >> { %471 = vst [vmem:[%s2878_s27 + $0x240] sm:$0xff] %v470_v35  ;;  %s4053_s27 = smov %s478_s8 }
  0xb1 PF: > { %s2956_s9 = smov 1  }
  0xb2   : > { %s479_s6 = sshll.u32 %s2956_s9, %s3032_s5 }
  0xb3   : > { %s1920_s10 = sadd.s32 4294967295, %s479_s6 }
  0xb4   : > { %v489_v36 = vld [vmem:[%s3212_s21] sm:%s1920_s10]  ;;  %v493_v38 = vld [vmem:[%s3212_s21 + $0x1f8] sm:%s1920_s10] }
  0xb5   : > { %v491_v37 = vld [vmem:[%s3212_s21 + $0xfc] sm:%s1920_s10]  ;;  %490 = vst [vmem:[%s3215_s22] sm:%s1920_s10] %v489_v36 }
  0xb6   : > { %492 = vst [vmem:[%s3215_s22 + $0x40] sm:%s1920_s10] %v491_v37  ;;  %v495_v39 = vld [vmem:[%s3212_s21 + $0x2f4] sm:%s1920_s10] }
  0xb7   : > { %494 = vst [vmem:[%s3215_s22 + $0x80] sm:%s1920_s10] %v493_v38  ;;  %v497_v40 = vld [vmem:[%s3212_s21 + $0x3f0] sm:%s1920_s10] }
  0xb8   : > { %496 = vst [vmem:[%s3215_s22 + $0xc0] sm:%s1920_s10] %v495_v39  ;;  %v499_v41 = vld [vmem:[%s3212_s21 + $0x4ec] sm:%s1920_s10] }
  0xb9   : > { %498 = vst [vmem:[%s3215_s22 + $0x100] sm:%s1920_s10] %v497_v40  ;;  %v501_v42 = vld [vmem:[%s3212_s21 + $0x5e8] sm:%s1920_s10] }
  0xba   : > { %500 = vst [vmem:[%s3215_s22 + $0x140] sm:%s1920_s10] %v499_v41  ;;  %v503_v43 = vld [vmem:[%s3212_s21 + $0x6e4] sm:%s1920_s10] }
  0xbb   : > { %502 = vst [vmem:[%s3215_s22 + $0x180] sm:%s1920_s10] %v501_v42  ;;  %v505_v44 = vld [vmem:[%s3212_s21 + $0x7e0] sm:%s1920_s10] }
  0xbc   : > { %504 = vst [vmem:[%s3215_s22 + $0x1c0] sm:%s1920_s10] %v503_v43  ;;  %v507_v45 = vld [vmem:[%s3212_s21 + $0x8dc] sm:%s1920_s10] }
  0xbd   : > { %506 = vst [vmem:[%s3215_s22 + $0x200] sm:%s1920_s10] %v505_v44 }
  0xbe   : > { %508 = vst [vmem:[%s3215_s22 + $0x240] sm:%s1920_s10] %v507_v45 }
  0xbf PF: > { %p1921_p11 = scmp.ge.u32.totalorder %s3026_s30, 8 }
  0xc0   : > { %s2957_s5 = smov (!%p1921_p11), 1  }
  0xc1   : > { %153 = sbr.rel (%p1921_p11) target bundleno = 209 (0xd1), region = 40  ;;  %s154_s21 = sshll.u32 (!%p1921_p11), %s2957_s5, %s3026_s30 }
  0xc2   : > { %s1922_s22 = sadd.s32 (!%p1921_p11), 4294967295, %s154_s21 }
  0xc6   : > { %v164_v46 = vld [vmem:[%s3024_s28] sm:%s1922_s22]  ;;  %v168_v48 = vld [vmem:[%s3024_s28 + $0x1f8] sm:%s1922_s22] }
  0xc7   : > { %v166_v47 = vld [vmem:[%s3024_s28 + $0xfc] sm:%s1922_s22]  ;;  %165 = vst [vmem:[%s3028_s4] sm:%s1922_s22] %v164_v46 }
  0xc8   : > { %167 = vst [vmem:[%s3028_s4 + $0x40] sm:%s1922_s22] %v166_v47  ;;  %v170_v49 = vld [vmem:[%s3024_s28 + $0x2f4] sm:%s1922_s22] }
  0xc9   : > { %169 = vst [vmem:[%s3028_s4 + $0x80] sm:%s1922_s22] %v168_v48  ;;  %v172_v50 = vld [vmem:[%s3024_s28 + $0x3f0] sm:%s1922_s22] }
  0xca   : > { %171 = vst [vmem:[%s3028_s4 + $0xc0] sm:%s1922_s22] %v170_v49  ;;  %v174_v51 = vld [vmem:[%s3024_s28 + $0x4ec] sm:%s1922_s22] }
  0xcb   : > { %173 = vst [vmem:[%s3028_s4 + $0x100] sm:%s1922_s22] %v172_v50  ;;  %v176_v52 = vld [vmem:[%s3024_s28 + $0x5e8] sm:%s1922_s22] }
  0xcc   : > { %175 = vst [vmem:[%s3028_s4 + $0x140] sm:%s1922_s22] %v174_v51  ;;  %v178_v53 = vld [vmem:[%s3024_s28 + $0x6e4] sm:%s1922_s22] }
  0xcd   : > { %177 = vst [vmem:[%s3028_s4 + $0x180] sm:%s1922_s22] %v176_v52  ;;  %v180_v54 = vld [vmem:[%s3024_s28 + $0x7e0] sm:%s1922_s22] }
  0xce   : > { %179 = vst [vmem:[%s3028_s4 + $0x1c0] sm:%s1922_s22] %v178_v53  ;;  %v182_v55 = vld [vmem:[%s3024_s28 + $0x8dc] sm:%s1922_s22] }
  0xcf   : > { %181 = vst [vmem:[%s3028_s4 + $0x200] sm:%s1922_s22] %v180_v54 }
  0xd0   : > { %183 = vst [vmem:[%s3028_s4 + $0x240] sm:%s1922_s22] %v182_v55 }
  0xd1 PF: > { %p1923_p12 = scmp.ge.s32.totalorder %s2826_s14, 1  ;;  %p511_p13 = scmp.lt.s32.totalorder %s2826_s14, 5 }
  0xd3   : > { %p512_p0 = pnand %p1923_p12, %p511_p13 }
  0xd4   : > { %s518_s30 = sand.u32 (!%p512_p0), 1, %s2818_s12  }
  0xd5   : > { %515 = sbr.rel (%p512_p0) target bundleno = 601 (0x259), region = 94  ;;  %s1924_s25 = sshll.u32 (!%p512_p0), %s518_s30, 8 }
  0xd6   : > { %s2388_s7 = smul.u32 (!%p512_p0), 640, %s518_s30  ;;  %s3663_s26 = scalar_lea.vmem (!%p512_p0), [#allocation3], %s1924_s25  }
  0xd8   : > { %s3436_s28 = scalar_lea.vmem (!%p512_p0), [#allocation2], %s2388_s7 }
  0xda   : > { %vm1038_vm0 = vcmask 1044480   ;;  %vm1039_vm1 = vcmask 1045504   ;;  %v2958_v56 = vmov 65535   ;;  %v2187_v59 = vld [vmem:[%s3436_s28 + $0x200] sm:$0xf]  ;;  %vm1034_vm2 = vcmask 613376  }
  0xdb   : > { %v1040_v57 = vsel %vm1038_vm0, 4294967295, %v2958_v56  ;;  %v2374_v60 = vld [vmem:[%s3436_s28 + $0x23c] sm:$0x30]  ;;  %v2366_v61 = vld [vmem:[%s3436_s28 + $0x204] sm:$0xf]  ;;  %s2266_s12 = sshll.u32 (%p3013_p5), %s2998_s15, 4 }
  0xdc   : > { %v3434_v58 = vsel %vm1039_vm1, %v1040_v57, 0  ;;  %v2188_v62 = vor.u32 %v2374_v60, %v2187_v59  ;;  %v2189_v63 = vld [vmem:[%s3436_s28 + $0x240] sm:$0x30]  ;;  %v2195_v0 = vld [vmem:[%s3436_s28 + $0x208] sm:$0xf]  ;;  %s2382_s18 = sshll.u32 (%p3013_p5), %s2998_s15, 7 }
  0xdd   : > { %v2375_v1 = vld [vmem:[%s3436_s28 + $0x244] sm:$0x30]  ;;  %v2192_v2 = vor.u32 %v2366_v61, %v2189_v63  ;;  %v2367_v4 = vld [vmem:[%s3436_s28 + $0x20c] sm:$0xf]  ;;  %v2123_v6 = vld [vmem:[%s3436_s28 + $0x180] sm:$0xf]  ;;  %s3736_s9 = scalar_lea.vmem (%p3013_p5), %s4034_s3, %s2382_s18  }
  0xde   : > { %v2196_v3 = vor.u32 %v2375_v1, %v2195_v0  ;;  %v2197_v5 = vld [vmem:[%s3436_s28 + $0x248] sm:$0x30]  ;;  %v1043_v7 = vand.u32 %v2188_v62, %v3434_v58  ;;  %v2358_v9 = vld [vmem:[%s3436_s28 + $0x1bc] sm:$0xf0]  ;;  %v2350_v10 = vld [vmem:[%s3436_s28 + $0x184] sm:$0xf] }
  0xdf   : > { %v2200_v8 = vor.u32 %v2367_v4, %v2197_v5  ;;  %v2125_v11 = vld [vmem:[%s3436_s28 + $0x1c0] sm:$0xf0]  ;;  %v1046_v12 = vand.u32 %v2192_v2, %v3434_v58  ;;  %v2131_v14 = vld [vmem:[%s3436_s28 + $0x188] sm:$0xf]  ;;  %v2351_v16 = vld [vmem:[%s3436_s28 + $0x18c] sm:$0xf]  ;;  %v2124_v18 = vor.u32 %v2358_v9, %v2123_v6 }
  0xe0   : > { %v1049_v13 = vand.u32 %v2196_v3, %v3434_v58  ;;  %v2359_v15 = vld [vmem:[%s3436_s28 + $0x1c4] sm:$0xf0]  ;;  %1093 = vmatpush.bf16.msra.mxu0 %v1043_v7  ;;  %v2133_v19 = vld [vmem:[%s3436_s28 + $0x1c8] sm:$0xf0]  ;;  %v2128_v20 = vor.u32 %v2350_v10, %v2125_v11  ;;  %v2059_v22 = vld [vmem:[%s3436_s28 + $0x100] sm:$0xf] }
  0xe1   : > { %v1052_v17 = vand.u32 %v2200_v8, %v3434_v58  ;;  %1107 = vmatpush.bf16.msra.mxu1 %v1046_v12  ;;  %v2132_v21 = vor.u32 %v2359_v15, %v2131_v14  ;;  %v2342_v23 = vld [vmem:[%s3436_s28 + $0x13c] sm:$0xf0]  ;;  %v2334_v24 = vld [vmem:[%s3436_s28 + $0x104] sm:$0xf]  ;;  %v2136_v25 = vor.u32 %v2351_v16, %v2133_v19  ;;  %v2067_v27 = vld [vmem:[%s3436_s28 + $0x108] sm:$0xf] }
  0xe2   : > { %1121 = vmatpush.bf16.msra.mxu2 %v1049_v13  ;;  %v2061_v26 = vld [vmem:[%s3436_s28 + $0x140] sm:$0xf0]  ;;  %v2343_v28 = vld [vmem:[%s3436_s28 + $0x144] sm:$0xf0]  ;;  %v2335_v29 = vld [vmem:[%s3436_s28 + $0x10c] sm:$0xf]  ;;  %v2060_v31 = vor.u32 %v2342_v23, %v2059_v22 }
  0xe3   : > { %1135 = vmatpush.bf16.msra.mxu3 %v1052_v17  ;;  %v2069_v30 = vld [vmem:[%s3436_s28 + $0x148] sm:$0xf0]  ;;  %v1995_v32 = vld [vmem:[%s3436_s28 + $0x80] sm:$0xf]  ;;  %v2064_v33 = vor.u32 %v2334_v24, %v2061_v26  ;;  %v2068_v34 = vor.u32 %v2343_v28, %v2067_v27  ;;  %v2318_v36 = vld [vmem:[%s3436_s28 + $0x84] sm:$0xf] }
  0xe4   : > { %1094 = vmatpush.bf16.msra.mxu0 %v2124_v18  ;;  %v2326_v35 = vld [vmem:[%s3436_s28 + $0xbc] sm:$0xf0]  ;;  %v1997_v37 = vld [vmem:[%s3436_s28 + $0xc0] sm:$0xf0]  ;;  %v2072_v38 = vor.u32 %v2335_v29, %v2069_v30  ;;  %v2003_v39 = vld [vmem:[%s3436_s28 + $0x88] sm:$0xf] }
  0xe5   : > { %1108 = vmatpush.bf16.msra.mxu1 %v2128_v20  ;;  %v2327_v40 = vld [vmem:[%s3436_s28 + $0xc4] sm:$0xf0]  ;;  %v2319_v41 = vld [vmem:[%s3436_s28 + $0x8c] sm:$0xf]  ;;  %v1931_v43 = vld [vmem:[%s3436_s28] sm:$0xf]  ;;  %v1996_v45 = vor.u32 %v2326_v35, %v1995_v32  ;;  %v2000_v52 = vor.u32 %v2318_v36, %v1997_v37 }
  0xe6   : > { %1122 = vmatpush.bf16.msra.mxu2 %v2132_v21  ;;  %v2005_v42 = vld [vmem:[%s3436_s28 + $0xc8] sm:$0xf0]  ;;  %v2310_v44 = vld [vmem:[%s3436_s28 + $0x3c] sm:$0xf0]  ;;  %v2302_v46 = vld [vmem:[%s3436_s28 + $0x4] sm:$0xf]  ;;  %v2004_v53 = vor.u32 %v2327_v40, %v2003_v39 }
  0xe7   : > { %1136 = vmatpush.bf16.msra.mxu3 %v2136_v25  ;;  %v1933_v47 = vld [vmem:[%s3436_s28 + $0x40] sm:$0xf0]  ;;  %v1939_v48 = vld [vmem:[%s3436_s28 + $0x8] sm:$0xf]  ;;  %v2203_v50 = vld [vmem:[%s3436_s28 + $0x210] sm:$0xf]  ;;  %v2008_v57 = vor.u32 %v2319_v41, %v2005_v42  ;;  %v1932_v3 = vor.u32 %v2310_v44, %v1931_v43 }
  0xe8   : > { %1095 = vmatpush.bf16.msra.mxu0 %v2060_v31  ;;  %v2311_v49 = vld [vmem:[%s3436_s28 + $0x44] sm:$0xf0]  ;;  %v2376_v51 = vld [vmem:[%s3436_s28 + $0x24c] sm:$0x30]  ;;  %v2368_v54 = vld [vmem:[%s3436_s28 + $0x214] sm:$0xf]  ;;  %v1936_v5 = vor.u32 %v2302_v46, %v1933_v47 }
  0xe9   : > { %1109 = vmatpush.bf16.msra.mxu1 %v2064_v33  ;;  %v2205_v55 = vld [vmem:[%s3436_s28 + $0x250] sm:$0x30]  ;;  %v2211_v56 = vld [vmem:[%s3436_s28 + $0x218] sm:$0xf]  ;;  %v2204_v59 = vor.u32 %v2376_v51, %v2203_v50  ;;  %v2369_v61 = vld [vmem:[%s3436_s28 + $0x21c] sm:$0xf]  ;;  %v1940_v6 = vor.u32 %v2311_v49, %v1939_v48 }
  0xea   : > { %1123 = vmatpush.bf16.msra.mxu2 %v2068_v34  ;;  %v2377_v60 = vld [vmem:[%s3436_s28 + $0x254] sm:$0x30]  ;;  %v2213_v62 = vld [vmem:[%s3436_s28 + $0x258] sm:$0x30]  ;;  %v2303_v63 = vld [vmem:[%s3436_s28 + $0xc] sm:$0xf]  ;;  %v2208_v1 = vor.u32 %v2368_v54, %v2205_v55 }
  0xeb   : > { %1137 = vmatpush.bf16.msra.mxu3 %v2072_v38  ;;  %v1941_v0 = vld [vmem:[%s3436_s28 + $0x48] sm:$0xf0]  ;;  %v2212_v2 = vor.u32 %v2377_v60, %v2211_v56  ;;  %v2216_v4 = vor.u32 %v2369_v61, %v2213_v62  ;;  %v1055_v8 = vand.u32 %v2204_v59, %v3434_v58  ;;  %v3494_v9 = vld [vmem:[%s4031_s0] sm:$0xff]  ;;  %v2139_v12 = vld [vmem:[%s3436_s28 + $0x190] sm:$0xf]  ;;  %v2959_v46 = vmov 0  }
  0xec   : > { %1096 = vmatpush.bf16.msra.mxu0 %v1996_v45  ;;  %v1944_v7 = vor.u32 %v2303_v63, %v1941_v0  ;;  %v1058_v10 = vand.u32 %v2208_v1, %v3434_v58  ;;  %v2360_v13 = vld [vmem:[%s3436_s28 + $0x1cc] sm:$0xf0]  ;;  %v2352_v14 = vld [vmem:[%s3436_s28 + $0x194] sm:$0xf]  ;;  %v2147_v17 = vld [vmem:[%s3436_s28 + $0x198] sm:$0xf]  ;;  %2675 = vset.pattern.permute.xlu0 %v2959_v46 }
  0xed   : > { %1110 = vmatpush.bf16.msra.mxu1 %v2000_v52  ;;  %v1061_v11 = vand.u32 %v2212_v2, %v3434_v58  ;;  %v1064_v15 = vand.u32 %v2216_v4, %v3434_v58  ;;  %v2141_v16 = vld [vmem:[%s3436_s28 + $0x1d0] sm:$0xf0]  ;;  %v2361_v18 = vld [vmem:[%s3436_s28 + $0x1d4] sm:$0xf0]  ;;  %v2353_v19 = vld [vmem:[%s3436_s28 + $0x19c] sm:$0xf]  ;;  %v2140_v21 = vor.u32 %v2360_v13, %v2139_v12 }
  0xee   : > { %1124 = vmatpush.bf16.msra.mxu2 %v2004_v53  ;;  %v2149_v20 = vld [vmem:[%s3436_s28 + $0x1d8] sm:$0xf0]  ;;  %v2144_v22 = vor.u32 %v2352_v14, %v2141_v16  ;;  %v2148_v23 = vor.u32 %v2361_v18, %v2147_v17  ;;  %v2075_v24 = vld [vmem:[%s3436_s28 + $0x110] sm:$0xf]  ;;  %v2336_v26 = vld [vmem:[%s3436_s28 + $0x114] sm:$0xf] }
  0xef   : > { %1138 = vmatpush.bf16.msra.mxu3 %v2008_v57  ;;  %v2344_v25 = vld [vmem:[%s3436_s28 + $0x14c] sm:$0xf0]  ;;  %v2152_v27 = vor.u32 %v2353_v19, %v2149_v20  ;;  %v2077_v28 = vld [vmem:[%s3436_s28 + $0x150] sm:$0xf0]  ;;  %v2083_v29 = vld [vmem:[%s3436_s28 + $0x118] sm:$0xf] }
  0xf0   : > { %1097 = vmatpush.bf16.msra.mxu0 %v1932_v3  ;;  %v2345_v30 = vld [vmem:[%s3436_s28 + $0x154] sm:$0xf0]  ;;  %v2337_v31 = vld [vmem:[%s3436_s28 + $0x11c] sm:$0xf]  ;;  %v2076_v33 = vor.u32 %v2344_v25, %v2075_v24  ;;  %v2011_v34 = vld [vmem:[%s3436_s28 + $0x90] sm:$0xf]  ;;  %v2080_v37 = vor.u32 %v2336_v26, %v2077_v28 }
  0xf1   : > { %1111 = vmatpush.bf16.msra.mxu1 %v1936_v5  ;;  %v2085_v32 = vld [vmem:[%s3436_s28 + $0x158] sm:$0xf0]  ;;  %v2328_v35 = vld [vmem:[%s3436_s28 + $0xcc] sm:$0xf0]  ;;  %v633_v36 = vld [vmem:[%s4033_s2] sm:$0xff]  ;;  %v2084_v38 = vor.u32 %v2345_v30, %v2083_v29  ;;  %s1386_s24 = ssub.s32 (%p3013_p5), 63, %s2266_s12 }
  0xf2   : > { %1125 = vmatpush.bf16.msra.mxu2 %v1940_v6  ;;  %v2320_v39 = vld [vmem:[%s3436_s28 + $0x94] sm:$0xf]  ;;  %v2019_v41 = vld [vmem:[%s3436_s28 + $0x98] sm:$0xf]  ;;  %v2088_v42 = vor.u32 %v2337_v31, %v2085_v32  ;;  %v2321_v44 = vld [vmem:[%s3436_s28 + $0x9c] sm:$0xf]  ;;  %637 = vperm.xlu0 %2675, %v633_v36   ;;  %v2012_v52 = vor.u32 %v2328_v35, %v2011_v34 }
  0xf3   : > { %1139 = vmatpush.bf16.msra.mxu3 %v1944_v7  ;;  %2249 = vmatmul.msk.bf16.vlgmr.msra.gmra.mxu0 %vm1034_vm2, %v3494_v9  ;;  %v2013_v40 = vld [vmem:[%s3436_s28 + $0xd0] sm:$0xf0]  ;;  %v2329_v43 = vld [vmem:[%s3436_s28 + $0xd4] sm:$0xf0]  ;;  %v2021_v45 = vld [vmem:[%s3436_s28 + $0xd8] sm:$0xf0] }
  0xf4   : > { %1149 = vmatpush.bf16.msrb.mxu0 %v1055_v8  ;;  %2250 = vmatmul.msk.bf16.vlgmr.msra.gmra.mxu1 %vm1034_vm2, %v3494_v9  ;;  %v1947_v47 = vld [vmem:[%s3436_s28 + $0x10] sm:$0xf]  ;;  %v2219_v49 = vld [vmem:[%s3436_s28 + $0x220] sm:$0xf]  ;;  %v2370_v51 = vld [vmem:[%s3436_s28 + $0x224] sm:$0xf]  ;;  %v2016_v56 = vor.u32 %v2320_v39, %v2013_v40  ;;  %v2020_v57 = vor.u32 %v2329_v43, %v2019_v41  ;;  %v2024_v62 = vor.u32 %v2321_v44, %v2021_v45 }
  0xf5   : > { %1163 = vmatpush.bf16.msrb.mxu1 %v1058_v10  ;;  %2251 = vmatmul.msk.bf16.vlgmr.msra.gmra.mxu2 %vm1034_vm2, %v3494_v9  ;;  %v2312_v48 = vld [vmem:[%s3436_s28 + $0x4c] sm:$0xf0]  ;;  %v2378_v50 = vld [vmem:[%s3436_s28 + $0x25c] sm:$0x30]  ;;  %v2221_v53 = vld [vmem:[%s3436_s28 + $0x260] sm:$0x30] }
  0xf6   : > { %1177 = vmatpush.bf16.msrb.mxu2 %v1061_v11  ;;  %2252 = vmatmul.msk.bf16.vlgmr.msra.gmra.mxu3 %vm1034_vm2, %v3494_v9  ;;  %v2227_v54 = vld [vmem:[%s3436_s28 + $0x228] sm:$0xf]  ;;  %v2304_v59 = vld [vmem:[%s3436_s28 + $0x14] sm:$0xf]  ;;  %v2371_v60 = vld [vmem:[%s3436_s28 + $0x22c] sm:$0xf]  ;;  %v2220_v2 = vor.u32 %v2378_v50, %v2219_v49  ;;  %v2224_v5 = vor.u32 %v2370_v51, %v2221_v53  ;;  %v1948_v7 = vor.u32 %v2312_v48, %v1947_v47 }
  0xf7   : > { %1191 = vmatpush.bf16.msrb.mxu3 %v1064_v15  ;;  %v2379_v55 = vld [vmem:[%s3436_s28 + $0x264] sm:$0x30]  ;;  %v2229_v61 = vld [vmem:[%s3436_s28 + $0x268] sm:$0x30]  ;;  %v1949_v63 = vld [vmem:[%s3436_s28 + $0x50] sm:$0xf0] }
  0xf8   : > { %1150 = vmatpush.bf16.msrb.mxu0 %v2140_v21  ;;  %v1955_v0 = vld [vmem:[%s3436_s28 + $0x18] sm:$0xf]  ;;  %v2305_v3 = vld [vmem:[%s3436_s28 + $0x1c] sm:$0xf]  ;;  %v2228_v6 = vor.u32 %v2379_v55, %v2227_v54  ;;  %v2232_v8 = vor.u32 %v2371_v60, %v2229_v61  ;;  %v634_v10 = vld [vmem:[%s4033_s2 + $0x8] sm:$0xff]  ;;  %v1952_v11 = vor.u32 %v2304_v59, %v1949_v63  ;;  %v1067_v14 = vand.u32 %v2220_v2, %v3434_v58  ;;  %p1387_p1 = scmp.lt.s32.totalorder (%p3013_p5), %s1386_s24, 16 }
  0xf9   : > { %1164 = vmatpush.bf16.msrb.mxu1 %v2144_v22  ;;  %v2313_v1 = vld [vmem:[%s3436_s28 + $0x54] sm:$0xf0]  ;;  %v1957_v4 = vld [vmem:[%s3436_s28 + $0x58] sm:$0xf0]  ;;  %v1070_v15 = vand.u32 %v2224_v5, %v3434_v58  ;;  %v2155_v17 = vld [vmem:[%s3436_s28 + $0x1a0] sm:$0xf] }
  0xfa   : > { %1178 = vmatpush.bf16.msrb.mxu2 %v2148_v23  ;;  %v1956_v12 = vor.u32 %v2313_v1, %v1955_v0  ;;  %v1960_v13 = vor.u32 %v2305_v3, %v1957_v4  ;;  %v1073_v16 = vand.u32 %v2228_v6, %v3434_v58  ;;  %v2362_v18 = vld [vmem:[%s3436_s28 + $0x1dc] sm:$0xf0]  ;;  %v2354_v19 = vld [vmem:[%s3436_s28 + $0x1a4] sm:$0xf]  ;;  %642 = vperm.xlu0 %2675, %v634_v10   ;;  %v2163_v22 = vld [vmem:[%s3436_s28 + $0x1a8] sm:$0xf] }
  0xfb   : > { %1192 = vmatpush.bf16.msrb.mxu3 %v2152_v27  ;;  %v1076_v20 = vand.u32 %v2232_v8, %v3434_v58  ;;  %v2157_v21 = vld [vmem:[%s3436_s28 + $0x1e0] sm:$0xf0]  ;;  %v2363_v23 = vld [vmem:[%s3436_s28 + $0x1e4] sm:$0xf0]  ;;  %v2355_v24 = vld [vmem:[%s3436_s28 + $0x1ac] sm:$0xf]  ;;  %v2156_v26 = vor.u32 %v2362_v18, %v2155_v17 }
  0xfc   : > { %1151 = vmatpush.bf16.msrb.mxu0 %v2076_v33  ;;  %v2165_v25 = vld [vmem:[%s3436_s28 + $0x1e8] sm:$0xf0]  ;;  %v2160_v27 = vor.u32 %v2354_v19, %v2157_v21  ;;  %v2164_v28 = vor.u32 %v2363_v23, %v2163_v22  ;;  %v2091_v29 = vld [vmem:[%s3436_s28 + $0x120] sm:$0xf]  ;;  %v2338_v31 = vld [vmem:[%s3436_s28 + $0x124] sm:$0xf] }
  0xfd   : > { %1165 = vmatpush.bf16.msrb.mxu1 %v2080_v37  ;;  %v2346_v30 = vld [vmem:[%s3436_s28 + $0x15c] sm:$0xf0]  ;;  %v2168_v32 = vor.u32 %v2355_v24, %v2165_v25  ;;  %v2093_v33 = vld [vmem:[%s3436_s28 + $0x160] sm:$0xf0]  ;;  %v2099_v34 = vld [vmem:[%s3436_s28 + $0x128] sm:$0xf] }
  0xfe   : > { %1179 = vmatpush.bf16.msrb.mxu2 %v2084_v38  ;;  %v2347_v35 = vld [vmem:[%s3436_s28 + $0x164] sm:$0xf0]  ;;  %v2339_v36 = vld [vmem:[%s3436_s28 + $0x12c] sm:$0xf]  ;;  %v2092_v38 = vor.u32 %v2346_v30, %v2091_v29  ;;  %v2027_v39 = vld [vmem:[%s3436_s28 + $0xa0] sm:$0xf]  ;;  %v2096_v41 = vor.u32 %v2338_v31, %v2093_v33 }
  0xff   : > { %1193 = vmatpush.bf16.msrb.mxu3 %v2088_v42  ;;  %v2101_v37 = vld [vmem:[%s3436_s28 + $0x168] sm:$0xf0]  ;;  %v2330_v40 = vld [vmem:[%s3436_s28 + $0xdc] sm:$0xf0]  ;;  %v2100_v42 = vor.u32 %v2347_v35, %v2099_v34  ;;  %v2322_v43 = vld [vmem:[%s3436_s28 + $0xa4] sm:$0xf] }
 0x100   : > { %1152 = vmatpush.bf16.msrb.mxu0 %v2012_v52  ;;  %v2029_v44 = vld [vmem:[%s3436_s28 + $0xe0] sm:$0xf0]  ;;  %v2035_v45 = vld [vmem:[%s3436_s28 + $0xa8] sm:$0xf]  ;;  %v2104_v46 = vor.u32 %v2339_v36, %v2101_v37  ;;  %v2323_v48 = vld [vmem:[%s3436_s28 + $0xac] sm:$0xf]  ;;  %v2028_v55 = vor.u32 %v2330_v40, %v2027_v39 }
 0x101   : > { %1166 = vmatpush.bf16.msrb.mxu1 %v2016_v56  ;;  %v2331_v47 = vld [vmem:[%s3436_s28 + $0xe4] sm:$0xf0]  ;;  %v2037_v49 = vld [vmem:[%s3436_s28 + $0xe8] sm:$0xf0]  ;;  %v1963_v50 = vld [vmem:[%s3436_s28 + $0x20] sm:$0xf]  ;;  %v2032_v60 = vor.u32 %v2322_v43, %v2029_v44 }
 0x102   : > { %1180 = vmatpush.bf16.msrb.mxu2 %v2020_v57  ;;  %v2314_v51 = vld [vmem:[%s3436_s28 + $0x5c] sm:$0xf0]  ;;  %v2235_v52 = vld [vmem:[%s3436_s28 + $0x230] sm:$0xf]  ;;  %v2372_v54 = vld [vmem:[%s3436_s28 + $0x234] sm:$0xf]  ;;  %v2036_v61 = vor.u32 %v2331_v47, %v2035_v45  ;;  %v2040_v1 = vor.u32 %v2323_v48, %v2037_v49 }
 0x103   : > { %1194 = vmatpush.bf16.msrb.mxu3 %v2024_v62  ;;  %v2380_v53 = vld [vmem:[%s3436_s28 + $0x26c] sm:$0x30]  ;;  %v2237_v56 = vld [vmem:[%s3436_s28 + $0x270] sm:$0x30]  ;;  %v2243_v57 = vld [vmem:[%s3436_s28 + $0x238] sm:$0xf] }
 0x104   : > { %1153 = vmatpush.bf16.msrb.mxu0 %v1948_v7  ;;  %v2381_v59 = vld [vmem:[%s3436_s28 + $0x274] sm:$0x30]  ;;  %v2306_v62 = vld [vmem:[%s3436_s28 + $0x24] sm:$0xf]  ;;  %v2373_v63 = vld [vmem:[%s3436_s28 + $0x23c] sm:$0xf]  ;;  %v2236_v5 = vor.u32 %v2380_v53, %v2235_v52  ;;  %v2240_v8 = vor.u32 %v2372_v54, %v2237_v56 }
 0x105   : > { %1167 = vmatpush.bf16.msrb.mxu1 %v1952_v11  ;;  %v2245_v0 = vld [vmem:[%s3436_s28 + $0x278] sm:$0x30]  ;;  %v1965_v2 = vld [vmem:[%s3436_s28 + $0x60] sm:$0xf0]  ;;  %v1971_v3 = vld [vmem:[%s3436_s28 + $0x28] sm:$0xf]  ;;  %v2244_v10 = vor.u32 %v2381_v59, %v2243_v57  ;;  %v1964_v11 = vor.u32 %v2314_v51, %v1963_v50 }
 0x106   : > { %1181 = vmatpush.bf16.msrb.mxu2 %v1956_v12  ;;  %v2315_v4 = vld [vmem:[%s3436_s28 + $0x64] sm:$0xf0]  ;;  %v2307_v6 = vld [vmem:[%s3436_s28 + $0x2c] sm:$0xf]  ;;  %v2248_v12 = vor.u32 %v2373_v63, %v2245_v0  ;;  %v1082_v17 = vand.u32 %v2240_v8, %v3434_v58  ;;  %v2171_v19 = vld [vmem:[%s3436_s28 + $0x1b0] sm:$0xf] }
 0x107   : > { %1195 = vmatpush.bf16.msrb.mxu3 %v1960_v13  ;;  %2253 = vmatmul.msk.bf16.vlgmr.msrb.gmra.mxu0 %vm1034_vm2, %v3494_v9  ;;  %v1973_v7 = vld [vmem:[%s3436_s28 + $0x68] sm:$0xf0]  ;;  %v1968_v13 = vor.u32 %v2306_v62, %v1965_v2  ;;  %v1085_v18 = vand.u32 %v2244_v10, %v3434_v58  ;;  %v2356_v21 = vld [vmem:[%s3436_s28 + $0x1b4] sm:$0xf]  ;;  %v2179_v24 = vld [vmem:[%s3436_s28 + $0x1b8] sm:$0xf] }
 0x108   : > { %1205 = vmatpush.bf16.msra.mxu0 %v1067_v14  ;;  %2254 = vmatmul.msk.bf16.vlgmr.msrb.gmra.mxu1 %vm1034_vm2, %v3494_v9  ;;  %v1972_v14 = vor.u32 %v2315_v4, %v1971_v3  ;;  %v1088_v22 = vand.u32 %v2248_v12, %v3434_v58  ;;  %v2173_v23 = vld [vmem:[%s3436_s28 + $0x1f0] sm:$0xf0]  ;;  %v2365_v25 = vld [vmem:[%s3436_s28 + $0x1f4] sm:$0xf0]  ;;  %v2107_v30 = vld [vmem:[%s3436_s28 + $0x130] sm:$0xf] }
 0x109   : > { %1219 = vmatpush.bf16.msra.mxu1 %v1070_v15  ;;  %2255 = vmatmul.msk.bf16.vlgmr.msrb.gmra.mxu2 %vm1034_vm2, %v3494_v9  ;;  %v1976_v15 = vor.u32 %v2307_v6, %v1973_v7  ;;  %v2180_v29 = vor.u32 %v2365_v25, %v2179_v24  ;;  %v2348_v31 = vld [vmem:[%s3436_s28 + $0x16c] sm:$0xf0]  ;;  %v2109_v34 = vld [vmem:[%s3436_s28 + $0x170] sm:$0xf0]  ;;  %v2115_v35 = vld [vmem:[%s3436_s28 + $0x138] sm:$0xf] }
 0x10a   : > { %1233 = vmatpush.bf16.msra.mxu2 %v1073_v16  ;;  %2256 = vmatmul.msk.bf16.vlgmr.msrb.gmra.mxu3 %vm1034_vm2, %v3494_v9  ;;  %v1079_v16 = vand.u32 %v2236_v5, %v3434_v58  ;;  %v2176_v58 = vor.u32 %v2356_v21, %v2173_v23  ;;  %v2349_v36 = vld [vmem:[%s3436_s28 + $0x174] sm:$0xf0]  ;;  %v2341_v37 = vld [vmem:[%s3436_s28 + $0x13c] sm:$0xf]  ;;  %v2108_v39 = vor.u32 %v2348_v31, %v2107_v30  ;;  %v2332_v43 = vld [vmem:[%s3436_s28 + $0xec] sm:$0xf0] }
 0x10b   : > { %1247 = vmatpush.bf16.msra.mxu3 %v1076_v20  ;;  %v2364_v20 = vld [vmem:[%s3436_s28 + $0x1ec] sm:$0xf0]  ;;  %v2324_v44 = vld [vmem:[%s3436_s28 + $0xb4] sm:$0xf]  ;;  %v2051_v47 = vld [vmem:[%s3436_s28 + $0xb8] sm:$0xf] }
 0x10c   : > { %1206 = vmatpush.bf16.msra.mxu0 %v2156_v26  ;;  %v2357_v26 = vld [vmem:[%s3436_s28 + $0x1bc] sm:$0xf]  ;;  %v2333_v48 = vld [vmem:[%s3436_s28 + $0xf4] sm:$0xf0]  ;;  %v1979_v54 = vld [vmem:[%s3436_s28 + $0x30] sm:$0xf] }
 0x10d   : > { %1220 = vmatpush.bf16.msra.mxu1 %v2160_v27  ;;  %v2181_v27 = vld [vmem:[%s3436_s28 + $0x1f8] sm:$0xf0]  ;;  %v2052_v53 = vor.u32 %v2333_v48, %v2051_v47  ;;  %v2308_v56 = vld [vmem:[%s3436_s28 + $0x34] sm:$0xf] }
 0x10e   : > { %1234 = vmatpush.bf16.msra.mxu2 %v2164_v28  ;;  %v2172_v28 = vor.u32 %v2364_v20, %v2171_v19  ;;  %v2184_v33 = vor.u32 %v2357_v26, %v2181_v27  ;;  %v2325_v49 = vld [vmem:[%s3436_s28 + $0xbc] sm:$0xf]  ;;  %v1981_v59 = vld [vmem:[%s3436_s28 + $0x70] sm:$0xf0] }
 0x10f   : > { %1248 = vmatpush.bf16.msra.mxu3 %v2168_v32  ;;  %v2340_v32 = vld [vmem:[%s3436_s28 + $0x134] sm:$0xf]  ;;  %v2053_v50 = vld [vmem:[%s3436_s28 + $0xf8] sm:$0xf0] }
 0x110   : > { %1207 = vmatpush.bf16.msra.mxu0 %v2092_v38  ;;  %v2117_v38 = vld [vmem:[%s3436_s28 + $0x178] sm:$0xf0]  ;;  %v2112_v40 = vor.u32 %v2340_v32, %v2109_v34  ;;  %v2056_v57 = vor.u32 %v2325_v49, %v2053_v50 }
 0x111   : > { %1221 = vmatpush.bf16.msra.mxu1 %v2096_v41  ;;  %v2116_v41 = vor.u32 %v2349_v36, %v2115_v35  ;;  %v2120_v45 = vor.u32 %v2341_v37, %v2117_v38  ;;  %v2309_v62 = vld [vmem:[%s3436_s28 + $0x3c] sm:$0xf] }
 0x112   : > { %1235 = vmatpush.bf16.msra.mxu2 %v2100_v42  ;;  %v2043_v42 = vld [vmem:[%s3436_s28 + $0xb0] sm:$0xf]  ;;  %v1989_v63 = vld [vmem:[%s3436_s28 + $0x78] sm:$0xf0] }
 0x113   : > { %1249 = vmatpush.bf16.msra.mxu3 %v2104_v46  ;;  %v2045_v46 = vld [vmem:[%s3436_s28 + $0xf0] sm:$0xf0]  ;;  %v2044_v51 = vor.u32 %v2332_v43, %v2043_v42  ;;  %v1992_v3 = vor.u32 %v2309_v62, %v1989_v63 }
 0x114   : > { %1208 = vmatpush.bf16.msra.mxu0 %v2028_v55  ;;  %v2048_v52 = vor.u32 %v2324_v44, %v2045_v46  ;;  %v2316_v55 = vld [vmem:[%s3436_s28 + $0x6c] sm:$0xf0] }
 0x115   : > { %1222 = vmatpush.bf16.msra.mxu1 %v2032_v60  ;;  %v1987_v60 = vld [vmem:[%s3436_s28 + $0x38] sm:$0xf]  ;;  %v1980_v0 = vor.u32 %v2316_v55, %v1979_v54 }
 0x116   : > { %1236 = vmatpush.bf16.msra.mxu2 %v2036_v61  ;;  %v2317_v61 = vld [vmem:[%s3436_s28 + $0x74] sm:$0xf0] }
 0x117   : > { %1250 = vmatpush.bf16.msra.mxu3 %v2040_v1  ;;  %v1984_v1 = vor.u32 %v2308_v56, %v1981_v59  ;;  %v1988_v2 = vor.u32 %v2317_v61, %v1987_v60 }
 0x118   : > { %1209 = vmatpush.bf16.msra.mxu0 %v1964_v11 }
 0x119   : > { %1223 = vmatpush.bf16.msra.mxu1 %v1968_v13 }
 0x11a   : > { %1237 = vmatpush.bf16.msra.mxu2 %v1972_v14 }
 0x11b   : > { %1251 = vmatpush.bf16.msra.mxu3 %v1976_v15  ;;  %2257 = vmatmul.msk.bf16.vlgmr.msra.gmra.mxu0 %vm1034_vm2, %v3494_v9 }
 0x11c   : > { %1261 = vmatpush.bf16.msrb.mxu0 %v1079_v16  ;;  %2258 = vmatmul.msk.bf16.vlgmr.msra.gmra.mxu1 %vm1034_vm2, %v3494_v9 }
 0x11d   : > { %1275 = vmatpush.bf16.msrb.mxu1 %v1082_v17  ;;  %2259 = vmatmul.msk.bf16.vlgmr.msra.gmra.mxu2 %vm1034_vm2, %v3494_v9 }
 0x11e   : > { %1289 = vmatpush.bf16.msrb.mxu2 %v1085_v18  ;;  %2260 = vmatmul.msk.bf16.vlgmr.msra.gmra.mxu3 %vm1034_vm2, %v3494_v9 }
 0x11f   : > { %1303 = vmatpush.bf16.msrb.mxu3 %v1088_v22 }
 0x120   : > { %1262 = vmatpush.bf16.msrb.mxu0 %v2172_v28 }
 0x121   : > { %1276 = vmatpush.bf16.msrb.mxu1 %v2176_v58 }
 0x122   : > { %1290 = vmatpush.bf16.msrb.mxu2 %v2180_v29 }
 0x123   : > { %1304 = vmatpush.bf16.msrb.mxu3 %v2184_v33 }
 0x124   : > { %1263 = vmatpush.bf16.msrb.mxu0 %v2108_v39 }
 0x125   : > { %1277 = vmatpush.bf16.msrb.mxu1 %v2112_v40 }
 0x126   : > { %1291 = vmatpush.bf16.msrb.mxu2 %v2116_v41 }
 0x127   : > { %1305 = vmatpush.bf16.msrb.mxu3 %v2120_v45 }
 0x128   : > { %1264 = vmatpush.bf16.msrb.mxu0 %v2044_v51 }
 0x129   : > { %1278 = vmatpush.bf16.msrb.mxu1 %v2048_v52 }
 0x12a   : > { %1292 = vmatpush.bf16.msrb.mxu2 %v2052_v53 }
 0x12b   : > { %1306 = vmatpush.bf16.msrb.mxu3 %v2056_v57 }
 0x12c   : > { %1265 = vmatpush.bf16.msrb.mxu0 %v1980_v0 }
 0x12d   : > { %1279 = vmatpush.bf16.msrb.mxu1 %v1984_v1 }
 0x12e   : > { %1293 = vmatpush.bf16.msrb.mxu2 %v1988_v2 }
 0x12f   : > { %1307 = vmatpush.bf16.msrb.mxu3 %v1992_v3  ;;  %2261 = vmatmul.msk.bf16.vlgmr.msrb.gmra.mxu0 %vm1034_vm2, %v3494_v9 }
 0x130   : > { %2262 = vmatmul.msk.bf16.vlgmr.msrb.gmra.mxu1 %vm1034_vm2, %v3494_v9 }
 0x131   : > { %2263 = vmatmul.msk.bf16.vlgmr.msrb.gmra.mxu2 %vm1034_vm2, %v3494_v9 }
 0x132   : > { %2264 = vmatmul.msk.bf16.vlgmr.msrb.gmra.mxu3 %vm1034_vm2, %v3494_v9 }
 0x164   : > { %v3657_v4 = vpop.permute.xlu0 %637 }
 0x16c   : > { %v3668_v14 = vpop.permute.xlu0 %642 }
 0x170   : > { %v1099_v5 = vpop.f32.mrf.mxu0 }
 0x171   : > { %v1100_v6 = vadd.f32 %v1099_v5, %v3657_v4  ;;  %v1113_v7 = vpop.f32.mrf.mxu1 }
 0x172   : > { %v1114_v8 = vadd.f32 %v1113_v7, %v3657_v4 }
 0x173   : > { %v1314_v10 = vmax.f32 %v1100_v6, 0.0 }
 0x174   : > { %v1315_v11 = vmax.f32 %v1114_v8, 0.0 }
 0x175   : > { %1346 = vst [vmem:[%s3663_s26] sm:$0xff] %v1314_v10 }
 0x176   : > { %1347 = vst [vmem:[%s3663_s26 + $0x8] sm:$0xff] %v1315_v11 }
 0x178   : > { %v1127_v9 = vpop.f32.mrf.mxu2  ;;  %v1101_v17 = vpop.f32.mrf.mxu0 }
 0x179   : > { %v1128_v12 = vadd.f32 %v1127_v9, %v3657_v4  ;;  %v1141_v13 = vpop.f32.mrf.mxu3  ;;  %v1102_v19 = vadd.f32 %v1101_v17, %v3668_v14  ;;  %v1115_v20 = vpop.f32.mrf.mxu1 }
 0x17a   : > { %v1142_v15 = vadd.f32 %v1141_v13, %v3657_v4  ;;  %v1116_v21 = vadd.f32 %v1115_v20, %v3668_v14 }
 0x17b   : > { %v1316_v16 = vmax.f32 %v1128_v12, 0.0  ;;  %v1330_v22 = vmax.f32 %v1102_v19, 0.0 }
 0x17c   : > { %v1317_v18 = vmax.f32 %v1142_v15, 0.0  ;;  %v1331_v23 = vmax.f32 %v1116_v21, 0.0 }
 0x17d   : > { %1348 = vst [vmem:[%s3663_s26 + $0x10] sm:$0xff] %v1316_v16 }
 0x17e   : > { %1349 = vst [vmem:[%s3663_s26 + $0x18] sm:$0xff] %v1317_v18 }
 0x17f   : > { %1362 = vst [vmem:[%s3663_s26 + $0x80] sm:$0xff] %v1330_v22 }
 0x180   : > { %v1129_v24 = vpop.f32.mrf.mxu2  ;;  %1363 = vst [vmem:[%s3663_s26 + $0x88] sm:$0xff] %v1331_v23 }
 0x181   : > { %v1130_v25 = vadd.f32 %v1129_v24, %v3668_v14  ;;  %v1143_v26 = vpop.f32.mrf.mxu3 }
 0x182   : > { %v1144_v27 = vadd.f32 %v1143_v26, %v3668_v14 }
 0x183   : > { %v1332_v28 = vmax.f32 %v1130_v25, 0.0 }
 0x184   : > { %v1333_v58 = vmax.f32 %v1144_v27, 0.0  ;;  %v1155_v29 = vpop.f32.mrf.mxu0 }
 0x185   : > { %1364 = vst [vmem:[%s3663_s26 + $0x90] sm:$0xff] %v1332_v28  ;;  %v1156_v30 = vadd.f32 %v1155_v29, %v3657_v4  ;;  %v1169_v31 = vpop.f32.mrf.mxu1 }
 0x186   : > { %1365 = vst [vmem:[%s3663_s26 + $0x98] sm:$0xff] %v1333_v58  ;;  %v1170_v32 = vadd.f32 %v1169_v31, %v3657_v4 }
 0x187   : > { %v1318_v33 = vmax.f32 %v1156_v30, 0.0 }
 0x188   : > { %v1319_v34 = vmax.f32 %v1170_v32, 0.0 }
 0x189   : > { %1350 = vst [vmem:[%s3663_s26 + $0x20] sm:$0xff] %v1318_v33 }
 0x18a   : > { %1351 = vst [vmem:[%s3663_s26 + $0x28] sm:$0xff] %v1319_v34 }
 0x18c   : > { %v1183_v35 = vpop.f32.mrf.mxu2  ;;  %v1157_v38 = vpop.f32.mrf.mxu0 }
 0x18d   : > { %v1184_v36 = vadd.f32 %v1183_v35, %v3657_v4  ;;  %v1197_v37 = vpop.f32.mrf.mxu3  ;;  %v1158_v40 = vadd.f32 %v1157_v38, %v3668_v14  ;;  %v1171_v41 = vpop.f32.mrf.mxu1 }
 0x18e   : > { %v1198_v39 = vadd.f32 %v1197_v37, %v3657_v4  ;;  %v1172_v43 = vadd.f32 %v1171_v41, %v3668_v14 }
 0x18f   : > { %v1320_v42 = vmax.f32 %v1184_v36, 0.0  ;;  %v1334_v45 = vmax.f32 %v1158_v40, 0.0 }
 0x190   : > { %v1321_v44 = vmax.f32 %v1198_v39, 0.0  ;;  %v1335_v46 = vmax.f32 %v1172_v43, 0.0 }
 0x191   : > { %1352 = vst [vmem:[%s3663_s26 + $0x30] sm:$0xff] %v1320_v42 }
 0x192   : > { %1353 = vst [vmem:[%s3663_s26 + $0x38] sm:$0xff] %v1321_v44 }
 0x193   : > { %1366 = vst [vmem:[%s3663_s26 + $0xa0] sm:$0xff] %v1334_v45 }
 0x194   : > { %1367 = vst [vmem:[%s3663_s26 + $0xa8] sm:$0xff] %v1335_v46  ;;  %v1185_v47 = vpop.f32.mrf.mxu2 }
 0x195   : > { %v1186_v48 = vadd.f32 %v1185_v47, %v3668_v14  ;;  %v1199_v49 = vpop.f32.mrf.mxu3 }
 0x196   : > { %v1200_v50 = vadd.f32 %v1199_v49, %v3668_v14 }
 0x197   : > { %v1336_v51 = vmax.f32 %v1186_v48, 0.0 }
 0x198   : > { %v1211_v52 = vpop.f32.mrf.mxu0  ;;  %v1337_v53 = vmax.f32 %v1200_v50, 0.0 }
 0x199   : > { %v1212_v54 = vadd.f32 %v1211_v52, %v3657_v4  ;;  %v1225_v55 = vpop.f32.mrf.mxu1  ;;  %1368 = vst [vmem:[%s3663_s26 + $0xb0] sm:$0xff] %v1336_v51 }
 0x19a   : > { %v1226_v56 = vadd.f32 %v1225_v55, %v3657_v4  ;;  %1369 = vst [vmem:[%s3663_s26 + $0xb8] sm:$0xff] %v1337_v53 }
 0x19b   : > { %v1322_v57 = vmax.f32 %v1212_v54, 0.0 }
 0x19c   : > { %v1323_v59 = vmax.f32 %v1226_v56, 0.0 }
 0x19d   : > { %1354 = vst [vmem:[%s3663_s26 + $0x40] sm:$0xff] %v1322_v57 }
 0x19e   : > { %1355 = vst [vmem:[%s3663_s26 + $0x48] sm:$0xff] %v1323_v59 }
 0x1a0   : > { %v1239_v60 = vpop.f32.mrf.mxu2  ;;  %v1213_v63 = vpop.f32.mrf.mxu0 }
 0x1a1   : > { %v1240_v61 = vadd.f32 %v1239_v60, %v3657_v4  ;;  %v1253_v62 = vpop.f32.mrf.mxu3  ;;  %v1214_v1 = vadd.f32 %v1213_v63, %v3668_v14  ;;  %v1227_v2 = vpop.f32.mrf.mxu1 }
 0x1a2   : > { %v1254_v0 = vadd.f32 %v1253_v62, %v3657_v4  ;;  %v1228_v5 = vadd.f32 %v1227_v2, %v3668_v14 }
 0x1a3   : > { %v1324_v3 = vmax.f32 %v1240_v61, 0.0  ;;  %v1338_v7 = vmax.f32 %v1214_v1, 0.0 }
 0x1a4   : > { %v1325_v6 = vmax.f32 %v1254_v0, 0.0  ;;  %v1339_v8 = vmax.f32 %v1228_v5, 0.0 }
 0x1a5   : > { %1356 = vst [vmem:[%s3663_s26 + $0x50] sm:$0xff] %v1324_v3 }
 0x1a6   : > { %1357 = vst [vmem:[%s3663_s26 + $0x58] sm:$0xff] %v1325_v6 }
 0x1a7   : > { %1370 = vst [vmem:[%s3663_s26 + $0xc0] sm:$0xff] %v1338_v7 }
 0x1a8   : > { %1371 = vst [vmem:[%s3663_s26 + $0xc8] sm:$0xff] %v1339_v8  ;;  %v1241_v10 = vpop.f32.mrf.mxu2 }
 0x1a9   : > { %v1242_v11 = vadd.f32 %v1241_v10, %v3668_v14  ;;  %v1255_v9 = vpop.f32.mrf.mxu3 }
 0x1aa   : > { %v1256_v12 = vadd.f32 %v1255_v9, %v3668_v14 }
 0x1ab   : > { %v1340_v15 = vmax.f32 %v1242_v11, 0.0 }
 0x1ac   : > { %v1267_v13 = vpop.f32.mrf.mxu0  ;;  %v1341_v18 = vmax.f32 %v1256_v12, 0.0 }
 0x1ad   : > { %v1268_v16 = vadd.f32 %v1267_v13, %v3657_v4  ;;  %v1281_v17 = vpop.f32.mrf.mxu1  ;;  %1372 = vst [vmem:[%s3663_s26 + $0xd0] sm:$0xff] %v1340_v15 }
 0x1ae   : > { %v1282_v19 = vadd.f32 %v1281_v17, %v3657_v4  ;;  %1373 = vst [vmem:[%s3663_s26 + $0xd8] sm:$0xff] %v1341_v18 }
 0x1af   : > { %v1326_v20 = vmax.f32 %v1268_v16, 0.0 }
 0x1b0   : > { %v1327_v21 = vmax.f32 %v1282_v19, 0.0 }
 0x1b1   : > { %1358 = vst [vmem:[%s3663_s26 + $0x60] sm:$0xff] %v1326_v20 }
 0x1b2   : > { %1359 = vst [vmem:[%s3663_s26 + $0x68] sm:$0xff] %v1327_v21 }
 0x1b4   : > { %v1295_v22 = vpop.f32.mrf.mxu2  ;;  %v1269_v25 = vpop.f32.mrf.mxu0 }
 0x1b5   : > { %v1296_v23 = vadd.f32 %v1295_v22, %v3657_v4  ;;  %v1309_v24 = vpop.f32.mrf.mxu3  ;;  %v1270_v27 = vadd.f32 %v1269_v25, %v3668_v14  ;;  %v1283_v28 = vpop.f32.mrf.mxu1 }
 0x1b6   : > { %v1310_v26 = vadd.f32 %v1309_v24, %v3657_v4  ;;  %v1284_v29 = vadd.f32 %v1283_v28, %v3668_v14 }
 0x1b7   : > { %v1328_v58 = vmax.f32 %v1296_v23, 0.0  ;;  %v1342_v31 = vmax.f32 %v1270_v27, 0.0 }
 0x1b8   : > { %v1329_v30 = vmax.f32 %v1310_v26, 0.0  ;;  %v1343_v32 = vmax.f32 %v1284_v29, 0.0 }
 0x1b9   : > { %1360 = vst [vmem:[%s3663_s26 + $0x70] sm:$0xff] %v1328_v58 }
 0x1ba   : > { %1361 = vst [vmem:[%s3663_s26 + $0x78] sm:$0xff] %v1329_v30 }
 0x1bb   : > { %1374 = vst [vmem:[%s3663_s26 + $0xe0] sm:$0xff] %v1342_v31 }
 0x1bc   : > { %1375 = vst [vmem:[%s3663_s26 + $0xe8] sm:$0xff] %v1343_v32  ;;  %v1297_v33 = vpop.f32.mrf.mxu2 }
 0x1bd   : > { %v1298_v34 = vadd.f32 %v1297_v33, %v3668_v14  ;;  %v1311_v35 = vpop.f32.mrf.mxu3 }
 0x1be   : > { %v1312_v4 = vadd.f32 %v1311_v35, %v3668_v14  ;;  %1384 = sbr.rel (!%p3013_p5) target bundleno = 601 (0x259), region = 102 }
 0x1bf   : > { %v1344_v36 = vmax.f32 %v1298_v34, 0.0 }
 0x1c0   : > { %v1345_v37 = vmax.f32 %v1312_v4, 0.0 }
 0x1c1   : > { %1376 = vst [vmem:[%s3663_s26 + $0xf0] sm:$0xff] %v1344_v36 }
 0x1c2   : > { %1377 = vst [vmem:[%s3663_s26 + $0xf8] sm:$0xff] %v1345_v37 }
 0x1c3   : > { %s4080_s24 = smov (!%p1387_p1, %s1386_s24), 16 }
 0x1c4   : > { %s2267_s6 = sshll.u32 %s4080_s24, 4  ;;  %s3738_s10 = sshll.u32 %s4080_s24, 3 }
 0x1c5   : > { %p2271_p2 = scmp.eq.s32.totalorder %s2267_s6, 0 }
 0x1c6   : > { %p1397_p3 = scmp.lt.u32.totalorder (!%p2271_p2), %s3738_s10, 8 }
 0x1c7   : > { %1396 = sbr.rel (%p2271_p2) target bundleno = 601 (0x259), region = 106 }
 0x1cc   : > { %1400 = sbr.rel (%p1397_p3) target bundleno = 591 (0x24f), region = 110  ;;  %s3742_s20 = sand.u32 (!%p1397_p3), 7, %s3738_s10  }
 0x1cd   : > { %p1419_p5 = scmp.eq.s32.totalorder (!%p1397_p3), %s3742_s20, 0  ;;  %p2272_p4 = scmp.ne.s32.totalorder (!%p1397_p3), %s3742_s20, 0 }
 0x1d1   : > { %1422 = sbr.rel (%p2272_p4) target bundleno = 525 (0x20d), region = 125  ;;  %s1423_s15 = sshrl.u32 (!%p2272_p4), %s3738_s10, 3 }
 0x1d2   : > { %s3749_s5 = sshrl.u32 (!%p2272_p4), %s1423_s15, 4 }
 0x1d3   : > { %p2273_p6 = scmp.le.s32.totalorder (!%p2272_p4), %s3749_s5, 0 }
 0x1d6   : > { %1821 = sbr.rel (%p2273_p6) target bundleno = 508 (0x1fc), region = 273  ;;  %s4056_s21 = smov (!%p2273_p6), %s3736_s9 }
 0x1d7   : > { %s4057_s22 = smov (!%p2273_p6), %s3663_s26  ;;  %s3758_s30 = smov (!%p2273_p6), 0  }
 0x1d8   : > { %s3760_s7 = smov (!%p2273_p6), 0  }
 0x1db LB: >> { %v1434_v14 = vld [vmem:[%s2898_s22] sm:$0xff]  ;;  %v1436_v38 = vld [vmem:[%s2898_s22 + $0x8] sm:$0xff]  ;;  %v1438_v39 = vld [vmem:[%s2898_s22 + $0x10] sm:$0xff]  ;;  %s1498_s28 = sadd.s32 1, %s2902_s30  ;;  %s1428_s7 = sadd.s32 1, %s2906_s7   ;;  %s2906_s7 = sphi %s3760_s7, %s1428_s7   ;;  %s2902_s30 = sphi %s3758_s30, %s4060_s30   ;;  %s2898_s22 = sphi %s4057_s22, %s4059_s22   ;;  %s2894_s21 = sphi %s4056_s21, %s4058_s21  }
 0x1dc   : >> { %1435 = vst [vmem:[%s2894_s21] sm:$0xff] %v1434_v14  ;;  %v1440_v40 = vld [vmem:[%s2898_s22 + $0x18] sm:$0xff]  ;;  %p1499_p7 = scmp.ge.s32.totalorder %s1498_s28, %s3749_s5  ;;  %v1442_v41 = vld [vmem:[%s2898_s22 + $0x20] sm:$0xff]  ;;  %v1444_v42 = vld [vmem:[%s2898_s22 + $0x28] sm:$0xff]  ;;  %p1427_p8 = scmp.ge.s32.totalorder %s1428_s7, %s3749_s5 }
 0x1dd   : >> { %1437 = vst [vmem:[%s2894_s21 + $0x8] sm:$0xff] %v1436_v38  ;;  %v1446_v43 = vld [vmem:[%s2898_s22 + $0x30] sm:$0xff]  ;;  %v1448_v44 = vld [vmem:[%s2898_s22 + $0x38] sm:$0xff]  ;;  %v1450_v45 = vld [vmem:[%s2898_s22 + $0x40] sm:$0xff] }
 0x1de   : >> { %1439 = vst [vmem:[%s2894_s21 + $0x10] sm:$0xff] %v1438_v39  ;;  %s4082_s28 = smov (%p1499_p7, %s1498_s28), 0  ;;  %v1452_v46 = vld [vmem:[%s2898_s22 + $0x48] sm:$0xff]  ;;  %v1454_v47 = vld [vmem:[%s2898_s22 + $0x50] sm:$0xff]  ;;  %v1456_v48 = vld [vmem:[%s2898_s22 + $0x58] sm:$0xff] }
 0x1df   : >> { %1441 = vst [vmem:[%s2894_s21 + $0x18] sm:$0xff] %v1440_v40  ;;  %s2274_s14 = sshll.u32 %s4082_s28, 7  ;;  %v1458_v49 = vld [vmem:[%s2898_s22 + $0x60] sm:$0xff]  ;;  %v1460_v50 = vld [vmem:[%s2898_s22 + $0x68] sm:$0xff]  ;;  %v1462_v51 = vld [vmem:[%s2898_s22 + $0x70] sm:$0xff]  ;;  %s4060_s30 = smov %s4082_s28 }
 0x1e0   : >> { %1443 = vst [vmem:[%s2894_s21 + $0x20] sm:$0xff] %v1442_v41  ;;  %s3792_s4 = scalar_lea.vmem %s3663_s26, %s2274_s14 [#allocation3]   ;;  %s3795_s11 = scalar_lea.vmem %s3736_s9, %s2274_s14   ;;  %v1464_v52 = vld [vmem:[%s2898_s22 + $0x78] sm:$0xff]  ;;  %v1466_v53 = vld [vmem:[%s2898_s22 + $0x80] sm:$0xff]  ;;  %v1468_v54 = vld [vmem:[%s2898_s22 + $0x88] sm:$0xff] }
 0x1e1   : >> { %1445 = vst [vmem:[%s2894_s21 + $0x28] sm:$0xff] %v1444_v42  ;;  %v1470_v55 = vld [vmem:[%s2898_s22 + $0x90] sm:$0xff]  ;;  %v1472_v56 = vld [vmem:[%s2898_s22 + $0x98] sm:$0xff]  ;;  %v1474_v57 = vld [vmem:[%s2898_s22 + $0xa0] sm:$0xff] }
 0x1e2   : >> { %1447 = vst [vmem:[%s2894_s21 + $0x30] sm:$0xff] %v1446_v43  ;;  %v1476_v59 = vld [vmem:[%s2898_s22 + $0xa8] sm:$0xff]  ;;  %v1478_v60 = vld [vmem:[%s2898_s22 + $0xb0] sm:$0xff]  ;;  %v1480_v61 = vld [vmem:[%s2898_s22 + $0xb8] sm:$0xff] }
 0x1e3   : >> { %1449 = vst [vmem:[%s2894_s21 + $0x38] sm:$0xff] %v1448_v44  ;;  %v1482_v62 = vld [vmem:[%s2898_s22 + $0xc0] sm:$0xff]  ;;  %v1484_v63 = vld [vmem:[%s2898_s22 + $0xc8] sm:$0xff]  ;;  %v1486_v0 = vld [vmem:[%s2898_s22 + $0xd0] sm:$0xff] }
 0x1e4   : >> { %1451 = vst [vmem:[%s2894_s21 + $0x40] sm:$0xff] %v1450_v45  ;;  %v1488_v1 = vld [vmem:[%s2898_s22 + $0xd8] sm:$0xff]  ;;  %v1490_v2 = vld [vmem:[%s2898_s22 + $0xe0] sm:$0xff]  ;;  %v1492_v3 = vld [vmem:[%s2898_s22 + $0xe8] sm:$0xff] }
 0x1e5   : >> { %1453 = vst [vmem:[%s2894_s21 + $0x48] sm:$0xff] %v1452_v46  ;;  %v1494_v5 = vld [vmem:[%s2898_s22 + $0xf0] sm:$0xff]  ;;  %v1496_v6 = vld [vmem:[%s2898_s22 + $0xf8] sm:$0xff]  ;;  %s4059_s22 = smov %s3792_s4 }
 0x1e6   : >> { %1455 = vst [vmem:[%s2894_s21 + $0x50] sm:$0xff] %v1454_v47 }
 0x1e7   : >> { %1457 = vst [vmem:[%s2894_s21 + $0x58] sm:$0xff] %v1456_v48 }
 0x1e8   : >> { %1459 = vst [vmem:[%s2894_s21 + $0x60] sm:$0xff] %v1458_v49 }
 0x1e9   : >> { %1461 = vst [vmem:[%s2894_s21 + $0x68] sm:$0xff] %v1460_v50 }
 0x1ea   : >> { %1463 = vst [vmem:[%s2894_s21 + $0x70] sm:$0xff] %v1462_v51 }
 0x1eb   : >> { %1465 = vst [vmem:[%s2894_s21 + $0x78] sm:$0xff] %v1464_v52 }
 0x1ec   : >> { %1467 = vst [vmem:[%s2894_s21 + $0x1f8] sm:$0xff] %v1466_v53 }
 0x1ed   : >> { %1469 = vst [vmem:[%s2894_s21 + $0x200] sm:$0xff] %v1468_v54 }
 0x1ee   : >> { %1471 = vst [vmem:[%s2894_s21 + $0x208] sm:$0xff] %v1470_v55 }
 0x1ef   : >> { %1473 = vst [vmem:[%s2894_s21 + $0x210] sm:$0xff] %v1472_v56 }
 0x1f0   : >> { %1475 = vst [vmem:[%s2894_s21 + $0x218] sm:$0xff] %v1474_v57 }
 0x1f1   : >> { %1477 = vst [vmem:[%s2894_s21 + $0x220] sm:$0xff] %v1476_v59 }
 0x1f2   : >> { %1479 = vst [vmem:[%s2894_s21 + $0x228] sm:$0xff] %v1478_v60 }
 0x1f3   : >> { %1481 = vst [vmem:[%s2894_s21 + $0x230] sm:$0xff] %v1480_v61 }
 0x1f4   : >> { %1483 = vst [vmem:[%s2894_s21 + $0x238] sm:$0xff] %v1482_v62 }
 0x1f5   : >> { %1485 = vst [vmem:[%s2894_s21 + $0x240] sm:$0xff] %v1484_v63 }
 0x1f6   : >> { %1487 = vst [vmem:[%s2894_s21 + $0x248] sm:$0xff] %v1486_v0 }
 0x1f7   : >> { %1489 = vst [vmem:[%s2894_s21 + $0x250] sm:$0xff] %v1488_v1  ;;  %1430 = sbr.rel (!%p1427_p8) target bundleno = 475 (0x1db), region = 279 }
 0x1f8   : >> { %1491 = vst [vmem:[%s2894_s21 + $0x258] sm:$0xff] %v1490_v2 }
 0x1f9   : >> { %1493 = vst [vmem:[%s2894_s21 + $0x260] sm:$0xff] %v1492_v3 }
 0x1fa   : >> { %1495 = vst [vmem:[%s2894_s21 + $0x268] sm:$0xff] %v1494_v5 }
 0x1fb   : >> { %1497 = vst [vmem:[%s2894_s21 + $0x270] sm:$0xff] %v1496_v6  ;;  %s4058_s21 = smov %s3795_s11 }
 0x1fc PF: > { %s3861_s17 = sand.u32 15, %s1423_s15   ;;  %s2383_s27 = sshll.u32 %s3749_s5, 7 }
 0x1fd   : > { %s3865_s23 = scalar_lea.vmem %s3663_s26, %s2383_s27 [#allocation3]   ;;  %s1511_s25 = scalar_lea.vmem %s3736_s9, %s2383_s27  }
 0x1fe   : > { %p2279_p9 = scmp.le.s32.totalorder %s3861_s17, 0 }
 0x1ff   : > { %s2908_s12 = smov (!%p2279_p9), %s1511_s25   ;;  %s2912_s18 = smov (!%p2279_p9), %s3865_s23  }
 0x200   : > { %1835 = sbr.rel (%p2279_p9) target bundleno = 525 (0x20d), region = 284  ;;  %s2916_s24 = smov (!%p2279_p9), 0  }
 0x201   : > { %s2920_s29 = smov (!%p2279_p9), 0  }
 0x205 LB: >> { %v1521_v7 = vld [vmem:[%s2914_s18] sm:$0xff]  ;;  %s1525_s8 = sadd.s32 1, %s2918_s24  ;;  %s1515_s29 = sadd.s32 1, %s2922_s29   ;;  %s2922_s29 = sphi %s2920_s29, %s1515_s29   ;;  %s2918_s24 = sphi %s2916_s24, %s2917_s24   ;;  %s2914_s18 = sphi %s2912_s18, %s1530_s18   ;;  %s2910_s12 = sphi %s2908_s12, %s1531_s12  }
 0x206   : >> { %v1523_v8 = vld [vmem:[%s2914_s18 + $0x80] sm:$0xff]  ;;  %1522 = vst [vmem:[%s2910_s12] sm:$0xff] %v1521_v7  ;;  %p1526_p10 = scmp.ge.s32.totalorder %s1525_s8, %s3861_s17  ;;  %p1514_p11 = scmp.ge.s32.totalorder %s1515_s29, %s3861_s17 }
 0x207   : >> { %1524 = vst [vmem:[%s2910_s12 + $0x1f8] sm:$0xff] %v1523_v8 }
 0x208   : >> { %s4084_s8 = smov (%p1526_p10, %s1525_s8), 0  ;;  %1517 = sbr.rel (!%p1514_p11) target bundleno = 517 (0x205), region = 290 }
 0x209   : >> { %s2280_s6 = sshll.u32 %s4084_s8, 3  ;;  %s2917_s24 = smov %s4084_s8  }
 0x20a   : >> { %s1530_s18 = scalar_lea.vmem %s3865_s23, %s2280_s6 [#allocation3]   ;;  %s1531_s12 = scalar_lea.vmem %s1511_s25, %s2280_s6  }
 0x20d PF: > { %1534 = sbr.rel (%p1419_p5) target bundleno = 591 (0x24f), region = 143  ;;  %s1536_s15 = ssub.s32 (!%p1419_p5), %s3738_s10, %s3742_s20 }
 0x20e   : > { %s1540_s5 = sshrl.u32 (!%p1419_p5), %s3738_s10, 3  ;;  %s3879_s21 = scalar_lea.vmem (!%p1419_p5), %s3663_s26, %s1536_s15 [#allocation3] }
 0x20f   : > { %s3882_s22 = scalar_lea.vmem (!%p1419_p5), %s3736_s9, %s1536_s15  ;;  %s3886_s30 = sshrl.u32 (!%p1419_p5), %s1540_s5, 4 }
 0x210   : > { %p2282_p12 = scmp.le.s32.totalorder (!%p1419_p5), %s3886_s30, 0 }
 0x212   : > { %1849 = sbr.rel (%p2282_p12) target bundleno = 568 (0x238), region = 295  ;;  %s4061_s7 = smov (!%p2282_p12), %s3736_s9 }
 0x213   : > { %s4062_s28 = smov (!%p2282_p12), %s3663_s26  ;;  %s3895_s14 = smov (!%p2282_p12), 0  }
 0x214   : > { %s3897_s4 = smov (!%p2282_p12), 0  }
 0x217 LB: >> { %v1551_v10 = vld [vmem:[%s2930_s28] sm:$0xff]  ;;  %v1553_v11 = vld [vmem:[%s2930_s28 + $0x8] sm:$0xff]  ;;  %v1555_v9 = vld [vmem:[%s2930_s28 + $0x10] sm:$0xff]  ;;  %s1615_s11 = sadd.s32 1, %s2934_s14  ;;  %s1545_s4 = sadd.s32 1, %s2938_s4   ;;  %s2938_s4 = sphi %s3897_s4, %s1545_s4   ;;  %s2934_s14 = sphi %s3895_s14, %s4065_s14   ;;  %s2930_s28 = sphi %s4062_s28, %s4064_s28   ;;  %s2926_s7 = sphi %s4061_s7, %s4063_s7  }
 0x218   : >> { %1552 = vst [vmem:[%s2926_s7] sm:$0xff] %v1551_v10  ;;  %v1557_v12 = vld [vmem:[%s2930_s28 + $0x18] sm:$0xff]  ;;  %p1616_p13 = scmp.ge.s32.totalorder %s1615_s11, %s3886_s30  ;;  %v1559_v13 = vld [vmem:[%s2930_s28 + $0x20] sm:$0xff]  ;;  %v1561_v15 = vld [vmem:[%s2930_s28 + $0x28] sm:$0xff]  ;;  %p1544_p0 = scmp.ge.s32.totalorder %s1545_s4, %s3886_s30 }
 0x219   : >> { %1554 = vst [vmem:[%s2926_s7 + $0x8] sm:$0xff] %v1553_v11  ;;  %v1563_v16 = vld [vmem:[%s2930_s28 + $0x30] sm:$0xff]  ;;  %v1565_v17 = vld [vmem:[%s2930_s28 + $0x38] sm:$0xff]  ;;  %v1567_v18 = vld [vmem:[%s2930_s28 + $0x40] sm:$0xff] }
 0x21a   : >> { %1556 = vst [vmem:[%s2926_s7 + $0x10] sm:$0xff] %v1555_v9  ;;  %s4086_s11 = smov (%p1616_p13, %s1615_s11), 0  ;;  %v1569_v19 = vld [vmem:[%s2930_s28 + $0x48] sm:$0xff]  ;;  %v1571_v20 = vld [vmem:[%s2930_s28 + $0x50] sm:$0xff]  ;;  %v1573_v21 = vld [vmem:[%s2930_s28 + $0x58] sm:$0xff] }
 0x21b   : >> { %1558 = vst [vmem:[%s2926_s7 + $0x18] sm:$0xff] %v1557_v12  ;;  %s2283_s17 = sshll.u32 %s4086_s11, 7  ;;  %v1575_v22 = vld [vmem:[%s2930_s28 + $0x60] sm:$0xff]  ;;  %v1577_v23 = vld [vmem:[%s2930_s28 + $0x68] sm:$0xff]  ;;  %v1579_v24 = vld [vmem:[%s2930_s28 + $0x70] sm:$0xff]  ;;  %s4065_s14 = smov %s4086_s11 }
 0x21c   : >> { %1560 = vst [vmem:[%s2926_s7 + $0x20] sm:$0xff] %v1559_v13  ;;  %s3929_s27 = scalar_lea.vmem %s3663_s26, %s2283_s17 [#allocation3]   ;;  %s3932_s23 = scalar_lea.vmem %s3736_s9, %s2283_s17   ;;  %v1581_v25 = vld [vmem:[%s2930_s28 + $0x78] sm:$0xff]  ;;  %v1583_v26 = vld [vmem:[%s2930_s28 + $0x80] sm:$0xff]  ;;  %v1585_v27 = vld [vmem:[%s2930_s28 + $0x88] sm:$0xff] }
 0x21d   : >> { %1562 = vst [vmem:[%s2926_s7 + $0x28] sm:$0xff] %v1561_v15  ;;  %v1587_v28 = vld [vmem:[%s2930_s28 + $0x90] sm:$0xff]  ;;  %v1589_v58 = vld [vmem:[%s2930_s28 + $0x98] sm:$0xff]  ;;  %v1591_v29 = vld [vmem:[%s2930_s28 + $0xa0] sm:$0xff] }
 0x21e   : >> { %1564 = vst [vmem:[%s2926_s7 + $0x30] sm:$0xff] %v1563_v16  ;;  %v1593_v30 = vld [vmem:[%s2930_s28 + $0xa8] sm:$0xff]  ;;  %v1595_v31 = vld [vmem:[%s2930_s28 + $0xb0] sm:$0xff]  ;;  %v1597_v32 = vld [vmem:[%s2930_s28 + $0xb8] sm:$0xff] }
 0x21f   : >> { %1566 = vst [vmem:[%s2926_s7 + $0x38] sm:$0xff] %v1565_v17  ;;  %v1599_v33 = vld [vmem:[%s2930_s28 + $0xc0] sm:$0xff]  ;;  %v1601_v34 = vld [vmem:[%s2930_s28 + $0xc8] sm:$0xff]  ;;  %v1603_v35 = vld [vmem:[%s2930_s28 + $0xd0] sm:$0xff] }
 0x220   : >> { %1568 = vst [vmem:[%s2926_s7 + $0x40] sm:$0xff] %v1567_v18  ;;  %v1605_v4 = vld [vmem:[%s2930_s28 + $0xd8] sm:$0xff]  ;;  %v1607_v36 = vld [vmem:[%s2930_s28 + $0xe0] sm:$0xff]  ;;  %v1609_v37 = vld [vmem:[%s2930_s28 + $0xe8] sm:$0xff] }
 0x221   : >> { %1570 = vst [vmem:[%s2926_s7 + $0x48] sm:$0xff] %v1569_v19  ;;  %v1611_v14 = vld [vmem:[%s2930_s28 + $0xf0] sm:$0xff]  ;;  %v1613_v38 = vld [vmem:[%s2930_s28 + $0xf8] sm:$0xff]  ;;  %s4064_s28 = smov %s3929_s27 }
 0x222   : >> { %1572 = vst [vmem:[%s2926_s7 + $0x50] sm:$0xff] %v1571_v20 }
 0x223   : >> { %1574 = vst [vmem:[%s2926_s7 + $0x58] sm:$0xff] %v1573_v21 }
 0x224   : >> { %1576 = vst [vmem:[%s2926_s7 + $0x60] sm:$0xff] %v1575_v22 }
 0x225   : >> { %1578 = vst [vmem:[%s2926_s7 + $0x68] sm:$0xff] %v1577_v23 }
 0x226   : >> { %1580 = vst [vmem:[%s2926_s7 + $0x70] sm:$0xff] %v1579_v24 }
 0x227   : >> { %1582 = vst [vmem:[%s2926_s7 + $0x78] sm:$0xff] %v1581_v25 }
 0x228   : >> { %1584 = vst [vmem:[%s2926_s7 + $0x1f8] sm:$0xff] %v1583_v26 }
 0x229   : >> { %1586 = vst [vmem:[%s2926_s7 + $0x200] sm:$0xff] %v1585_v27 }
 0x22a   : >> { %1588 = vst [vmem:[%s2926_s7 + $0x208] sm:$0xff] %v1587_v28 }
 0x22b   : >> { %1590 = vst [vmem:[%s2926_s7 + $0x210] sm:$0xff] %v1589_v58 }
 0x22c   : >> { %1592 = vst [vmem:[%s2926_s7 + $0x218] sm:$0xff] %v1591_v29 }
 0x22d   : >> { %1594 = vst [vmem:[%s2926_s7 + $0x220] sm:$0xff] %v1593_v30 }
 0x22e   : >> { %1596 = vst [vmem:[%s2926_s7 + $0x228] sm:$0xff] %v1595_v31 }
 0x22f   : >> { %1598 = vst [vmem:[%s2926_s7 + $0x230] sm:$0xff] %v1597_v32 }
 0x230   : >> { %1600 = vst [vmem:[%s2926_s7 + $0x238] sm:$0xff] %v1599_v33 }
 0x231   : >> { %1602 = vst [vmem:[%s2926_s7 + $0x240] sm:$0xff] %v1601_v34 }
 0x232   : >> { %1604 = vst [vmem:[%s2926_s7 + $0x248] sm:$0xff] %v1603_v35 }
 0x233   : >> { %1606 = vst [vmem:[%s2926_s7 + $0x250] sm:$0xff] %v1605_v4  ;;  %1547 = sbr.rel (!%p1544_p0) target bundleno = 535 (0x217), region = 301 }
 0x234   : >> { %1608 = vst [vmem:[%s2926_s7 + $0x258] sm:$0xff] %v1607_v36 }
 0x235   : >> { %1610 = vst [vmem:[%s2926_s7 + $0x260] sm:$0xff] %v1609_v37 }
 0x236   : >> { %1612 = vst [vmem:[%s2926_s7 + $0x268] sm:$0xff] %v1611_v14 }
 0x237   : >> { %1614 = vst [vmem:[%s2926_s7 + $0x270] sm:$0xff] %v1613_v38  ;;  %s4063_s7 = smov %s3932_s23 }
 0x238 PF: > { %s3998_s25 = sand.u32 15, %s1540_s5   ;;  %s2385_s12 = sshll.u32 %s3886_s30, 7 }
 0x239   : > { %s4002_s18 = scalar_lea.vmem %s3663_s26, %s2385_s12 [#allocation3]   ;;  %s1628_s24 = scalar_lea.vmem %s3736_s9, %s2385_s12  }
 0x23a   : > { %p2288_p1 = scmp.le.s32.totalorder %s3998_s25, 0 }
 0x23b   : > { %s2940_s29 = smov (!%p2288_p1), %s1628_s24   ;;  %s2944_s8 = smov (!%p2288_p1), %s4002_s18  }
 0x23c   : > { %1863 = sbr.rel (%p2288_p1) target bundleno = 585 (0x249), region = 306  ;;  %s2948_s6 = smov (!%p2288_p1), 0  }
 0x23d   : > { %s2952_s15 = smov (!%p2288_p1), 0  }
 0x241 LB: >> { %v1638_v39 = vld [vmem:[%s2946_s8] sm:$0xff]  ;;  %s1642_s5 = sadd.s32 1, %s2950_s6  ;;  %s1632_s15 = sadd.s32 1, %s2954_s15   ;;  %s2954_s15 = sphi %s2952_s15, %s1632_s15   ;;  %s2950_s6 = sphi %s2948_s6, %s2949_s6   ;;  %s2946_s8 = sphi %s2944_s8, %s1647_s8   ;;  %s2942_s29 = sphi %s2940_s29, %s1648_s29  }
 0x242   : >> { %v1640_v40 = vld [vmem:[%s2946_s8 + $0x80] sm:$0xff]  ;;  %1639 = vst [vmem:[%s2942_s29] sm:$0xff] %v1638_v39  ;;  %p1643_p2 = scmp.ge.s32.totalorder %s1642_s5, %s3998_s25  ;;  %p1631_p3 = scmp.ge.s32.totalorder %s1632_s15, %s3998_s25 }
 0x243   : >> { %1641 = vst [vmem:[%s2942_s29 + $0x1f8] sm:$0xff] %v1640_v40 }
 0x244   : >> { %s4088_s5 = smov (%p1643_p2, %s1642_s5), 0  ;;  %1634 = sbr.rel (!%p1631_p3) target bundleno = 577 (0x241), region = 312 }
 0x245   : >> { %s2289_s30 = sshll.u32 %s4088_s5, 3  ;;  %s2949_s6 = smov %s4088_s5  }
 0x246   : >> { %s1647_s8 = scalar_lea.vmem %s4002_s18, %s2289_s30 [#allocation3]   ;;  %s1648_s29 = scalar_lea.vmem %s1628_s24, %s2289_s30  }
 0x249 PF: > { %s2960_s7 = smov 1  }
 0x24a   : > { %s1649_s28 = sshll.u32 %s2960_s7, %s3742_s20 }
 0x24b   : > { %s2291_s14 = sadd.s32 4294967295, %s1649_s28 }
 0x24c   : > { %v1659_v41 = vld [vmem:[%s3879_s21] sm:%s2291_s14] }
 0x24d   : > { %v1661_v42 = vld [vmem:[%s3879_s21 + $0x80] sm:%s2291_s14]  ;;  %1660 = vst [vmem:[%s3882_s22] sm:%s2291_s14] %v1659_v41 }
 0x24e   : > { %1662 = vst [vmem:[%s3882_s22 + $0x1f8] sm:%s2291_s14] %v1661_v42 }
 0x24f PF: > { %p2292_p5 = scmp.ge.u32.totalorder %s3738_s10, 8 }
 0x250   : > { %s2961_s4 = smov (!%p2292_p5), 1  }
 0x251   : > { %1403 = sbr.rel (%p2292_p5) target bundleno = 601 (0x259), region = 114  ;;  %s1404_s11 = sshll.u32 (!%p2292_p5), %s2961_s4, %s3738_s10 }
 0x252   : > { %s2293_s17 = sadd.s32 (!%p2292_p5), 4294967295, %s1404_s11 }
 0x256   : > { %v1414_v43 = vld [vmem:[%s3663_s26] sm:%s2293_s17] }
 0x257   : > { %v1416_v44 = vld [vmem:[%s3663_s26 + $0x80] sm:%s2293_s17]  ;;  %1415 = vst [vmem:[%s3736_s9] sm:%s2293_s17] %v1414_v43 }
 0x258   : > { %1417 = vst [vmem:[%s3736_s9 + $0x1f8] sm:%s2293_s17] %v1416_v44 }
 0x259 PF: > { %p10_p4 = scmp.ge.s32.totalorder %s3001_s16, 6   ;;  %s4066_s12 = smov %s2822_s13 }
 0x25a   : > { %s4067_s13 = smov %s3011_s19  ;;  %s4068_s14 = smov %s3001_s16 }
 0x25b   :  { %12 = sbr.rel (!%p10_p4) target bundleno = 2 (0x2), region = 323 }

// kernel: cnn_forward.6
= control target key start
LH: loop header
LB: loop body
LE: loop exit
PB: predicated region body
PF: predicated region fallthrough
CT: control target
= control target key end

     0   :  { %s477_s15 = smov 0   ;;  %s553_s0 = inlined_call_operand.vmem [shape: f32[32,961], index: 0, kind: input, shape index: {}]   ;;  %s554_s1 = inlined_call_operand.vmem [shape: f32[32,961], index: 1, kind: input, shape index: {}]   ;;  %s555_s2 = inlined_call_operand.vmem [shape: f32[32,961], index: 2, kind: input, shape index: {}]   ;;  %s556_s3 = inlined_call_operand.vmem [shape: f32[32,961], index: 3, kind: input, shape index: {}]   ;;  %s557_s4 = inlined_call_operand.vmem [shape: f32[32,961], index: 4, kind: output, shape index: {}]  }
   0x1 LB: > { %s414_s16 = sadd.s32 4294967295, %s450_s15   ;;  %p418_p0 = scmp.ge.s32.totalorder %s450_s15, 1  ;;  %s450_s15 = sphi %s477_s15, %s14_s15  }
   0x2   : > { %p192_p1 = scmp.lt.s32.totalorder %s450_s15, 5 }
   0x4   : > { %p193_p2 = pnand %p418_p0, %p192_p1 }
   0x5   : > { %p233_p3 = scmp.lt.s32.totalorder (!%p193_p2), %s414_s16, 3 }
   0x6   : > { %196 = sbr.rel (%p193_p2) target bundleno = 32 (0x20), region = 36 }
   0xb   : > { %s559_s16 = smov (!%p233_p3, %s414_s16), 3  ;;  %vm321_vm0 = vcmask 531456  }
   0xc   : > { %s431_s17 = sshll.u32 %s559_s16, 6 }
   0xd   : > { %s488_s20 = scalar_lea.vmem %s553_s0, %s431_s17  ;;  %s493_s23 = scalar_lea.vmem %s554_s1, %s431_s17 }
   0xe   : > { %s498_s26 = scalar_lea.vmem %s555_s2, %s431_s17  ;;  %s503_s29 = scalar_lea.vmem %s556_s3, %s431_s17  ;;  %v258_v0 = vld [vmem:[%s488_s20] sm:$0xff]  ;;  %v259_v2 = vld [vmem:[%s488_s20 + $0x8] sm:$0xff]  ;;  %v260_v11 = vld [vmem:[%s488_s20 + $0x10] sm:$0xff] }
   0xf   : > { %v266_v1 = vld [vmem:[%s493_s23] sm:$0xff]  ;;  %v267_v6 = vld [vmem:[%s493_s23 + $0x8] sm:$0xff]  ;;  %s517_s6 = scalar_lea.vmem %s557_s4, %s431_s17  ;;  %v268_v13 = vld [vmem:[%s493_s23 + $0x10] sm:$0xff] }
  0x10   : > { %v274_v3 = vmax.f32 %v258_v0, %v266_v1  ;;  %v282_v4 = vld [vmem:[%s498_s26] sm:$0xff]  ;;  %v275_v8 = vmax.f32 %v259_v2, %v267_v6  ;;  %v283_v9 = vld [vmem:[%s498_s26 + $0x8] sm:$0xff]  ;;  %v284_v14 = vld [vmem:[%s498_s26 + $0x10] sm:$0xff]  ;;  %v276_v17 = vmax.f32 %v260_v11, %v268_v13 }
  0x11   : > { %v290_v5 = vld [vmem:[%s503_s29] sm:$0xff]  ;;  %v291_v10 = vld [vmem:[%s503_s29 + $0x8] sm:$0xff]  ;;  %v292_v15 = vld [vmem:[%s503_s29 + $0x10] sm:$0xff] }
  0x12   : > { %v298_v7 = vmax.f32 %v282_v4, %v290_v5  ;;  %v299_v12 = vmax.f32 %v283_v9, %v291_v10  ;;  %v300_v18 = vmax.f32 %v284_v14, %v292_v15  ;;  %v261_v19 = vld [vmem:[%s488_s20 + $0x18] sm:$0xff]  ;;  %v262_v25 = vld [vmem:[%s488_s20 + $0x20] sm:$0xff]  ;;  %v263_v32 = vld [vmem:[%s488_s20 + $0x28] sm:$0xff] }
  0x13   : > { %v269_v20 = vld [vmem:[%s493_s23 + $0x18] sm:$0xff]  ;;  %v270_v26 = vld [vmem:[%s493_s23 + $0x20] sm:$0xff]  ;;  %v271_v34 = vld [vmem:[%s493_s23 + $0x28] sm:$0xff] }
  0x14   : > { %v306_v16 = vmax.f32 %v274_v3, %v298_v7  ;;  %v285_v21 = vld [vmem:[%s498_s26 + $0x18] sm:$0xff]  ;;  %v307_v22 = vmax.f32 %v275_v8, %v299_v12  ;;  %v277_v23 = vmax.f32 %v261_v19, %v269_v20  ;;  %v308_v27 = vmax.f32 %v276_v17, %v300_v18  ;;  %v286_v30 = vld [vmem:[%s498_s26 + $0x20] sm:$0xff]  ;;  %v287_v35 = vld [vmem:[%s498_s26 + $0x28] sm:$0xff] }
  0x15   : > { %v293_v24 = vld [vmem:[%s503_s29 + $0x18] sm:$0xff]  ;;  %v278_v29 = vmax.f32 %v262_v25, %v270_v26  ;;  %v294_v31 = vld [vmem:[%s503_s29 + $0x20] sm:$0xff]  ;;  %v295_v36 = vld [vmem:[%s503_s29 + $0x28] sm:$0xff]  ;;  %v279_v38 = vmax.f32 %v263_v32, %v271_v34 }
  0x16   : > { %314 = vst [vmem:[%s517_s6] sm:$0xff] %v306_v16  ;;  %v301_v28 = vmax.f32 %v285_v21, %v293_v24  ;;  %v302_v33 = vmax.f32 %v286_v30, %v294_v31  ;;  %v303_v39 = vmax.f32 %v287_v35, %v295_v36  ;;  %v264_v40 = vld [vmem:[%s488_s20 + $0x30] sm:$0xff]  ;;  %v265_v46 = vld [vmem:[%s488_s20 + $0x38] sm:$0xff] }
  0x17   : > { %315 = vst [vmem:[%s517_s6 + $0x8] sm:$0xff] %v307_v22  ;;  %v272_v41 = vld [vmem:[%s493_s23 + $0x30] sm:$0xff]  ;;  %v273_v47 = vld [vmem:[%s493_s23 + $0x38] sm:$0xff] }
  0x18   : > { %316 = vst [vmem:[%s517_s6 + $0x10] sm:$0xff] %v308_v27  ;;  %v309_v37 = vmax.f32 %v277_v23, %v301_v28  ;;  %v288_v42 = vld [vmem:[%s498_s26 + $0x30] sm:$0xff]  ;;  %v310_v43 = vmax.f32 %v278_v29, %v302_v33  ;;  %v280_v44 = vmax.f32 %v264_v40, %v272_v41  ;;  %v311_v48 = vmax.f32 %v279_v38, %v303_v39  ;;  %v289_v51 = vld [vmem:[%s498_s26 + $0x38] sm:$0xff] }
  0x19   : > { %v296_v45 = vld [vmem:[%s503_s29 + $0x30] sm:$0xff]  ;;  %v281_v50 = vmax.f32 %v265_v46, %v273_v47  ;;  %v297_v52 = vld [vmem:[%s503_s29 + $0x38] sm:$0xff] }
  0x1a   : > { %317 = vst [vmem:[%s517_s6 + $0x18] sm:$0xff] %v309_v37  ;;  %v304_v49 = vmax.f32 %v288_v42, %v296_v45  ;;  %v305_v53 = vmax.f32 %v289_v51, %v297_v52 }
  0x1b   : > { %318 = vst [vmem:[%s517_s6 + $0x20] sm:$0xff] %v310_v43 }
  0x1c   : > { %319 = vst [vmem:[%s517_s6 + $0x28] sm:$0xff] %v311_v48  ;;  %v312_v54 = vmax.f32 %v280_v44, %v304_v49  ;;  %v313_v55 = vmax.f32 %v281_v50, %v305_v53 }
  0x1e   : > { %320 = vst [vmem:[%s517_s6 + $0x30] sm:$0xff] %v312_v54 }
  0x1f   : > { %322 = vst.msk [vmem:[%s517_s6 + $0x38] sm:$0xff] %vm321_vm0, %v313_v55 }
  0x20 PF: > { %s14_s15 = sadd.s32 1, %s450_s15  }
  0x21   : > { %p11_p4 = scmp.ge.s32.totalorder %s14_s15, 6  }
  0x23   :  { %13 = sbr.rel (!%p11_p4) target bundleno = 1 (0x1), region = 75 }

// kernel: cnn_forward.7
= control target key start
LH: loop header
LB: loop body
LE: loop exit
PB: predicated region body
PF: predicated region fallthrough
CT: control target
= control target key end

     0   :  { %s867_s12 = smov 0   ;;  %s869_s13 = smov 0   ;;  %s1079_s0 = inlined_call_operand.vmem [shape: bf16[36,144], index: 0, kind: input, shape index: {}]   ;;  %s1080_s1 = inlined_call_operand.vmem [shape: bf16[144,512], index: 1, kind: input, shape index: {}]   ;;  %s1081_s2 = inlined_call_operand.vmem [shape: f32[36,1], index: 2, kind: input, shape index: {}]   ;;  %s1082_s3 = inlined_call_operand.vmem [shape: f32[36,512], index: 3, kind: output, shape index: {}]  }
   0x1   :  { %s871_s14 = smov 0  }
   0x2 LB: > { %s662_s15 = sadd.s32 4294967295, %s844_s14   ;;  %s884_s16 = sadd.s32 1, %s844_s14   ;;  %s844_s14 = sphi %s871_s14, %s1086_s14   ;;  %s840_s13 = sphi %s869_s13, %s1085_s13   ;;  %s836_s12 = sphi %s867_s12, %s1084_s12  }
   0x3   : > { %s38_s17 = ssub.s32 %s844_s14, %s884_s16  ;;  %s41_s18 = sadd.s32 1, %s840_s13 }
   0x4   : > { %p39_p0 = scmp.eq.s32.totalorder %s38_s17, 0  ;;  %p48_p1 = scmp.ne.s32.totalorder %s840_s13, %s836_s12 }
   0x5   : > { %p49_p2 = scmp.eq.s32.totalorder %s844_s14, 0  ;;  %p99_p3 = scmp.eq.s32.totalorder %s662_s15, 1 }
   0x6   : > { %s895_s19 = scalar_select %p39_p0, %s840_s13, %s41_s18  }
   0x7   : > { %p50_p4 = por %p49_p2, %p48_p1  ;;  %p897_p5 = por %p99_p3, %p48_p1 }
   0x8   : > { %p665_p6 = scmp.ge.s32.totalorder %s844_s14, 2 }
   0xa   : > { %127 = sbr.rel (%p665_p6) target bundleno = 37 (0x25), region = 24 }
   0xf   : > { %130 = sbr.rel (!%p50_p4) target bundleno = 37 (0x25), region = 28  ;;  %s132_s21 = sand.u32 (%p50_p4), 1, %s840_s13  }
  0x10   : > { %s767_s22 = sshll.u32 (%p50_p4), %s844_s14, 3  ;;  %s791_s23 = smul.u32 (%p50_p4), 144, %s132_s21 }
  0x11   : > { %s907_s26 = scalar_lea.vmem (%p50_p4), %s1080_s1, %s767_s22 }
  0x12   : > { %v200_v0 = vld [vmem:[%s907_s26] sm:$0xff] (%p50_p4)  ;;  %v202_v1 = vld [vmem:[%s907_s26 + $0x10] sm:$0xff] (%p50_p4)  ;;  %s912_s27 = scalar_lea.vmem (%p50_p4), [#allocation2], %s791_s23 }
  0x13   : > { %v204_v2 = vld [vmem:[%s907_s26 + $0x20] sm:$0xff] (%p50_p4)  ;;  %201 = vst [vmem:[%s912_s27] sm:$0xff] (%p50_p4), %v200_v0  ;;  %v206_v3 = vld [vmem:[%s907_s26 + $0x30] sm:$0xff] (%p50_p4) }
  0x14   : > { %203 = vst [vmem:[%s912_s27 + $0x8] sm:$0xff] %v202_v1  ;;  %v208_v4 = vld [vmem:[%s907_s26 + $0x40] sm:$0xff]  ;;  %v210_v5 = vld [vmem:[%s907_s26 + $0x50] sm:$0xff] }
  0x15   : > { %205 = vst [vmem:[%s912_s27 + $0x10] sm:$0xff] %v204_v2  ;;  %v212_v6 = vld [vmem:[%s907_s26 + $0x60] sm:$0xff]  ;;  %v214_v7 = vld [vmem:[%s907_s26 + $0x70] sm:$0xff] }
  0x16   : > { %207 = vst [vmem:[%s912_s27 + $0x18] sm:$0xff] %v206_v3  ;;  %v216_v8 = vld [vmem:[%s907_s26 + $0x80] sm:$0xff]  ;;  %v218_v9 = vld [vmem:[%s907_s26 + $0x90] sm:$0xff] }
  0x17   : > { %209 = vst [vmem:[%s912_s27 + $0x20] sm:$0xff] %v208_v4  ;;  %v220_v10 = vld [vmem:[%s907_s26 + $0xa0] sm:$0xff]  ;;  %v222_v11 = vld [vmem:[%s907_s26 + $0xb0] sm:$0xff] }
  0x18   : > { %211 = vst [vmem:[%s912_s27 + $0x28] sm:$0xff] %v210_v5  ;;  %v224_v12 = vld [vmem:[%s907_s26 + $0xc0] sm:$0xff]  ;;  %v226_v13 = vld [vmem:[%s907_s26 + $0xd0] sm:$0xff] }
  0x19   : > { %213 = vst [vmem:[%s912_s27 + $0x30] sm:$0xff] %v212_v6  ;;  %v228_v14 = vld [vmem:[%s907_s26 + $0xe0] sm:$0xff]  ;;  %v230_v15 = vld [vmem:[%s907_s26 + $0xf0] sm:$0xff] }
  0x1a   : > { %215 = vst [vmem:[%s912_s27 + $0x38] sm:$0xff] %v214_v7  ;;  %v232_v16 = vld [vmem:[%s907_s26 + $0x100] sm:$0xff]  ;;  %v234_v17 = vld [vmem:[%s907_s26 + $0x110] sm:$0xff] }
  0x1b   : > { %217 = vst [vmem:[%s912_s27 + $0x40] sm:$0xff] %v216_v8 }
  0x1c   : > { %219 = vst [vmem:[%s912_s27 + $0x48] sm:$0xff] %v218_v9 }
  0x1d   : > { %221 = vst [vmem:[%s912_s27 + $0x50] sm:$0xff] %v220_v10 }
  0x1e   : > { %223 = vst [vmem:[%s912_s27 + $0x58] sm:$0xff] %v222_v11 }
  0x1f   : > { %225 = vst [vmem:[%s912_s27 + $0x60] sm:$0xff] %v224_v12 }
  0x20   : > { %227 = vst [vmem:[%s912_s27 + $0x68] sm:$0xff] %v226_v13 }
  0x21   : > { %229 = vst [vmem:[%s912_s27 + $0x70] sm:$0xff] %v228_v14 }
  0x22   : > { %231 = vst [vmem:[%s912_s27 + $0x78] sm:$0xff] %v230_v15 }
  0x23   : > { %233 = vst [vmem:[%s912_s27 + $0x80] sm:$0xff] %v232_v16 }
  0x24   : > { %235 = vst [vmem:[%s912_s27 + $0x88] sm:$0xff] %v234_v17 }
  0x25 PF: > { %p668_p7 = scmp.ge.s32.totalorder %s844_s14, 1  ;;  %p240_p8 = scmp.lt.s32.totalorder %s844_s14, 3 }
  0x27   : > { %p241_p9 = pnand %p668_p7, %p240_p8 }
  0x28   : > { %s247_s28 = sand.u32 (!%p241_p9), 1, %s836_s12  }
  0x29   : > { %244 = sbr.rel (%p241_p9) target bundleno = 260 (0x104), region = 66 }
  0x2a   : > { %s792_s29 = smul.u32 (!%p241_p9), 144, %s247_s28 }
  0x2b   : > { %s793_s18 = smul.u32 (!%p241_p9), 80, %s247_s28 }
  0x2c   : > { %s952_s30 = scalar_lea.vmem (!%p241_p9), [#allocation2], %s792_s29 }
  0x2d   : > { %s1040_s21 = scalar_lea.vmem (!%p241_p9), [#allocation3], %s793_s18 }
  0x2e   : > { %v743_v18 = vld [vmem:[%s952_s30 + $0x70] sm:$0xf]  ;;  %v787_v19 = vld [vmem:[%s952_s30 + $0x74] sm:$0xf0]  ;;  %v786_v20 = vld [vmem:[%s952_s30 + $0x74] sm:$0xf] }
  0x2f   : > { %v744_v21 = vor.u32 %v787_v19, %v743_v18  ;;  %v745_v22 = vld [vmem:[%s952_s30 + $0x78] sm:$0xf0]  ;;  %v735_v23 = vld [vmem:[%s952_s30 + $0x60] sm:$0xf]  ;;  %v785_v24 = vld [vmem:[%s952_s30 + $0x64] sm:$0xf0] }
  0x30   : > { %v748_v25 = vor.u32 %v786_v20, %v745_v22  ;;  %v784_v26 = vld [vmem:[%s952_s30 + $0x64] sm:$0xf]  ;;  %v737_v27 = vld [vmem:[%s952_s30 + $0x68] sm:$0xf0]  ;;  %v736_v28 = vor.u32 %v785_v24, %v735_v23  ;;  %v727_v30 = vld [vmem:[%s952_s30 + $0x50] sm:$0xf] }
  0x31   : > { %449 = vmatpush.bf16.msra.mxu0 %v744_v21  ;;  %v740_v29 = vor.u32 %v784_v26, %v737_v27  ;;  %v783_v31 = vld [vmem:[%s952_s30 + $0x54] sm:$0xf0]  ;;  %v782_v32 = vld [vmem:[%s952_s30 + $0x54] sm:$0xf]  ;;  %v729_v33 = vld [vmem:[%s952_s30 + $0x58] sm:$0xf0] }
  0x32   : > { %495 = vmatpush.bf16.msra.mxu2 %v748_v25  ;;  %v728_v34 = vor.u32 %v783_v31, %v727_v30  ;;  %v719_v35 = vld [vmem:[%s952_s30 + $0x40] sm:$0xf]  ;;  %v768_v36 = vld [vmem:[%s1079_s0 + $0x4] sm:$0xf]  ;;  %v673_v37 = vld [vmem:[%s1079_s0 + $0x8] sm:$0xf0]  ;;  %v732_v38 = vor.u32 %v782_v32, %v729_v33 }
  0x33   : > { %v781_v39 = vld [vmem:[%s952_s30 + $0x44] sm:$0xf0]  ;;  %v788_v40 = vld [vmem:[%s952_s30 + $0x84] sm:$0xf]  ;;  %v753_v41 = vld [vmem:[%s952_s30 + $0x88] sm:$0xf0]  ;;  %v676_v45 = vor.u32 %v768_v36, %v673_v37 }
  0x34   : > { %v780_v42 = vld [vmem:[%s952_s30 + $0x44] sm:$0xf]  ;;  %v721_v43 = vld [vmem:[%s952_s30 + $0x48] sm:$0xf0]  ;;  %v756_v44 = vor.u32 %v788_v40, %v753_v41  ;;  %v751_v46 = vld [vmem:[%s952_s30 + $0x80] sm:$0xf]  ;;  %v720_v48 = vor.u32 %v781_v39, %v719_v35 }
  0x35   : > { %450 = vmatpush.bf16.msra.mxu0 %v736_v28  ;;  %v789_v47 = vld [vmem:[%s952_s30 + $0x84] sm:$0xf0]  ;;  %vm439_vm0 = vcmask 130048   ;;  %v724_v50 = vor.u32 %v780_v42, %v721_v43  ;;  %v711_v51 = vld [vmem:[%s952_s30 + $0x30] sm:$0xf]  ;;  %v846_v56 = vmov 0  }
  0x36   : > { %496 = vmatpush.bf16.msra.mxu2 %v740_v29  ;;  %525 = vmatpush.bf16.msra.mxu3 %v756_v44  ;;  %v752_v49 = vor.u32 %v789_v47, %v751_v46  ;;  %v779_v52 = vld [vmem:[%s952_s30 + $0x34] sm:$0xf0]  ;;  %v778_v53 = vld [vmem:[%s952_s30 + $0x34] sm:$0xf]  ;;  %v713_v54 = vld [vmem:[%s952_s30 + $0x38] sm:$0xf0] }
  0x37   : > { %v295_v55 = vld [vmem:[%s1081_s2] sm:$0xff]  ;;  %819 = vset.pattern.permute.xlu0 %v846_v56  ;;  %v712_v57 = vor.u32 %v779_v52, %v711_v51  ;;  %v716_v58 = vor.u32 %v778_v53, %v713_v54  ;;  %v777_v60 = vld [vmem:[%s952_s30 + $0x24] sm:$0xf0]  ;;  %v705_v62 = vld [vmem:[%s952_s30 + $0x28] sm:$0xf0]  ;;  %820 = vset.pattern.permute.xlu1 %v846_v56  ;;  %s790_s12 = sshll.u32 (%p897_p5), %s662_s15, 4 }
  0x38   : > { %479 = vmatpush.bf16.msra.mxu1 %v752_v49  ;;  %302 = vperm.xlu0 %819, %v295_v55   ;;  %v703_v59 = vld [vmem:[%s952_s30 + $0x20] sm:$0xf]  ;;  %v776_v61 = vld [vmem:[%s952_s30 + $0x24] sm:$0xf]  ;;  %v695_v2 = vld [vmem:[%s952_s30 + $0x10] sm:$0xf]  ;;  %s570_s20 = scalar_lea.vmem (%p897_p5), %s1082_s3, %s790_s12 }
  0x39   : > { %451 = vmatpush.bf16.msra.mxu0 %v728_v34  ;;  %760 = vmatmul.msk.bf16.vlgmr.msra.gmra.mxu3 %vm439_vm0, %v676_v45  ;;  %v704_v63 = vor.u32 %v777_v60, %v703_v59  ;;  %v297_v0 = vld [vmem:[%s1081_s2 + $0x10] sm:$0xff]  ;;  %v708_v1 = vor.u32 %v776_v61, %v705_v62  ;;  %v775_v3 = vld [vmem:[%s952_s30 + $0x14] sm:$0xf0]  ;;  %v697_v6 = vld [vmem:[%s952_s30 + $0x18] sm:$0xf0] }
  0x3a   : > { %497 = vmatpush.bf16.msra.mxu2 %v732_v38  ;;  %821 = vset.pattern.permute.xlu2 %v846_v56  ;;  %v296_v4 = vld [vmem:[%s1081_s2 + $0x8] sm:$0xff]  ;;  %v774_v5 = vld [vmem:[%s952_s30 + $0x14] sm:$0xf]  ;;  %v696_v7 = vor.u32 %v775_v3, %v695_v2  ;;  %v681_v9 = vld [vmem:[%s1079_s0 + $0x18] sm:$0xf0] }
  0x3b   : > { %757 = vmatmul.msk.bf16.vlgmr.msra.gmra.mxu1 %vm439_vm0, %v676_v45  ;;  %312 = vperm.xlu1 %820, %v297_v0   ;;  %v770_v8 = vld [vmem:[%s1079_s0 + $0x14] sm:$0xf]  ;;  %v700_v10 = vor.u32 %v774_v5, %v697_v6  ;;  %v687_v11 = vld [vmem:[%s952_s30] sm:$0xf]  ;;  %v773_v12 = vld [vmem:[%s952_s30 + $0x4] sm:$0xf0] }
  0x3c   : > { %v772_v13 = vld [vmem:[%s952_s30 + $0x4] sm:$0xf]  ;;  %v689_v14 = vld [vmem:[%s952_s30 + $0x8] sm:$0xf0]  ;;  %v684_v15 = vor.u32 %v770_v8, %v681_v9  ;;  %v688_v16 = vor.u32 %v773_v12, %v687_v11  ;;  %v671_v17 = vld [vmem:[%s1079_s0] sm:$0xf] }
  0x3d   : > { %452 = vmatpush.bf16.msra.mxu0 %v720_v48  ;;  %v769_v18 = vld [vmem:[%s1079_s0 + $0x4] sm:$0xf0]  ;;  %v692_v19 = vor.u32 %v772_v13, %v689_v14  ;;  %v276_v21 = vld [vmem:[%s1079_s0 + $0x20] sm:$0x33]  ;;  %v298_v22 = vld [vmem:[%s1081_s2 + $0x18] sm:$0xff] }
  0x3e   : > { %498 = vmatpush.bf16.msra.mxu2 %v724_v50  ;;  %v672_v20 = vor.u32 %v769_v18, %v671_v17  ;;  %v299_v23 = vld [vmem:[%s1081_s2 + $0x20] sm:$0xf]  ;;  %v339_v24 = vunpack.c.h.b16 %v276_v21  ;;  %v679_v26 = vld [vmem:[%s1079_s0 + $0x10] sm:$0xf]  ;;  %v771_v27 = vld [vmem:[%s1079_s0 + $0x14] sm:$0xf0]  ;;  %v338_v29 = vunpack.c.l.b16 %v276_v21 }
  0x3f   : > { %322 = vperm.xlu2 %821, %v299_v23   ;;  %v680_v28 = vor.u32 %v771_v27, %v679_v26 }
  0x40   : > { %307 = vperm.xlu0 %819, %v296_v4   ;;  %v345_v25 = vpack.c.b16 %v339_v24, %v339_v24  ;;  %v344_v30 = vpack.c.b16 %v338_v29, %v338_v29 }
  0x41   : > { %453 = vmatpush.bf16.msra.mxu0 %v712_v57 }
  0x42   : > { %499 = vmatpush.bf16.msra.mxu2 %v716_v58 }
  0x43   : > { %317 = vperm.xlu1 %820, %v298_v22  }
  0x45   : > { %454 = vmatpush.bf16.msra.mxu0 %v704_v63 }
  0x46   : > { %500 = vmatpush.bf16.msra.mxu2 %v708_v1 }
  0x49   : > { %455 = vmatpush.bf16.msra.mxu0 %v696_v7  ;;  %761 = vmatmul.msk.bf16.gmra.mxu3 %vm439_vm0, %v684_v15 }
  0x4a   : > { %501 = vmatpush.bf16.msra.mxu2 %v700_v10 }
  0x4b   : > { %758 = vmatmul.msk.bf16.gmra.mxu1 %vm439_vm0, %v684_v15 }
  0x4d   : > { %456 = vmatpush.bf16.msra.mxu0 %v688_v16 }
  0x4e   : > { %502 = vmatpush.bf16.msra.mxu2 %v692_v19 }
  0x50   : > { %457 = vmatmul.bf16.vlgmr.msra.gmra.mxu0 %v672_v20 }
  0x51   : > { %503 = vmatmul.bf16.vlgmr.msra.gmra.mxu2 %v672_v20 }
  0x59   : > { %762 = vmatmul.msk.bf16.gmra.mxu3 %vm439_vm0, %v345_v25 }
  0x5b   : > { %759 = vmatmul.msk.bf16.gmra.mxu1 %vm439_vm0, %v345_v25 }
  0x60   : > { %462 = vmatmul.bf16.gmra.mxu0 %v680_v28 }
  0x61   : > { %508 = vmatmul.bf16.gmra.mxu2 %v680_v28 }
  0x70   : > { %467 = vmatmul.bf16.gmra.mxu0 %v344_v30 }
  0x71   : > { %513 = vmatmul.bf16.gmra.mxu2 %v344_v30 }
  0x99   : > { %v323_v11 = vpop.permute.xlu2 %322 }
  0xaa   : > { %v303_v35 = vpop.permute.xlu0 %302 }
  0xad   : > { %v313_v52 = vpop.permute.xlu1 %312 }
  0xb2   : > { %v308_v42 = vpop.permute.xlu0 %307 }
  0xb5   : > { %v318_v0 = vpop.permute.xlu1 %317 }
  0xb8   : > { %v481_v31 = vpop.f32.mrf.mxu1 }
  0xbc   : > { %v527_v32 = vpop.f32.mrf.mxu3 }
  0xc0   : > { %v483_v33 = vpop.f32.mrf.mxu1 }
  0xc4   : > { %v529_v34 = vpop.f32.mrf.mxu3 }
  0xc8   : > { %v486_v36 = vpop.f32.mrf.mxu1 }
  0xcc   : > { %v532_v39 = vpop.f32.mrf.mxu3 }
  0xcd   : > { %v458_v37 = vpop.f32.mrf.mxu0 }
  0xce   : > { %v459_v38 = vadd.f32 %v458_v37, %v303_v35 }
  0xd0   : > { %v482_v40 = vadd.f32 %v481_v31, %v459_v38  ;;  %v488_v43 = vpop.f32.mrf.mxu1 }
  0xd2   : > { %v541_v41 = vmax.f32 %v482_v40, 0.0 }
  0xd4   : > { %551 = vst [vmem:[%s1040_s21] sm:$0xff] %v541_v41  ;;  %v504_v44 = vpop.f32.mrf.mxu2  ;;  %v534_v49 = vpop.f32.mrf.mxu3 }
  0xd5   : > { %v505_v45 = vadd.f32 %v504_v44, %v303_v35  ;;  %v460_v46 = vpop.f32.mrf.mxu0 }
  0xd6   : > { %v461_v47 = vadd.f32 %v460_v46, %v308_v42 }
  0xd7   : > { %v528_v48 = vadd.f32 %v527_v32, %v505_v45 }
  0xd8   : > { %v484_v50 = vadd.f32 %v483_v33, %v461_v47  ;;  %v491_v54 = vpop.f32.mrf.mxu1 }
  0xd9   : > { %v542_v51 = vmax.f32 %v528_v48, 0.0 }
  0xda   : > { %v543_v53 = vmax.f32 %v484_v50, 0.0 }
  0xdb   : > { %552 = vst [vmem:[%s1040_s21 + $0x8] sm:$0xff] %v542_v51  ;;  %v583_v26 = vld [vmem:[%s1040_s21] sm:$0xff] (%p897_p5) }
  0xdc   : > { %553 = vst [vmem:[%s1040_s21 + $0x10] sm:$0xff] %v543_v53  ;;  %v506_v55 = vpop.f32.mrf.mxu2  ;;  %v537_v60 = vpop.f32.mrf.mxu3 }
  0xdd   : > { %v507_v56 = vadd.f32 %v506_v55, %v308_v42  ;;  %v463_v57 = vpop.f32.mrf.mxu0  ;;  %584 = vst [vmem:[%s570_s20] sm:$0xff] (%p897_p5), %v583_v26 }
  0xde   : > { %v464_v58 = vadd.f32 %v463_v57, %v313_v52 }
  0xdf   : > { %v530_v59 = vadd.f32 %v529_v34, %v507_v56 }
  0xe0   : > { %v487_v61 = vadd.f32 %v486_v36, %v464_v58  ;;  %v493_v1 = vpop.f32.mrf.mxu1 }
  0xe1   : > { %v544_v62 = vmax.f32 %v530_v59, 0.0 }
  0xe2   : > { %v545_v63 = vmax.f32 %v487_v61, 0.0  ;;  %v585_v27 = vld [vmem:[%s1040_s21 + $0x8] sm:$0xff] (%p897_p5) }
  0xe3   : > { %554 = vst [vmem:[%s1040_s21 + $0x18] sm:$0xff] %v544_v62  ;;  %v587_v28 = vld [vmem:[%s1040_s21 + $0x10] sm:$0xff] (%p897_p5) }
  0xe4   : > { %555 = vst [vmem:[%s1040_s21 + $0x20] sm:$0xff] %v545_v63  ;;  %v509_v2 = vpop.f32.mrf.mxu2  ;;  %v539_v7 = vpop.f32.mrf.mxu3 }
  0xe5   : > { %v510_v3 = vadd.f32 %v509_v2, %v313_v52  ;;  %v465_v4 = vpop.f32.mrf.mxu0  ;;  %586 = vst [vmem:[%s570_s20 + $0x8] sm:$0xff] (%p897_p5), %v585_v27 }
  0xe6   : > { %v466_v5 = vadd.f32 %v465_v4, %v318_v0  ;;  %588 = vst [vmem:[%s570_s20 + $0x20] sm:$0xff] (%p897_p5), %v587_v28 }
  0xe7   : > { %v533_v6 = vadd.f32 %v532_v39, %v510_v3 }
  0xe8   : > { %v489_v8 = vadd.f32 %v488_v43, %v466_v5 }
  0xe9   : > { %v546_v9 = vmax.f32 %v533_v6, 0.0 }
  0xea   : > { %v547_v10 = vmax.f32 %v489_v8, 0.0  ;;  %v589_v29 = vld [vmem:[%s1040_s21 + $0x18] sm:$0xff] (%p897_p5) }
  0xeb   : > { %556 = vst [vmem:[%s1040_s21 + $0x28] sm:$0xff] %v546_v9  ;;  %v591_v30 = vld [vmem:[%s1040_s21 + $0x20] sm:$0xff] (%p897_p5) }
  0xec   : > { %557 = vst [vmem:[%s1040_s21 + $0x30] sm:$0xff] %v547_v10  ;;  %v511_v12 = vpop.f32.mrf.mxu2 }
  0xed   : > { %v512_v13 = vadd.f32 %v511_v12, %v318_v0  ;;  %v468_v14 = vpop.f32.mrf.mxu0  ;;  %590 = vst [vmem:[%s570_s20 + $0x28] sm:$0xff] (%p897_p5), %v589_v29 }
  0xee   : > { %v469_v15 = vadd.f32 %v468_v14, %v323_v11  ;;  %592 = vst [vmem:[%s570_s20 + $0x40] sm:$0xff] (%p897_p5), %v591_v30 }
  0xef   : > { %v535_v16 = vadd.f32 %v534_v49, %v512_v13 }
  0xf0   : > { %v492_v17 = vadd.f32 %v491_v54, %v469_v15 }
  0xf1   : > { %v548_v18 = vmax.f32 %v535_v16, 0.0 }
  0xf2   : > { %v549_v19 = vmax.f32 %v492_v17, 0.0  ;;  %v593_v31 = vld [vmem:[%s1040_s21 + $0x28] sm:$0xff] (%p897_p5) }
  0xf3   : > { %558 = vst [vmem:[%s1040_s21 + $0x38] sm:$0xff] %v548_v18  ;;  %v595_v32 = vld [vmem:[%s1040_s21 + $0x30] sm:$0xff] (%p897_p5) }
  0xf4   : > { %559 = vst [vmem:[%s1040_s21 + $0x40] sm:$0xf] %v549_v19  ;;  %v514_v20 = vpop.f32.mrf.mxu2 }
  0xf5   : > { %v515_v21 = vadd.f32 %v514_v20, %v323_v11  ;;  %v470_v22 = vpop.f32.mrf.mxu0  ;;  %594 = vst [vmem:[%s570_s20 + $0x48] sm:$0xff] (%p897_p5), %v593_v31 }
  0xf6   : > { %596 = vst [vmem:[%s570_s20 + $0x60] sm:$0xff] (%p897_p5), %v595_v32 }
  0xf7   : > { %v538_v23 = vadd.f32 %v537_v60, %v515_v21 }
  0xf8   : > { %567 = sbr.rel (!%p897_p5) target bundleno = 260 (0x104), region = 74 }
  0xf9   : > { %v550_v24 = vmax.f32 %v538_v23, 0.0 }
  0xfa   : > { %v597_v33 = vld [vmem:[%s1040_s21 + $0x38] sm:$0xff] (%p897_p5) }
  0xfb   : > { %560 = vst [vmem:[%s1040_s21 + $0x48] sm:$0xf] %v550_v24  ;;  %v599_v34 = vld [vmem:[%s1040_s21 + $0x40] sm:$0xff] (%p897_p5) }
  0xfc   : > { %v516_v25 = vpop.f32.mrf.mxu2  ;;  %598 = vst [vmem:[%s570_s20 + $0x68] sm:$0xff] (%p897_p5), %v597_v33 }
  0xfd   : > { %600 = vst [vmem:[%s570_s20 + $0x80] sm:$0xff] %v599_v34 }
 0x102   : > { %v601_v35 = vld [vmem:[%s1040_s21 + $0x48] sm:$0xff] }
 0x103   : > { %602 = vst [vmem:[%s570_s20 + $0x88] sm:$0xff] %v601_v35 }
 0x104 PF: > { %p10_p10 = scmp.ge.s32.totalorder %s884_s16, 4   ;;  %s1084_s12 = smov %s840_s13 }
 0x105   : > { %s1085_s13 = smov %s895_s19  ;;  %s1086_s14 = smov %s884_s16 }
 0x106   :  { %12 = sbr.rel (!%p10_p10) target bundleno = 2 (0x2), region = 128 }

// kernel: cnn_forward.8
= control target key start
LH: loop header
LB: loop body
LE: loop exit
PB: predicated region body
PF: predicated region fallthrough
CT: control target
= control target key end

     0   :  { %s395_s15 = smov 0   ;;  %s415_s0 = inlined_call_operand.vmem [shape: f32[72,64], index: 0, kind: input, shape index: {}]   ;;  %s416_s1 = inlined_call_operand.vmem [shape: f32[72,64], index: 1, kind: input, shape index: {}]   ;;  %s417_s2 = inlined_call_operand.vmem [shape: f32[72,64], index: 2, kind: input, shape index: {}]   ;;  %s418_s3 = inlined_call_operand.vmem [shape: f32[72,64], index: 3, kind: input, shape index: {}]   ;;  %s419_s4 = inlined_call_operand.vmem [shape: f32[72,64], index: 4, kind: output, shape index: {}]  }
   0x1 LB: > { %s342_s16 = sadd.s32 4294967295, %s368_s15   ;;  %p346_p0 = scmp.ge.s32.totalorder %s368_s15, 1  ;;  %s368_s15 = sphi %s395_s15, %s14_s15  }
   0x2   : > { %p188_p1 = scmp.lt.s32.totalorder %s368_s15, 10 }
   0x4   : > { %p189_p2 = pnand %p346_p0, %p188_p1 }
   0x5   : > { %p224_p3 = scmp.lt.s32.totalorder (!%p189_p2), %s342_s16, 8 }
   0x6   : > { %192 = sbr.rel (%p189_p2) target bundleno = 23 (0x17), region = 36 }
   0xb   : > { %s421_s16 = smov (!%p224_p3, %s342_s16), 8  ;;  %vm251_vm0 = vcmask 523264  }
   0xc   : > { %s347_s17 = sshll.u32 %s421_s16, 3 }
   0xd   : > { %s227_s20 = scalar_lea.vmem %s415_s0, %s347_s17  ;;  %s231_s23 = scalar_lea.vmem %s416_s1, %s347_s17 }
   0xe   : > { %s235_s26 = scalar_lea.vmem %s417_s2, %s347_s17  ;;  %s239_s29 = scalar_lea.vmem %s418_s3, %s347_s17  ;;  %v244_v0 = vld [vmem:[%s227_s20] sm:$0xff] }
   0xf   : > { %v245_v1 = vld [vmem:[%s231_s23] sm:$0xff]  ;;  %s243_s6 = scalar_lea.vmem %s419_s4, %s347_s17 }
  0x10   : > { %v246_v2 = vmax.f32 %v244_v0, %v245_v1  ;;  %v247_v3 = vld [vmem:[%s235_s26] sm:$0xff] }
  0x11   : > { %v248_v4 = vld [vmem:[%s239_s29] sm:$0xff] }
  0x12   : > { %v249_v5 = vmax.f32 %v247_v3, %v248_v4 }
  0x14   : > { %v250_v6 = vmax.f32 %v246_v2, %v249_v5 }
  0x16   : > { %252 = vst.msk [vmem:[%s243_s6] sm:$0xff] %vm251_vm0, %v250_v6 }
  0x17 PF: > { %s14_s15 = sadd.s32 1, %s368_s15  }
  0x18   : > { %p11_p4 = scmp.ge.s32.totalorder %s14_s15, 11  }
  0x1a   :  { %13 = sbr.rel (!%p11_p4) target bundleno = 1 (0x1), region = 75 }

// kernel: cnn_forward.9
= control target key start
LH: loop header
LB: loop body
LE: loop exit
PB: predicated region body
PF: predicated region fallthrough
CT: control target
= control target key end

     0   :  { %v2206_v53 = vmov 0   ;;  %vm1478_vm0 = vcmask 13312   ;;  %s2692_s1 = inlined_call_operand.vmem [shape: bf16[2304,2], index: 1, kind: input, shape index: {}]   ;;  %s2693_s0 = inlined_call_operand.vmem [shape: bf16[6,2304], index: 0, kind: input, shape index: {}]   ;;  %s2694_s2 = inlined_call_operand.vmem [shape: f32[6,1], index: 2, kind: input, shape index: {}]   ;;  %s2695_s3 = inlined_call_operand.vmem [shape: f32[6,2], index: 3, kind: output, shape index: {}]  }
   0x1   :  { %v2067_v0 = vld [vmem:[%s2692_s1 + $0x38] sm:$0xff]  ;;  %v2066_v4 = vld [vmem:[%s2692_s1 + $0x30] sm:$0xff]  ;;  %v2065_v8 = vld [vmem:[%s2692_s1 + $0x28] sm:$0xff]  ;;  %2205 = vset.pattern.permute.xlu0 %v2206_v53 }
   0x2   :  { %v2075_v1 = vld [vmem:[%s2692_s1 + $0x78] sm:$0xff]  ;;  %1244 = vmatpush.bf16.msra.mxu0 %v2067_v0  ;;  %v2074_v5 = vld [vmem:[%s2692_s1 + $0x70] sm:$0xff]  ;;  %v2073_v9 = vld [vmem:[%s2692_s1 + $0x68] sm:$0xff] }
   0x3   :  { %v2083_v2 = vld [vmem:[%s2692_s1 + $0xb8] sm:$0xff]  ;;  %1257 = vmatpush.bf16.msra.mxu1 %v2075_v1  ;;  %v2082_v6 = vld [vmem:[%s2692_s1 + $0xb0] sm:$0xff]  ;;  %v2081_v10 = vld [vmem:[%s2692_s1 + $0xa8] sm:$0xff] }
   0x4   :  { %v2091_v3 = vld [vmem:[%s2692_s1 + $0xf8] sm:$0xff]  ;;  %1270 = vmatpush.bf16.msra.mxu2 %v2083_v2  ;;  %v2090_v7 = vld [vmem:[%s2692_s1 + $0xf0] sm:$0xff]  ;;  %v2089_v11 = vld [vmem:[%s2692_s1 + $0xe8] sm:$0xff] }
   0x5   :  { %1283 = vmatpush.bf16.msra.mxu3 %v2091_v3  ;;  %v2064_v12 = vld [vmem:[%s2692_s1 + $0x20] sm:$0xff]  ;;  %v2063_v16 = vld [vmem:[%s2692_s1 + $0x18] sm:$0xff]  ;;  %v2062_v20 = vld [vmem:[%s2692_s1 + $0x10] sm:$0xff] }
   0x6   :  { %1245 = vmatpush.bf16.msra.mxu0 %v2066_v4  ;;  %v2072_v13 = vld [vmem:[%s2692_s1 + $0x60] sm:$0xff]  ;;  %v2071_v17 = vld [vmem:[%s2692_s1 + $0x58] sm:$0xff]  ;;  %v2070_v21 = vld [vmem:[%s2692_s1 + $0x50] sm:$0xff] }
   0x7   :  { %1258 = vmatpush.bf16.msra.mxu1 %v2074_v5  ;;  %v2080_v14 = vld [vmem:[%s2692_s1 + $0xa0] sm:$0xff]  ;;  %v2079_v18 = vld [vmem:[%s2692_s1 + $0x98] sm:$0xff]  ;;  %v2078_v22 = vld [vmem:[%s2692_s1 + $0x90] sm:$0xff] }
   0x8   :  { %1271 = vmatpush.bf16.msra.mxu2 %v2082_v6  ;;  %v2088_v15 = vld [vmem:[%s2692_s1 + $0xe0] sm:$0xff]  ;;  %v2087_v19 = vld [vmem:[%s2692_s1 + $0xd8] sm:$0xff]  ;;  %v2086_v23 = vld [vmem:[%s2692_s1 + $0xd0] sm:$0xff] }
   0x9   :  { %1284 = vmatpush.bf16.msra.mxu3 %v2090_v7  ;;  %v2061_v24 = vld [vmem:[%s2692_s1 + $0x8] sm:$0xff]  ;;  %v14_v26 = vld [vmem:[%s2693_s0] sm:$0x77]  ;;  %v2099_v35 = vld [vmem:[%s2692_s1 + $0x138] sm:$0xff] }
   0xa   :  { %1246 = vmatpush.bf16.msra.mxu0 %v2065_v8  ;;  %v2069_v25 = vld [vmem:[%s2692_s1 + $0x48] sm:$0xff]  ;;  %v326_v30 = vunpack.c.l.b16 %v14_v26  ;;  %v2060_v31 = vld [vmem:[%s2692_s1] sm:$0xff]  ;;  %v327_v36 = vunpack.c.h.b16 %v14_v26  ;;  %v2107_v37 = vld [vmem:[%s2692_s1 + $0x178] sm:$0xff] }
   0xb   :  { %1259 = vmatpush.bf16.msra.mxu1 %v2073_v9  ;;  %v2077_v27 = vld [vmem:[%s2692_s1 + $0x88] sm:$0xff]  ;;  %v2068_v32 = vld [vmem:[%s2692_s1 + $0x40] sm:$0xff]  ;;  %v2115_v38 = vld [vmem:[%s2692_s1 + $0x1b8] sm:$0xff] }
   0xc   :  { %1272 = vmatpush.bf16.msra.mxu2 %v2081_v10  ;;  %v2085_v28 = vld [vmem:[%s2692_s1 + $0xc8] sm:$0xff]  ;;  %v2076_v34 = vld [vmem:[%s2692_s1 + $0x80] sm:$0xff]  ;;  %v344_v40 = vpack.c.b16 %v326_v30, %v326_v30  ;;  %v2123_v42 = vld [vmem:[%s2692_s1 + $0x1f8] sm:$0xff]  ;;  %v345_v45 = vpack.c.b16 %v327_v36, %v327_v36 }
   0xd   :  { %1285 = vmatpush.bf16.msra.mxu3 %v2089_v11  ;;  %v15_v29 = vld [vmem:[%s2693_s0 + $0x8] sm:$0x77]  ;;  %v2084_v39 = vld [vmem:[%s2692_s1 + $0xc0] sm:$0xff]  ;;  %v2098_v44 = vld [vmem:[%s2692_s1 + $0x130] sm:$0xff] }
   0xe   :  { %1247 = vmatpush.bf16.msra.mxu0 %v2064_v12  ;;  %v328_v33 = vunpack.c.l.b16 %v15_v29  ;;  %v329_v41 = vunpack.c.h.b16 %v15_v29  ;;  %v2106_v46 = vld [vmem:[%s2692_s1 + $0x170] sm:$0xff]  ;;  %v2097_v50 = vld [vmem:[%s2692_s1 + $0x128] sm:$0xff]  ;;  %v311_v55 = vld [vmem:[%s2694_s2] sm:$0x3f] }
   0xf   :  { %1260 = vmatpush.bf16.msra.mxu1 %v2072_v13  ;;  %v2114_v47 = vld [vmem:[%s2692_s1 + $0x1b0] sm:$0xff]  ;;  %v2105_v51 = vld [vmem:[%s2692_s1 + $0x168] sm:$0xff]  ;;  %v2096_v56 = vld [vmem:[%s2692_s1 + $0x120] sm:$0xff]  ;;  %314 = vperm.xlu0 %2205, %v311_v55  }
  0x10   :  { %1273 = vmatpush.bf16.msra.mxu2 %v2080_v14  ;;  %v346_v43 = vpack.c.b16 %v328_v33, %v328_v33  ;;  %v347_v48 = vpack.c.b16 %v329_v41, %v329_v41  ;;  %v2122_v49 = vld [vmem:[%s2692_s1 + $0x1f0] sm:$0xff]  ;;  %v2113_v52 = vld [vmem:[%s2692_s1 + $0x1a8] sm:$0xff]  ;;  %v2104_v57 = vld [vmem:[%s2692_s1 + $0x160] sm:$0xff] }
  0x11   :  { %1286 = vmatpush.bf16.msra.mxu3 %v2088_v15  ;;  %v2121_v54 = vld [vmem:[%s2692_s1 + $0x1e8] sm:$0xff]  ;;  %v2112_v58 = vld [vmem:[%s2692_s1 + $0x1a0] sm:$0xff]  ;;  %v2095_v60 = vld [vmem:[%s2692_s1 + $0x118] sm:$0xff] }
  0x12   :  { %1248 = vmatpush.bf16.msra.mxu0 %v2063_v16  ;;  %v2120_v59 = vld [vmem:[%s2692_s1 + $0x1e0] sm:$0xff]  ;;  %v2103_v61 = vld [vmem:[%s2692_s1 + $0x158] sm:$0xff]  ;;  %v2094_v0 = vld [vmem:[%s2692_s1 + $0x110] sm:$0xff] }
  0x13   :  { %1261 = vmatpush.bf16.msra.mxu1 %v2071_v17  ;;  %v2111_v62 = vld [vmem:[%s2692_s1 + $0x198] sm:$0xff]  ;;  %v2102_v1 = vld [vmem:[%s2692_s1 + $0x150] sm:$0xff]  ;;  %v2093_v4 = vld [vmem:[%s2692_s1 + $0x108] sm:$0xff] }
  0x14   :  { %1274 = vmatpush.bf16.msra.mxu2 %v2079_v18  ;;  %v2119_v63 = vld [vmem:[%s2692_s1 + $0x1d8] sm:$0xff]  ;;  %v2110_v2 = vld [vmem:[%s2692_s1 + $0x190] sm:$0xff]  ;;  %v2101_v5 = vld [vmem:[%s2692_s1 + $0x148] sm:$0xff] }
  0x15   :  { %1287 = vmatpush.bf16.msra.mxu3 %v2087_v19  ;;  %v2118_v3 = vld [vmem:[%s2692_s1 + $0x1d0] sm:$0xff]  ;;  %v2109_v6 = vld [vmem:[%s2692_s1 + $0x188] sm:$0xff]  ;;  %v17_v7 = vld [vmem:[%s2693_s0 + $0x18] sm:$0x77] }
  0x16   :  { %1249 = vmatpush.bf16.msra.mxu0 %v2062_v20  ;;  %v16_v8 = vld [vmem:[%s2693_s0 + $0x10] sm:$0x77]  ;;  %v2117_v9 = vld [vmem:[%s2692_s1 + $0x1c8] sm:$0xff]  ;;  %v2092_v10 = vld [vmem:[%s2692_s1 + $0x100] sm:$0xff]  ;;  %v332_v11 = vunpack.c.l.b16 %v17_v7  ;;  %v333_v20 = vunpack.c.h.b16 %v17_v7 }
  0x17   :  { %1262 = vmatpush.bf16.msra.mxu1 %v2070_v21  ;;  %v2100_v12 = vld [vmem:[%s2692_s1 + $0x140] sm:$0xff]  ;;  %v330_v14 = vunpack.c.l.b16 %v16_v8  ;;  %v331_v15 = vunpack.c.h.b16 %v16_v8  ;;  %v2131_v16 = vld [vmem:[%s2692_s1 + $0x238] sm:$0xff]  ;;  %v2138_v26 = vld [vmem:[%s2692_s1 + $0x270] sm:$0xff] }
  0x18   :  { %1275 = vmatpush.bf16.msra.mxu2 %v2078_v22  ;;  %v2108_v13 = vld [vmem:[%s2692_s1 + $0x180] sm:$0xff]  ;;  %v2139_v17 = vld [vmem:[%s2692_s1 + $0x278] sm:$0xff]  ;;  %v350_v22 = vpack.c.b16 %v332_v11, %v332_v11  ;;  %v2154_v29 = vld [vmem:[%s2692_s1 + $0x2f0] sm:$0xff] }
  0x19   :  { %1288 = vmatpush.bf16.msra.mxu3 %v2086_v23  ;;  %v2147_v18 = vld [vmem:[%s2692_s1 + $0x2b8] sm:$0xff]  ;;  %v2116_v19 = vld [vmem:[%s2692_s1 + $0x1c0] sm:$0xff]  ;;  %v348_v23 = vpack.c.b16 %v330_v14, %v330_v14  ;;  %v2129_v30 = vld [vmem:[%s2692_s1 + $0x228] sm:$0xff] }
  0x1a   :  { %1250 = vmatpush.bf16.msra.mxu0 %v2061_v24  ;;  %v2155_v21 = vld [vmem:[%s2692_s1 + $0x2f8] sm:$0xff]  ;;  %v349_v24 = vpack.c.b16 %v331_v15, %v331_v15  ;;  %v2153_v33 = vld [vmem:[%s2692_s1 + $0x2e8] sm:$0xff]  ;;  %v2144_v36 = vld [vmem:[%s2692_s1 + $0x2a0] sm:$0xff] }
  0x1b   :  { %1263 = vmatpush.bf16.msra.mxu1 %v2069_v25  ;;  %v2130_v25 = vld [vmem:[%s2692_s1 + $0x230] sm:$0xff]  ;;  %v2151_v41 = vld [vmem:[%s2692_s1 + $0x2d8] sm:$0xff]  ;;  %v2124_v53 = vld [vmem:[%s2692_s1 + $0x200] sm:$0xff] }
  0x1c   :  { %1276 = vmatpush.bf16.msra.mxu2 %v2077_v27  ;;  %v2146_v27 = vld [vmem:[%s2692_s1 + $0x2b0] sm:$0xff]  ;;  %v2161_v8 = vld [vmem:[%s2692_s1 + $0x328] sm:$0xff]  ;;  %v2176_v14 = vld [vmem:[%s2692_s1 + $0x3a0] sm:$0xff] }
  0x1d   :  { %1289 = vmatpush.bf16.msra.mxu3 %v2085_v28  ;;  %v351_v28 = vpack.c.b16 %v333_v20, %v333_v20  ;;  %v2186_v7 = vld [vmem:[%s2692_s1 + $0x3f0] sm:$0xff]  ;;  %v2185_v11 = vld [vmem:[%s2692_s1 + $0x3e8] sm:$0xff]  ;;  %v2184_v15 = vld [vmem:[%s2692_s1 + $0x3e0] sm:$0xff] }
  0x1e   :  { %1251 = vmatpush.bf16.msra.mxu0 %v2060_v31  ;;  %v2137_v31 = vld [vmem:[%s2692_s1 + $0x268] sm:$0xff]  ;;  %v2158_v20 = vld [vmem:[%s2692_s1 + $0x310] sm:$0xff] }
  0x1f   :  { %1264 = vmatpush.bf16.msra.mxu1 %v2068_v32  ;;  %v2145_v32 = vld [vmem:[%s2692_s1 + $0x2a8] sm:$0xff] }
  0x20   :  { %1277 = vmatpush.bf16.msra.mxu2 %v2076_v34  ;;  %v2128_v34 = vld [vmem:[%s2692_s1 + $0x220] sm:$0xff] }
  0x21   :  { %1290 = vmatpush.bf16.msra.mxu3 %v2084_v39  ;;  %1252 = vmatmul.bf16.vlgmr.msra.gmra.mxu0 %v344_v40  ;;  %v2135_v39 = vld [vmem:[%s2692_s1 + $0x258] sm:$0xff] }
  0x22   :  { %1296 = vmatpush.bf16.msrb.mxu0 %v2099_v35  ;;  %1265 = vmatmul.bf16.vlgmr.msra.gmra.mxu1 %v345_v45  ;;  %v2136_v35 = vld [vmem:[%s2692_s1 + $0x260] sm:$0xff]  ;;  %v2143_v40 = vld [vmem:[%s2692_s1 + $0x298] sm:$0xff]  ;;  %v2150_v45 = vld [vmem:[%s2692_s1 + $0x2d0] sm:$0xff] }
  0x23   :  { %1309 = vmatpush.bf16.msrb.mxu1 %v2107_v37  ;;  %1278 = vmatmul.bf16.vlgmr.msra.gmra.mxu2 %v346_v43  ;;  %v2152_v37 = vld [vmem:[%s2692_s1 + $0x2e0] sm:$0xff]  ;;  %v2134_v43 = vld [vmem:[%s2692_s1 + $0x250] sm:$0xff] }
  0x24   :  { %1322 = vmatpush.bf16.msrb.mxu2 %v2115_v38  ;;  %1291 = vmatmul.bf16.vlgmr.msra.gmra.mxu3 %v347_v48  ;;  %v2127_v38 = vld [vmem:[%s2692_s1 + $0x218] sm:$0xff]  ;;  %v18_v48 = vld [vmem:[%s2693_s0 + $0x20] sm:$0x77] }
  0x25   :  { %1335 = vmatpush.bf16.msrb.mxu3 %v2123_v42  ;;  %v2126_v42 = vld [vmem:[%s2692_s1 + $0x210] sm:$0xff] }
  0x26   :  { %1297 = vmatpush.bf16.msrb.mxu0 %v2098_v44  ;;  %v2142_v44 = vld [vmem:[%s2692_s1 + $0x290] sm:$0xff] }
  0x27   :  { %1310 = vmatpush.bf16.msrb.mxu1 %v2106_v46  ;;  %v2125_v46 = vld [vmem:[%s2692_s1 + $0x208] sm:$0xff] }
  0x28   :  { %1323 = vmatpush.bf16.msrb.mxu2 %v2114_v47  ;;  %v2133_v47 = vld [vmem:[%s2692_s1 + $0x248] sm:$0xff] }
  0x29   :  { %1336 = vmatpush.bf16.msrb.mxu3 %v2122_v49  ;;  %v2141_v49 = vld [vmem:[%s2692_s1 + $0x288] sm:$0xff] }
  0x2a   :  { %1298 = vmatpush.bf16.msrb.mxu0 %v2097_v50  ;;  %v19_v50 = vld [vmem:[%s2693_s0 + $0x28] sm:$0x77] }
  0x2b   :  { %1311 = vmatpush.bf16.msrb.mxu1 %v2105_v51  ;;  %v2149_v51 = vld [vmem:[%s2692_s1 + $0x2c8] sm:$0xff]  ;;  %v336_v55 = vunpack.c.l.b16 %v19_v50 }
  0x2c   :  { %1324 = vmatpush.bf16.msrb.mxu2 %v2113_v52  ;;  %v334_v52 = vunpack.c.l.b16 %v18_v48 }
  0x2d   :  { %1337 = vmatpush.bf16.msrb.mxu3 %v2121_v54  ;;  %v2132_v54 = vld [vmem:[%s2692_s1 + $0x240] sm:$0xff] }
  0x2e   :  { %1299 = vmatpush.bf16.msrb.mxu0 %v2096_v56  ;;  %v2140_v56 = vld [vmem:[%s2692_s1 + $0x280] sm:$0xff] }
  0x2f   :  { %1312 = vmatpush.bf16.msrb.mxu1 %v2104_v57  ;;  %v2163_v57 = vld [vmem:[%s2692_s1 + $0x338] sm:$0xff] }
  0x30   :  { %1325 = vmatpush.bf16.msrb.mxu2 %v2112_v58  ;;  %v335_v58 = vunpack.c.h.b16 %v18_v48  ;;  %v2192_v48 = vld [vmem:[%s2692_s1 + $0x420] sm:$0xff] }
  0x31   :  { %1338 = vmatpush.bf16.msrb.mxu3 %v2120_v59  ;;  %v2171_v59 = vld [vmem:[%s2692_s1 + $0x378] sm:$0xff] }
  0x32   :  { %1300 = vmatpush.bf16.msrb.mxu0 %v2095_v60  ;;  %v2179_v60 = vld [vmem:[%s2692_s1 + $0x3b8] sm:$0xff] }
  0x33   :  { %1313 = vmatpush.bf16.msrb.mxu1 %v2103_v61  ;;  %v337_v61 = vunpack.c.h.b16 %v19_v50  ;;  %v2191_v50 = vld [vmem:[%s2692_s1 + $0x418] sm:$0xff] }
  0x34   :  { %1326 = vmatpush.bf16.msrb.mxu2 %v2111_v62  ;;  %v2148_v62 = vld [vmem:[%s2692_s1 + $0x2c0] sm:$0xff] }
  0x35   :  { %1339 = vmatpush.bf16.msrb.mxu3 %v2119_v63  ;;  %v352_v63 = vpack.c.b16 %v334_v52, %v334_v52  ;;  %v2190_v52 = vld [vmem:[%s2692_s1 + $0x410] sm:$0xff] }
  0x36   :  { %1301 = vmatpush.bf16.msrb.mxu0 %v2094_v0  ;;  %v354_v0 = vpack.c.b16 %v336_v55, %v336_v55  ;;  %v22_v55 = vld [vmem:[%s2693_s0 + $0x40] sm:$0x77] }
  0x37   :  { %1314 = vmatpush.bf16.msrb.mxu1 %v2102_v1  ;;  %v2187_v1 = vld [vmem:[%s2692_s1 + $0x3f8] sm:$0xff] }
  0x38   :  { %1327 = vmatpush.bf16.msrb.mxu2 %v2110_v2  ;;  %v353_v2 = vpack.c.b16 %v335_v58, %v335_v58  ;;  %v2188_v58 = vld [vmem:[%s2692_s1 + $0x400] sm:$0xff] }
  0x39   :  { %1340 = vmatpush.bf16.msrb.mxu3 %v2118_v3  ;;  %v2162_v3 = vld [vmem:[%s2692_s1 + $0x330] sm:$0xff] }
  0x3a   :  { %1302 = vmatpush.bf16.msrb.mxu0 %v2093_v4  ;;  %v355_v4 = vpack.c.b16 %v337_v61, %v337_v61 }
  0x3b   :  { %1315 = vmatpush.bf16.msrb.mxu1 %v2101_v5  ;;  %v2170_v5 = vld [vmem:[%s2692_s1 + $0x370] sm:$0xff] }
  0x3c   :  { %1328 = vmatpush.bf16.msrb.mxu2 %v2109_v6  ;;  %v2178_v6 = vld [vmem:[%s2692_s1 + $0x3b0] sm:$0xff] }
  0x3d   :  { %1341 = vmatpush.bf16.msrb.mxu3 %v2117_v9  ;;  %v2169_v9 = vld [vmem:[%s2692_s1 + $0x368] sm:$0xff] }
  0x3e   :  { %1303 = vmatpush.bf16.msrb.mxu0 %v2092_v10  ;;  %v2177_v10 = vld [vmem:[%s2692_s1 + $0x3a8] sm:$0xff] }
  0x3f   :  { %1316 = vmatpush.bf16.msrb.mxu1 %v2100_v12  ;;  %v2160_v12 = vld [vmem:[%s2692_s1 + $0x320] sm:$0xff] }
  0x40   :  { %1329 = vmatpush.bf16.msrb.mxu2 %v2108_v13  ;;  %v2168_v13 = vld [vmem:[%s2692_s1 + $0x360] sm:$0xff] }
  0x41   :  { %1342 = vmatpush.bf16.msrb.mxu3 %v2116_v19  ;;  %1304 = vmatmul.bf16.vlgmr.msrb.gmra.mxu0 %v348_v23  ;;  %v2183_v19 = vld [vmem:[%s2692_s1 + $0x3d8] sm:$0xff]  ;;  %v2182_v23 = vld [vmem:[%s2692_s1 + $0x3d0] sm:$0xff] }
  0x42   :  { %1348 = vmatpush.bf16.msra.mxu0 %v2131_v16  ;;  %1317 = vmatmul.bf16.vlgmr.msrb.gmra.mxu1 %v349_v24  ;;  %v2159_v16 = vld [vmem:[%s2692_s1 + $0x318] sm:$0xff]  ;;  %v2157_v24 = vld [vmem:[%s2692_s1 + $0x308] sm:$0xff] }
  0x43   :  { %1361 = vmatpush.bf16.msra.mxu1 %v2139_v17  ;;  %1330 = vmatmul.bf16.vlgmr.msrb.gmra.mxu2 %v350_v22  ;;  %v2167_v17 = vld [vmem:[%s2692_s1 + $0x358] sm:$0xff]  ;;  %v2174_v22 = vld [vmem:[%s2692_s1 + $0x390] sm:$0xff] }
  0x44   :  { %1374 = vmatpush.bf16.msra.mxu2 %v2147_v18  ;;  %1343 = vmatmul.bf16.vlgmr.msrb.gmra.mxu3 %v351_v28  ;;  %v2175_v18 = vld [vmem:[%s2692_s1 + $0x398] sm:$0xff] }
  0x45   :  { %1387 = vmatpush.bf16.msra.mxu3 %v2155_v21  ;;  %v2166_v21 = vld [vmem:[%s2692_s1 + $0x350] sm:$0xff]  ;;  %v21_v28 = vld [vmem:[%s2693_s0 + $0x38] sm:$0x77] }
  0x46   :  { %1349 = vmatpush.bf16.msra.mxu0 %v2130_v25  ;;  %v20_v25 = vld [vmem:[%s2693_s0 + $0x30] sm:$0x77] }
  0x47   :  { %1362 = vmatpush.bf16.msra.mxu1 %v2138_v26  ;;  %v2165_v26 = vld [vmem:[%s2692_s1 + $0x348] sm:$0xff] }
  0x48   :  { %1375 = vmatpush.bf16.msra.mxu2 %v2146_v27  ;;  %v2173_v27 = vld [vmem:[%s2692_s1 + $0x388] sm:$0xff] }
  0x49   :  { %1388 = vmatpush.bf16.msra.mxu3 %v2154_v29  ;;  %v2181_v29 = vld [vmem:[%s2692_s1 + $0x3c8] sm:$0xff] }
  0x4a   :  { %1350 = vmatpush.bf16.msra.mxu0 %v2129_v30  ;;  %v338_v30 = vunpack.c.l.b16 %v20_v25 }
  0x4b   :  { %1363 = vmatpush.bf16.msra.mxu1 %v2137_v31  ;;  %v2156_v31 = vld [vmem:[%s2692_s1 + $0x300] sm:$0xff] }
  0x4c   :  { %1376 = vmatpush.bf16.msra.mxu2 %v2145_v32  ;;  %v339_v32 = vunpack.c.h.b16 %v20_v25 }
  0x4d   :  { %1389 = vmatpush.bf16.msra.mxu3 %v2153_v33  ;;  %v2164_v33 = vld [vmem:[%s2692_s1 + $0x340] sm:$0xff] }
  0x4e   :  { %1351 = vmatpush.bf16.msra.mxu0 %v2128_v34  ;;  %v2195_v34 = vld [vmem:[%s2692_s1 + $0x438] sm:$0xff] }
  0x4f   :  { %1364 = vmatpush.bf16.msra.mxu1 %v2136_v35  ;;  %v340_v35 = vunpack.c.l.b16 %v21_v28 }
  0x50   :  { %1377 = vmatpush.bf16.msra.mxu2 %v2144_v36  ;;  %v2172_v36 = vld [vmem:[%s2692_s1 + $0x380] sm:$0xff] }
  0x51   :  { %1390 = vmatpush.bf16.msra.mxu3 %v2152_v37  ;;  %v2203_v37 = vld [vmem:[%s2692_s1 + $0x478] sm:$0xff] }
  0x52   :  { %1352 = vmatpush.bf16.msra.mxu0 %v2127_v38  ;;  %v341_v38 = vunpack.c.h.b16 %v21_v28 }
  0x53   :  { %1365 = vmatpush.bf16.msra.mxu1 %v2135_v39  ;;  %v2180_v39 = vld [vmem:[%s2692_s1 + $0x3c0] sm:$0xff] }
  0x54   :  { %1378 = vmatpush.bf16.msra.mxu2 %v2143_v40  ;;  %v356_v40 = vpack.c.b16 %v338_v30, %v338_v30 }
  0x55   :  { %1391 = vmatpush.bf16.msra.mxu3 %v2151_v41  ;;  %v357_v41 = vpack.c.b16 %v339_v32, %v339_v32 }
  0x56   :  { %1353 = vmatpush.bf16.msra.mxu0 %v2126_v42  ;;  %v358_v42 = vpack.c.b16 %v340_v35, %v340_v35 }
  0x57   :  { %1366 = vmatpush.bf16.msra.mxu1 %v2134_v43  ;;  %v2194_v43 = vld [vmem:[%s2692_s1 + $0x430] sm:$0xff] }
  0x58   :  { %1379 = vmatpush.bf16.msra.mxu2 %v2142_v44  ;;  %v359_v44 = vpack.c.b16 %v341_v38, %v341_v38 }
  0x59   :  { %1392 = vmatpush.bf16.msra.mxu3 %v2150_v45  ;;  %v2202_v45 = vld [vmem:[%s2692_s1 + $0x470] sm:$0xff] }
  0x5a   :  { %1354 = vmatpush.bf16.msra.mxu0 %v2125_v46  ;;  %v2193_v46 = vld [vmem:[%s2692_s1 + $0x428] sm:$0xff] }
  0x5b   :  { %1367 = vmatpush.bf16.msra.mxu1 %v2133_v47  ;;  %v2201_v47 = vld [vmem:[%s2692_s1 + $0x468] sm:$0xff] }
  0x5c   :  { %1380 = vmatpush.bf16.msra.mxu2 %v2141_v49  ;;  %v2200_v49 = vld [vmem:[%s2692_s1 + $0x460] sm:$0xff] }
  0x5d   :  { %1393 = vmatpush.bf16.msra.mxu3 %v2149_v51  ;;  %v2199_v51 = vld [vmem:[%s2692_s1 + $0x458] sm:$0xff] }
  0x5e   :  { %1355 = vmatpush.bf16.msra.mxu0 %v2124_v53  ;;  %v2198_v53 = vld [vmem:[%s2692_s1 + $0x450] sm:$0xff] }
  0x5f   :  { %1368 = vmatpush.bf16.msra.mxu1 %v2132_v54  ;;  %v2189_v54 = vld [vmem:[%s2692_s1 + $0x408] sm:$0xff] }
  0x60   :  { %1381 = vmatpush.bf16.msra.mxu2 %v2140_v56  ;;  %v2197_v56 = vld [vmem:[%s2692_s1 + $0x448] sm:$0xff] }
  0x61   :  { %1394 = vmatpush.bf16.msra.mxu3 %v2148_v62  ;;  %1356 = vmatmul.bf16.vlgmr.msra.gmra.mxu0 %v352_v63 }
  0x62   :  { %1400 = vmatpush.bf16.msrb.mxu0 %v2163_v57  ;;  %1369 = vmatmul.bf16.vlgmr.msra.gmra.mxu1 %v353_v2  ;;  %v342_v57 = vunpack.c.l.b16 %v22_v55 }
  0x63   :  { %1413 = vmatpush.bf16.msrb.mxu1 %v2171_v59  ;;  %1382 = vmatmul.bf16.vlgmr.msra.gmra.mxu2 %v354_v0  ;;  %v343_v59 = vunpack.c.h.b16 %v22_v55 }
  0x64   :  { %1426 = vmatpush.bf16.msrb.mxu2 %v2179_v60  ;;  %1395 = vmatmul.bf16.vlgmr.msra.gmra.mxu3 %v355_v4  ;;  %v2196_v60 = vld [vmem:[%s2692_s1 + $0x440] sm:$0xff]  ;;  %v360_v61 = vpack.c.b16 %v342_v57, %v342_v57 }
  0x65   :  { %1439 = vmatpush.bf16.msrb.mxu3 %v2187_v1  ;;  %v361_v62 = vpack.c.b16 %v343_v59, %v343_v59 }
  0x66   :  { %1401 = vmatpush.bf16.msrb.mxu0 %v2162_v3 }
  0x67   :  { %1414 = vmatpush.bf16.msrb.mxu1 %v2170_v5 }
  0x68   :  { %1427 = vmatpush.bf16.msrb.mxu2 %v2178_v6 }
  0x69   :  { %1440 = vmatpush.bf16.msrb.mxu3 %v2186_v7 }
  0x6a   :  { %1402 = vmatpush.bf16.msrb.mxu0 %v2161_v8 }
  0x6b   :  { %1415 = vmatpush.bf16.msrb.mxu1 %v2169_v9 }
  0x6c   :  { %1428 = vmatpush.bf16.msrb.mxu2 %v2177_v10 }
  0x6d   :  { %1441 = vmatpush.bf16.msrb.mxu3 %v2185_v11 }
  0x6e   :  { %1403 = vmatpush.bf16.msrb.mxu0 %v2160_v12 }
  0x6f   :  { %1416 = vmatpush.bf16.msrb.mxu1 %v2168_v13 }
  0x70   :  { %1429 = vmatpush.bf16.msrb.mxu2 %v2176_v14 }
  0x71   :  { %1442 = vmatpush.bf16.msrb.mxu3 %v2184_v15 }
  0x72   :  { %1404 = vmatpush.bf16.msrb.mxu0 %v2159_v16 }
  0x73   :  { %1417 = vmatpush.bf16.msrb.mxu1 %v2167_v17 }
  0x74   :  { %1430 = vmatpush.bf16.msrb.mxu2 %v2175_v18 }
  0x75   :  { %1443 = vmatpush.bf16.msrb.mxu3 %v2183_v19 }
  0x76   :  { %1405 = vmatpush.bf16.msrb.mxu0 %v2158_v20 }
  0x77   :  { %1418 = vmatpush.bf16.msrb.mxu1 %v2166_v21 }
  0x78   :  { %1431 = vmatpush.bf16.msrb.mxu2 %v2174_v22 }
  0x79   :  { %1444 = vmatpush.bf16.msrb.mxu3 %v2182_v23 }
  0x7a   :  { %1406 = vmatpush.bf16.msrb.mxu0 %v2157_v24 }
  0x7b   :  { %1419 = vmatpush.bf16.msrb.mxu1 %v2165_v26 }
  0x7c   :  { %1432 = vmatpush.bf16.msrb.mxu2 %v2173_v27 }
  0x7d   :  { %1445 = vmatpush.bf16.msrb.mxu3 %v2181_v29 }
  0x7e   :  { %1407 = vmatpush.bf16.msrb.mxu0 %v2156_v31 }
  0x7f   :  { %1420 = vmatpush.bf16.msrb.mxu1 %v2164_v33 }
  0x80   :  { %1433 = vmatpush.bf16.msrb.mxu2 %v2172_v36 }
  0x81   :  { %1446 = vmatpush.bf16.msrb.mxu3 %v2180_v39  ;;  %1408 = vmatmul.bf16.vlgmr.msrb.gmra.mxu0 %v356_v40  ;;  %v315_v63 = vpop.permute.xlu0 %314 }
  0x82   :  { %1452 = vmatpush.bf16.msra.mxu0 %v2195_v34  ;;  %1421 = vmatmul.bf16.vlgmr.msrb.gmra.mxu1 %v357_v41 }
  0x83   :  { %1465 = vmatpush.bf16.msra.mxu1 %v2203_v37  ;;  %1434 = vmatmul.bf16.vlgmr.msrb.gmra.mxu2 %v358_v42 }
  0x84   :  { %1447 = vmatmul.bf16.vlgmr.msrb.gmra.mxu3 %v359_v44 }
  0x86   :  { %1453 = vmatpush.bf16.msra.mxu0 %v2194_v43 }
  0x87   :  { %1466 = vmatpush.bf16.msra.mxu1 %v2202_v45 }
  0x8a   :  { %1454 = vmatpush.bf16.msra.mxu0 %v2193_v46 }
  0x8b   :  { %1467 = vmatpush.bf16.msra.mxu1 %v2201_v47 }
  0x8e   :  { %1455 = vmatpush.bf16.msra.mxu0 %v2192_v48 }
  0x8f   :  { %1468 = vmatpush.bf16.msra.mxu1 %v2200_v49 }
  0x92   :  { %1456 = vmatpush.bf16.msra.mxu0 %v2191_v50 }
  0x93   :  { %1469 = vmatpush.bf16.msra.mxu1 %v2199_v51 }
  0x96   :  { %1457 = vmatpush.bf16.msra.mxu0 %v2190_v52 }
  0x97   :  { %1470 = vmatpush.bf16.msra.mxu1 %v2198_v53 }
  0x9a   :  { %1458 = vmatpush.bf16.msra.mxu0 %v2189_v54 }
  0x9b   :  { %1471 = vmatpush.bf16.msra.mxu1 %v2197_v56 }
  0x9e   :  { %1459 = vmatpush.bf16.msra.mxu0 %v2188_v58  ;;  %v1253_v0 = vpop.f32.mrf.mxu0 }
  0x9f   :  { %1472 = vmatpush.bf16.msra.mxu1 %v2196_v60  ;;  %v1254_v1 = vadd.f32 %v1253_v0, %v315_v63  ;;  %v1266_v2 = vpop.f32.mrf.mxu1 }
  0xa1   :  { %1460 = vmatmul.bf16.vlgmr.msra.gmra.mxu0 %v360_v61  ;;  %v1267_v3 = vadd.f32 %v1266_v2, %v1254_v1 }
  0xa2   :  { %1473 = vmatmul.bf16.vlgmr.msra.gmra.mxu1 %v361_v62 }
  0xa6   :  { %v1279_v4 = vpop.f32.mrf.mxu2  ;;  %v1255_v5 = vpop.f32.mrf.mxu0 }
  0xa7   :  { %v1280_v6 = vadd.f32 %v1279_v4, %v1267_v3  ;;  %v1292_v7 = vpop.f32.mrf.mxu3  ;;  %v1268_v8 = vpop.f32.mrf.mxu1 }
  0xa9   :  { %v1293_v9 = vadd.f32 %v1292_v7, %v1280_v6 }
  0xae   :  { %v1281_v10 = vpop.f32.mrf.mxu2 }
  0xaf   :  { %v1294_v11 = vpop.f32.mrf.mxu3 }
  0xbe   :  { %v1305_v12 = vpop.f32.mrf.mxu0 }
  0xbf   :  { %v1318_v13 = vpop.f32.mrf.mxu1  ;;  %v1306_v28 = vadd.f32 %v1305_v12, %v1293_v9 }
  0xc1   :  { %v1319_v29 = vadd.f32 %v1318_v13, %v1306_v28 }
  0xc6   :  { %v1331_v14 = vpop.f32.mrf.mxu2  ;;  %v1307_v16 = vpop.f32.mrf.mxu0 }
  0xc7   :  { %v1344_v15 = vpop.f32.mrf.mxu3  ;;  %v1320_v17 = vpop.f32.mrf.mxu1  ;;  %v1332_v30 = vadd.f32 %v1331_v14, %v1319_v29 }
  0xc9   :  { %v1345_v33 = vadd.f32 %v1344_v15, %v1332_v30 }
  0xce   :  { %v1333_v18 = vpop.f32.mrf.mxu2 }
  0xcf   :  { %v1346_v19 = vpop.f32.mrf.mxu3 }
  0xde   :  { %v1357_v20 = vpop.f32.mrf.mxu0 }
  0xdf   :  { %v1370_v21 = vpop.f32.mrf.mxu1  ;;  %v1358_v34 = vadd.f32 %v1357_v20, %v1345_v33 }
  0xe1   :  { %v1371_v39 = vadd.f32 %v1370_v21, %v1358_v34 }
  0xe6   :  { %v1383_v22 = vpop.f32.mrf.mxu2  ;;  %v1359_v23 = vpop.f32.mrf.mxu0 }
  0xe7   :  { %v1396_v24 = vpop.f32.mrf.mxu3  ;;  %v1372_v25 = vpop.f32.mrf.mxu1  ;;  %v1384_v40 = vadd.f32 %v1383_v22, %v1371_v39 }
  0xe9   :  { %v1397_v41 = vadd.f32 %v1396_v24, %v1384_v40 }
  0xee   :  { %v1385_v26 = vpop.f32.mrf.mxu2 }
  0xef   :  { %v1398_v27 = vpop.f32.mrf.mxu3 }
  0xfe   :  { %v1409_v31 = vpop.f32.mrf.mxu0 }
  0xff   :  { %v1422_v32 = vpop.f32.mrf.mxu1  ;;  %v1410_v44 = vadd.f32 %v1409_v31, %v1397_v41 }
 0x101   :  { %v1423_v45 = vadd.f32 %v1422_v32, %v1410_v44 }
 0x106   :  { %v1435_v35 = vpop.f32.mrf.mxu2  ;;  %v1411_v36 = vpop.f32.mrf.mxu0 }
 0x107   :  { %v1448_v37 = vpop.f32.mrf.mxu3  ;;  %v1424_v38 = vpop.f32.mrf.mxu1  ;;  %v1436_v46 = vadd.f32 %v1435_v35, %v1423_v45 }
 0x109   :  { %v1449_v47 = vadd.f32 %v1448_v37, %v1436_v46 }
 0x10e   :  { %v1437_v42 = vpop.f32.mrf.mxu2 }
 0x10f   :  { %v1450_v43 = vpop.f32.mrf.mxu3 }
 0x11e   :  { %v1461_v48 = vpop.f32.mrf.mxu0 }
 0x11f   :  { %v1462_v49 = vadd.f32 %v1461_v48, %v1449_v47  ;;  %v1474_v50 = vpop.f32.mrf.mxu1 }
 0x121   :  { %v1475_v51 = vadd.f32 %v1474_v50, %v1462_v49 }
 0x123   :  { %1479 = vst.msk [vmem:[%s2695_s3] sm:$0x3f] %vm1478_vm0, %v1475_v51 }
 0x126   :  { %v1463_v52 = vpop.f32.mrf.mxu0 }
 0x127   :  { %v1476_v53 = vpop.f32.mrf.mxu1 }

</bundles_post_ra>
